<compile_context>
chip_gen: v7x
topology: tpu7x:2x2x1
jax: 0.10.0
libtpu: 0.0.40
codegen_flags: <defaults>
</compile_context>

<pallas_src>
import jax
import jax.numpy as jnp
from jax.experimental import pallas as pl
from jax.experimental.pallas import tpu as pltpu


def _upsample_conv_kernel(xm_ref, xh_ref, w_ref, b_ref, o_ref, xsh_ref):
    # xm_ref : (1, TH_IN, W+2, C)  bf16  main rows of the zero-padded ORIGINAL image
    # xh_ref : (1, 2, W+2, C)      bf16  2-row bottom halo
    # w_ref  : (4, 4C, C)          bf16  per-phase K-packed weights, phase = dy*2+dx,
    #                                    rows tap-major in order (i,j)=(0,0),(0,1),(1,0),(1,1)
    # b_ref  : (1, C)              f32   bias
    # o_ref  : (1, TH_IN, 2, W, 2C)      depth-to-space output: [., y, dy, x, dx*C + c]
    # xsh_ref: (2, TH_IN+1, W, 4C) bf16  per-dx im2col scratch
    TH_IN = xm_ref.shape[1]
    C = xm_ref.shape[3]
    W = xm_ref.shape[2] - 2
    M = TH_IN * W

    # Build the two K-packed im2col windows once per step.
    # xsh[dx][r, x, (2i+j)*C : +C] = window[r+i, x+dx+j, :]
    # where window[r] = x_pad[t*TH_IN + r] (rows 0..TH_IN-1 from xm, TH_IN..TH_IN+1 from xh).
    for dx in range(2):
        for i in range(2):
            for j in range(2):
                k = 2 * i + j
                col = dx + j
                xsh_ref[dx, 0:TH_IN - i, :, k * C:(k + 1) * C] = \
                    xm_ref[0, i:TH_IN, col:col + W, :]
                xsh_ref[dx, TH_IN - i:TH_IN + 1, :, k * C:(k + 1) * C] = \
                    xh_ref[0, 0:1 + i, col:col + W, :]

    bias = b_ref[...]  # (1, C) f32, broadcasts over M

    # One K=4C matmul per output phase; register accumulation; single store per phase.
    for dy in range(2):
        for dx in range(2):
            patch = xsh_ref[dx, dy:dy + TH_IN].reshape(M, 4 * C)          # bf16 (M, 4C)
            res = jnp.dot(patch, w_ref[2 * dy + dx],
                          preferred_element_type=jnp.float32) + bias       # f32 (M, C)
            o_ref[0, :, dy, :, dx * C:(dx + 1) * C] = \
                res.reshape(TH_IN, W, C).astype(o_ref.dtype)


def _choose_tile(N, H, W, C, out_itemsize):
    # Even divisors of H, largest first (bigger tiles amortize per-step overhead;
    # the halo index_map requires TH_IN even).
    cands = [d for d in range(min(H, 64), 1, -1) if H % d == 0 and d % 2 == 0]
    if not cands:
        raise ValueError("H must be even for this tiling")

    def est_vmem(th):
        xm = 2 * th * (W + 2) * C * 2             # double-buffered bf16 input block
        xh = 2 * 2 * (W + 2) * C * 2              # halo block
        wts = 2 * 4 * 4 * C * C * 2               # (double-buffered) bf16 fused weights
        out = 2 * th * 2 * W * 2 * C * out_itemsize
        xsh = 2 * (th + 1) * W * 4 * C * 2
        return xm + xh + wts + out + xsh + 4 * C

    budget = 24 << 20                             # headroom even on v7x's 64 MiB VMEM
    fitting = [d for d in cands if est_vmem(d) <= budget] or [cands[-1]]
    if N == 1:
        # v7x shards the parallel grid over 2 TensorCores: prefer even T = H/TH_IN.
        even_t = [d for d in fitting if (H // d) % 2 == 0]
        if even_t:
            fitting = even_t
    th = fitting[0]
    return th, est_vmem(th)


def upsample_forward(x_nchw, weight_oihw, bias):
    """Equivalent of conv3x3(F.interpolate(x, scale_factor=2, mode='nearest'))."""
    N, C, H, W = x_nchw.shape
    out_dtype = x_nchw.dtype
    TH_IN, est = _choose_tile(N, H, W, C, jnp.dtype(out_dtype).itemsize)
    assert TH_IN % 2 == 0 and H % TH_IN == 0      # halo index_map relies on this
    T = H // TH_IN

    # NCHW -> NHWC, bf16, 1-pixel zero pad at ORIGINAL resolution.  The identity
    # pad(upsample(x),1)[r,c] == x_pad[(r+1)//2, (c+1)//2] lets the kernel work
    # entirely at original resolution.
    x_nhwc = jnp.transpose(x_nchw, (0, 2, 3, 1)).astype(jnp.bfloat16)
    x_pad = jnp.pad(x_nhwc, ((0, 0), (1, 1), (1, 1), (0, 0)))      # (N, H+2, W+2, C)

    # Fold the upsample into the conv weights:
    #   out[2y+dy, 2x+dx] = b + sum_{i,j in {0,1}} x_pad[y+dy+i, x+dx+j] @ Weff[dy,dx,i,j]
    w_hwio = jnp.transpose(weight_oihw, (2, 3, 1, 0)).astype(jnp.float32)
    sel = jnp.array([[[1, 0, 0], [0, 1, 1]],
                     [[1, 1, 0], [0, 0, 1]]], jnp.float32)         # (dy|dx, i|j, k|l)
    w_eff = jnp.einsum('aik,bjl,klcd->abijcd', sel, sel, w_hwio)   # (2,2,2,2,Cin,Cout)
    # K-pack the four taps of each phase: (phase, 4*Cin, Cout), tap-major rows.
    w4 = w_eff.reshape(4, 4, C, C).reshape(4, 4 * C, C).astype(jnp.bfloat16)
    b2d = bias.reshape(1, C).astype(jnp.float32)

    vmem_limit = int(min(max(4 * est, 32 << 20), 56 << 20))

    out5 = pl.pallas_call(
        _upsample_conv_kernel,
        out_shape=jax.ShapeDtypeStruct((N, H, 2, W, 2 * C), out_dtype),
        grid_spec=pltpu.PrefetchScalarGridSpec(
            num_scalar_prefetch=0,
            grid=(N, T),
            in_specs=[
                # main TH_IN rows of this tile
                pl.BlockSpec((1, TH_IN, W + 2, C), lambda n, t: (n, t, 0, 0)),
                # 2-row bottom halo (rows (t+1)*TH_IN .. +2); TH_IN is even
                pl.BlockSpec((1, 2, W + 2, C),
                             lambda n, t: (n, (t + 1) * (TH_IN // 2), 0, 0)),
                pl.BlockSpec((4, 4 * C, C), lambda n, t: (0, 0, 0)),
                pl.BlockSpec((1, C), lambda n, t: (0, 0)),
            ],
            out_specs=pl.BlockSpec((1, TH_IN, 2, W, 2 * C),
                                   lambda n, t: (n, t, 0, 0, 0)),
            scratch_shapes=[
                pltpu.VMEM((2, TH_IN + 1, W, 4 * C), jnp.bfloat16),
            ],
        ),
        compiler_params=pltpu.CompilerParams(
            dimension_semantics=("parallel", "parallel"),
            vmem_limit_bytes=vmem_limit),
    )(x_pad, x_pad, w4, b2d)

    # (N,H,2,W,2C) already has depth-to-space ordering: a free reshape to NHWC and the
    # single NHWC->NCHW transpose that any channel-first caller needs anyway.
    out = out5.reshape(N, 2 * H, 2 * W, C)
    return jnp.transpose(out, (0, 3, 1, 2))


if __name__ == "__main__":
    key = jax.random.PRNGKey(0)
    kx, kw, kb = jax.random.split(key, 3)

    N, C, H, W = 2, 4, 16, 16
    x = jax.random.normal(kx, (N, C, H, W), jnp.float32)
    # deterministic synthetic parameters (Conv2d(channels, channels, 3, 3))
    weight = jax.random.normal(kw, (C, C, 3, 3), jnp.float32) * 0.1
    bias = jax.random.normal(kb, (C,), jnp.float32) * 0.1

    fwd = jax.jit(upsample_forward)
    out = jax.block_until_ready(fwd(x, weight, bias))
    assert out.shape == (N, C, 2 * H, 2 * W), out.shape

    # Pure-JAX f32 reference (same semantics as the PyTorch module's forward).
    x_nhwc = jnp.transpose(x, (0, 2, 3, 1))
    x_up = jnp.repeat(jnp.repeat(x_nhwc, 2, axis=1), 2, axis=2)
    ref_nhwc = jax.lax.conv_general_dilated(
        x_up, jnp.transpose(weight, (2, 3, 1, 0)),
        window_strides=(1, 1), padding=((1, 1), (1, 1)),
        dimension_numbers=("NHWC", "HWIO", "NHWC")) + bias.reshape(1, 1, 1, C)
    ref = jnp.transpose(ref_nhwc, (0, 3, 1, 2))

    # bf16 MXU operands (f32 accumulation) => slightly looser tolerance.
    assert jnp.allclose(out, ref, atol=3e-2, rtol=3e-2), \
        float(jnp.max(jnp.abs(out - ref)))
    print("KERNEL_OK")
</pallas_src>

<mosaic_0001>
module attributes {stable_mosaic.version = 11 : i64} {
  func.func @_upsample_conv_kernel(%arg0: i32, %arg1: i32, %arg2: memref<1x16x18x4xbf16, #tpu.memory_space<vmem>>, %arg3: memref<1x2x18x4xbf16, #tpu.memory_space<vmem>>, %arg4: memref<4x16x4xbf16, #tpu.memory_space<vmem>>, %arg5: memref<1x4xf32, #tpu.memory_space<vmem>>, %arg6: memref<1x16x2x16x8xf32, #tpu.memory_space<vmem>>, %arg7: memref<2x17x16x16xbf16, #tpu.memory_space<vmem>>) attributes {dimension_semantics = [#tpu.dimension_semantics<parallel>, #tpu.dimension_semantics<parallel>], iteration_bounds = array<i64: 2, 1>, scalar_prefetch = 0 : i64, scratch_operands = 1 : i64, tpu.core_type = #tpu.core_type<tc>, window_params = [{transform_indices = @transform_0, window_bounds = array<i64: 1, 16, 18, 4>}, {transform_indices = @transform_1, window_bounds = array<i64: 1, 2, 18, 4>}, {pipeline_mode = #tpu.pipeline_mode<synchronous>, transform_indices = @transform_2, window_bounds = array<i64: 4, 16, 4>}, {pipeline_mode = #tpu.pipeline_mode<synchronous>, transform_indices = @transform_3, window_bounds = array<i64: 1, 4>}, {transform_indices = @transform_4, window_bounds = array<i64: 1, 16, 2, 16, 8>}]} {
    %c0 = arith.constant 0 : index
    %c0_0 = arith.constant 0 : index
    %c0_1 = arith.constant 0 : index
    %c0_2 = arith.constant 0 : index
    %0 = vector.load %arg2[%c0, %c0_0, %c0_1, %c0_2] : memref<1x16x18x4xbf16, #tpu.memory_space<vmem>>, vector<1x16x16x4xbf16>
    %1 = vector.shape_cast %0 : vector<1x16x16x4xbf16> to vector<16x16x4xbf16>
    %c0_3 = arith.constant 0 : index
    %c0_4 = arith.constant 0 : index
    %c0_5 = arith.constant 0 : index
    %c0_6 = arith.constant 0 : index
    %2 = vector.load %arg7[%c0_3, %c0_4, %c0_5, %c0_6] : memref<2x17x16x16xbf16, #tpu.memory_space<vmem>>, vector<1x16x16x4xbf16>
    %3 = vector.shape_cast %2 : vector<1x16x16x4xbf16> to vector<16x16x4xbf16>
    %4 = vector.shape_cast %1 : vector<16x16x4xbf16> to vector<1x16x16x4xbf16>
    tpu.vector_store %arg7[%c0_3, %c0_4, %c0_5, %c0_6], %4 {strides = array<i32>} : memref<2x17x16x16xbf16, #tpu.memory_space<vmem>>, vector<1x16x16x4xbf16>,
    %c0_7 = arith.constant 0 : index
    %c0_8 = arith.constant 0 : index
    %c0_9 = arith.constant 0 : index
    %c0_10 = arith.constant 0 : index
    %5 = vector.load %arg3[%c0_7, %c0_8, %c0_9, %c0_10] : memref<1x2x18x4xbf16, #tpu.memory_space<vmem>>, vector<1x1x16x4xbf16>
    %6 = vector.shape_cast %5 : vector<1x1x16x4xbf16> to vector<1x16x4xbf16>
    %c0_11 = arith.constant 0 : index
    %c16 = arith.constant 16 : index
    %c0_12 = arith.constant 0 : index
    %c0_13 = arith.constant 0 : index
    %7 = vector.load %arg7[%c0_11, %c16, %c0_12, %c0_13] : memref<2x17x16x16xbf16, #tpu.memory_space<vmem>>, vector<1x1x16x4xbf16>
    %8 = vector.shape_cast %7 : vector<1x1x16x4xbf16> to vector<1x16x4xbf16>
    %9 = vector.shape_cast %6 : vector<1x16x4xbf16> to vector<1x1x16x4xbf16>
    tpu.vector_store %arg7[%c0_11, %c16, %c0_12, %c0_13], %9 {strides = array<i32>} : memref<2x17x16x16xbf16, #tpu.memory_space<vmem>>, vector<1x1x16x4xbf16>,
    %c0_14 = arith.constant 0 : index
    %c0_15 = arith.constant 0 : index
    %c1 = arith.constant 1 : index
    %c0_16 = arith.constant 0 : index
    %10 = vector.load %arg2[%c0_14, %c0_15, %c1, %c0_16] : memref<1x16x18x4xbf16, #tpu.memory_space<vmem>>, vector<1x16x16x4xbf16>
    %11 = vector.shape_cast %10 : vector<1x16x16x4xbf16> to vector<16x16x4xbf16>
    %c0_17 = arith.constant 0 : index
    %c0_18 = arith.constant 0 : index
    %c0_19 = arith.constant 0 : index
    %c4 = arith.constant 4 : index
    %12 = vector.load %arg7[%c0_17, %c0_18, %c0_19, %c4] : memref<2x17x16x16xbf16, #tpu.memory_space<vmem>>, vector<1x16x16x4xbf16>
    %13 = vector.shape_cast %12 : vector<1x16x16x4xbf16> to vector<16x16x4xbf16>
    %14 = vector.shape_cast %11 : vector<16x16x4xbf16> to vector<1x16x16x4xbf16>
    tpu.vector_store %arg7[%c0_17, %c0_18, %c0_19, %c4], %14 {strides = array<i32>} : memref<2x17x16x16xbf16, #tpu.memory_space<vmem>>, vector<1x16x16x4xbf16>,
    %c0_20 = arith.constant 0 : index
    %c0_21 = arith.constant 0 : index
    %c1_22 = arith.constant 1 : index
    %c0_23 = arith.constant 0 : index
    %15 = vector.load %arg3[%c0_20, %c0_21, %c1_22, %c0_23] : memref<1x2x18x4xbf16, #tpu.memory_space<vmem>>, vector<1x1x16x4xbf16>
    %16 = vector.shape_cast %15 : vector<1x1x16x4xbf16> to vector<1x16x4xbf16>
    %c0_24 = arith.constant 0 : index
    %c16_25 = arith.constant 16 : index
    %c0_26 = arith.constant 0 : index
    %c4_27 = arith.constant 4 : index
    %17 = vector.load %arg7[%c0_24, %c16_25, %c0_26, %c4_27] : memref<2x17x16x16xbf16, #tpu.memory_space<vmem>>, vector<1x1x16x4xbf16>
    %18 = vector.shape_cast %17 : vector<1x1x16x4xbf16> to vector<1x16x4xbf16>
    %19 = vector.shape_cast %16 : vector<1x16x4xbf16> to vector<1x1x16x4xbf16>
    tpu.vector_store %arg7[%c0_24, %c16_25, %c0_26, %c4_27], %19 {strides = array<i32>} : memref<2x17x16x16xbf16, #tpu.memory_space<vmem>>, vector<1x1x16x4xbf16>,
    %c0_28 = arith.constant 0 : index
    %c1_29 = arith.constant 1 : index
    %c0_30 = arith.constant 0 : index
    %c0_31 = arith.constant 0 : index
    %20 = vector.load %arg2[%c0_28, %c1_29, %c0_30, %c0_31] : memref<1x16x18x4xbf16, #tpu.memory_space<vmem>>, vector<1x15x16x4xbf16>
    %21 = vector.shape_cast %20 : vector<1x15x16x4xbf16> to vector<15x16x4xbf16>
    %c0_32 = arith.constant 0 : index
    %c0_33 = arith.constant 0 : index
    %c0_34 = arith.constant 0 : index
    %c8 = arith.constant 8 : index
    %22 = vector.load %arg7[%c0_32, %c0_33, %c0_34, %c8] : memref<2x17x16x16xbf16, #tpu.memory_space<vmem>>, vector<1x15x16x4xbf16>
    %23 = vector.shape_cast %22 : vector<1x15x16x4xbf16> to vector<15x16x4xbf16>
    %24 = vector.shape_cast %21 : vector<15x16x4xbf16> to vector<1x15x16x4xbf16>
    tpu.vector_store %arg7[%c0_32, %c0_33, %c0_34, %c8], %24 {strides = array<i32>} : memref<2x17x16x16xbf16, #tpu.memory_space<vmem>>, vector<1x15x16x4xbf16>,
    %c0_35 = arith.constant 0 : index
    %c0_36 = arith.constant 0 : index
    %c0_37 = arith.constant 0 : index
    %c0_38 = arith.constant 0 : index
    %25 = vector.load %arg3[%c0_35, %c0_36, %c0_37, %c0_38] : memref<1x2x18x4xbf16, #tpu.memory_space<vmem>>, vector<1x2x16x4xbf16>
    %26 = vector.shape_cast %25 : vector<1x2x16x4xbf16> to vector<2x16x4xbf16>
    %c0_39 = arith.constant 0 : index
    %c15 = arith.constant 15 : index
    %c0_40 = arith.constant 0 : index
    %c8_41 = arith.constant 8 : index
    %27 = vector.load %arg7[%c0_39, %c15, %c0_40, %c8_41] : memref<2x17x16x16xbf16, #tpu.memory_space<vmem>>, vector<1x2x16x4xbf16>
    %28 = vector.shape_cast %27 : vector<1x2x16x4xbf16> to vector<2x16x4xbf16>
    %29 = vector.shape_cast %26 : vector<2x16x4xbf16> to vector<1x2x16x4xbf16>
    tpu.vector_store %arg7[%c0_39, %c15, %c0_40, %c8_41], %29 {strides = array<i32>} : memref<2x17x16x16xbf16, #tpu.memory_space<vmem>>, vector<1x2x16x4xbf16>,
    %c0_42 = arith.constant 0 : index
    %c1_43 = arith.constant 1 : index
    %c1_44 = arith.constant 1 : index
    %c0_45 = arith.constant 0 : index
    %30 = vector.load %arg2[%c0_42, %c1_43, %c1_44, %c0_45] : memref<1x16x18x4xbf16, #tpu.memory_space<vmem>>, vector<1x15x16x4xbf16>
    %31 = vector.shape_cast %30 : vector<1x15x16x4xbf16> to vector<15x16x4xbf16>
    %c0_46 = arith.constant 0 : index
    %c0_47 = arith.constant 0 : index
    %c0_48 = arith.constant 0 : index
    %c12 = arith.constant 12 : index
    %32 = vector.load %arg7[%c0_46, %c0_47, %c0_48, %c12] : memref<2x17x16x16xbf16, #tpu.memory_space<vmem>>, vector<1x15x16x4xbf16>
    %33 = vector.shape_cast %32 : vector<1x15x16x4xbf16> to vector<15x16x4xbf16>
    %34 = vector.shape_cast %31 : vector<15x16x4xbf16> to vector<1x15x16x4xbf16>
    tpu.vector_store %arg7[%c0_46, %c0_47, %c0_48, %c12], %34 {strides = array<i32>} : memref<2x17x16x16xbf16, #tpu.memory_space<vmem>>, vector<1x15x16x4xbf16>,
    %c0_49 = arith.constant 0 : index
    %c0_50 = arith.constant 0 : index
    %c1_51 = arith.constant 1 : index
    %c0_52 = arith.constant 0 : index
    %35 = vector.load %arg3[%c0_49, %c0_50, %c1_51, %c0_52] : memref<1x2x18x4xbf16, #tpu.memory_space<vmem>>, vector<1x2x16x4xbf16>
    %36 = vector.shape_cast %35 : vector<1x2x16x4xbf16> to vector<2x16x4xbf16>
    %c0_53 = arith.constant 0 : index
    %c15_54 = arith.constant 15 : index
    %c0_55 = arith.constant 0 : index
    %c12_56 = arith.constant 12 : index
    %37 = vector.load %arg7[%c0_53, %c15_54, %c0_55, %c12_56] : memref<2x17x16x16xbf16, #tpu.memory_space<vmem>>, vector<1x2x16x4xbf16>
    %38 = vector.shape_cast %37 : vector<1x2x16x4xbf16> to vector<2x16x4xbf16>
    %39 = vector.shape_cast %36 : vector<2x16x4xbf16> to vector<1x2x16x4xbf16>
    tpu.vector_store %arg7[%c0_53, %c15_54, %c0_55, %c12_56], %39 {strides = array<i32>} : memref<2x17x16x16xbf16, #tpu.memory_space<vmem>>, vector<1x2x16x4xbf16>,
    %c0_57 = arith.constant 0 : index
    %c0_58 = arith.constant 0 : index
    %c1_59 = arith.constant 1 : index
    %c0_60 = arith.constant 0 : index
    %40 = vector.load %arg2[%c0_57, %c0_58, %c1_59, %c0_60] : memref<1x16x18x4xbf16, #tpu.memory_space<vmem>>, vector<1x16x16x4xbf16>
    %41 = vector.shape_cast %40 : vector<1x16x16x4xbf16> to vector<16x16x4xbf16>
    %c1_61 = arith.constant 1 : index
    %c0_62 = arith.constant 0 : index
    %c0_63 = arith.constant 0 : index
    %c0_64 = arith.constant 0 : index
    %42 = vector.load %arg7[%c1_61, %c0_62, %c0_63, %c0_64] : memref<2x17x16x16xbf16, #tpu.memory_space<vmem>>, vector<1x16x16x4xbf16>
    %43 = vector.shape_cast %42 : vector<1x16x16x4xbf16> to vector<16x16x4xbf16>
    %44 = vector.shape_cast %41 : vector<16x16x4xbf16> to vector<1x16x16x4xbf16>
    tpu.vector_store %arg7[%c1_61, %c0_62, %c0_63, %c0_64], %44 {strides = array<i32>} : memref<2x17x16x16xbf16, #tpu.memory_space<vmem>>, vector<1x16x16x4xbf16>,
    %c0_65 = arith.constant 0 : index
    %c0_66 = arith.constant 0 : index
    %c1_67 = arith.constant 1 : index
    %c0_68 = arith.constant 0 : index
    %45 = vector.load %arg3[%c0_65, %c0_66, %c1_67, %c0_68] : memref<1x2x18x4xbf16, #tpu.memory_space<vmem>>, vector<1x1x16x4xbf16>
    %46 = vector.shape_cast %45 : vector<1x1x16x4xbf16> to vector<1x16x4xbf16>
    %c1_69 = arith.constant 1 : index
    %c16_70 = arith.constant 16 : index
    %c0_71 = arith.constant 0 : index
    %c0_72 = arith.constant 0 : index
    %47 = vector.load %arg7[%c1_69, %c16_70, %c0_71, %c0_72] : memref<2x17x16x16xbf16, #tpu.memory_space<vmem>>, vector<1x1x16x4xbf16>
    %48 = vector.shape_cast %47 : vector<1x1x16x4xbf16> to vector<1x16x4xbf16>
    %49 = vector.shape_cast %46 : vector<1x16x4xbf16> to vector<1x1x16x4xbf16>
    tpu.vector_store %arg7[%c1_69, %c16_70, %c0_71, %c0_72], %49 {strides = array<i32>} : memref<2x17x16x16xbf16, #tpu.memory_space<vmem>>, vector<1x1x16x4xbf16>,
    %c0_73 = arith.constant 0 : index
    %c0_74 = arith.constant 0 : index
    %c2 = arith.constant 2 : index
    %c0_75 = arith.constant 0 : index
    %50 = vector.load %arg2[%c0_73, %c0_74, %c2, %c0_75] : memref<1x16x18x4xbf16, #tpu.memory_space<vmem>>, vector<1x16x16x4xbf16>
    %51 = vector.shape_cast %50 : vector<1x16x16x4xbf16> to vector<16x16x4xbf16>
    %c1_76 = arith.constant 1 : index
    %c0_77 = arith.constant 0 : index
    %c0_78 = arith.constant 0 : index
    %c4_79 = arith.constant 4 : index
    %52 = vector.load %arg7[%c1_76, %c0_77, %c0_78, %c4_79] : memref<2x17x16x16xbf16, #tpu.memory_space<vmem>>, vector<1x16x16x4xbf16>
    %53 = vector.shape_cast %52 : vector<1x16x16x4xbf16> to vector<16x16x4xbf16>
    %54 = vector.shape_cast %51 : vector<16x16x4xbf16> to vector<1x16x16x4xbf16>
    tpu.vector_store %arg7[%c1_76, %c0_77, %c0_78, %c4_79], %54 {strides = array<i32>} : memref<2x17x16x16xbf16, #tpu.memory_space<vmem>>, vector<1x16x16x4xbf16>,
    %c0_80 = arith.constant 0 : index
    %c0_81 = arith.constant 0 : index
    %c2_82 = arith.constant 2 : index
    %c0_83 = arith.constant 0 : index
    %55 = vector.load %arg3[%c0_80, %c0_81, %c2_82, %c0_83] : memref<1x2x18x4xbf16, #tpu.memory_space<vmem>>, vector<1x1x16x4xbf16>
    %56 = vector.shape_cast %55 : vector<1x1x16x4xbf16> to vector<1x16x4xbf16>
    %c1_84 = arith.constant 1 : index
    %c16_85 = arith.constant 16 : index
    %c0_86 = arith.constant 0 : index
    %c4_87 = arith.constant 4 : index
    %57 = vector.load %arg7[%c1_84, %c16_85, %c0_86, %c4_87] : memref<2x17x16x16xbf16, #tpu.memory_space<vmem>>, vector<1x1x16x4xbf16>
    %58 = vector.shape_cast %57 : vector<1x1x16x4xbf16> to vector<1x16x4xbf16>
    %59 = vector.shape_cast %56 : vector<1x16x4xbf16> to vector<1x1x16x4xbf16>
    tpu.vector_store %arg7[%c1_84, %c16_85, %c0_86, %c4_87], %59 {strides = array<i32>} : memref<2x17x16x16xbf16, #tpu.memory_space<vmem>>, vector<1x1x16x4xbf16>,
    %c0_88 = arith.constant 0 : index
    %c1_89 = arith.constant 1 : index
    %c1_90 = arith.constant 1 : index
    %c0_91 = arith.constant 0 : index
    %60 = vector.load %arg2[%c0_88, %c1_89, %c1_90, %c0_91] : memref<1x16x18x4xbf16, #tpu.memory_space<vmem>>, vector<1x15x16x4xbf16>
    %61 = vector.shape_cast %60 : vector<1x15x16x4xbf16> to vector<15x16x4xbf16>
    %c1_92 = arith.constant 1 : index
    %c0_93 = arith.constant 0 : index
    %c0_94 = arith.constant 0 : index
    %c8_95 = arith.constant 8 : index
    %62 = vector.load %arg7[%c1_92, %c0_93, %c0_94, %c8_95] : memref<2x17x16x16xbf16, #tpu.memory_space<vmem>>, vector<1x15x16x4xbf16>
    %63 = vector.shape_cast %62 : vector<1x15x16x4xbf16> to vector<15x16x4xbf16>
    %64 = vector.shape_cast %61 : vector<15x16x4xbf16> to vector<1x15x16x4xbf16>
    tpu.vector_store %arg7[%c1_92, %c0_93, %c0_94, %c8_95], %64 {strides = array<i32>} : memref<2x17x16x16xbf16, #tpu.memory_space<vmem>>, vector<1x15x16x4xbf16>,
    %c0_96 = arith.constant 0 : index
    %c0_97 = arith.constant 0 : index
    %c1_98 = arith.constant 1 : index
    %c0_99 = arith.constant 0 : index
    %65 = vector.load %arg3[%c0_96, %c0_97, %c1_98, %c0_99] : memref<1x2x18x4xbf16, #tpu.memory_space<vmem>>, vector<1x2x16x4xbf16>
    %66 = vector.shape_cast %65 : vector<1x2x16x4xbf16> to vector<2x16x4xbf16>
    %c1_100 = arith.constant 1 : index
    %c15_101 = arith.constant 15 : index
    %c0_102 = arith.constant 0 : index
    %c8_103 = arith.constant 8 : index
    %67 = vector.load %arg7[%c1_100, %c15_101, %c0_102, %c8_103] : memref<2x17x16x16xbf16, #tpu.memory_space<vmem>>, vector<1x2x16x4xbf16>
    %68 = vector.shape_cast %67 : vector<1x2x16x4xbf16> to vector<2x16x4xbf16>
    %69 = vector.shape_cast %66 : vector<2x16x4xbf16> to vector<1x2x16x4xbf16>
    tpu.vector_store %arg7[%c1_100, %c15_101, %c0_102, %c8_103], %69 {strides = array<i32>} : memref<2x17x16x16xbf16, #tpu.memory_space<vmem>>, vector<1x2x16x4xbf16>,
    %c0_104 = arith.constant 0 : index
    %c1_105 = arith.constant 1 : index
    %c2_106 = arith.constant 2 : index
    %c0_107 = arith.constant 0 : index
    %70 = vector.load %arg2[%c0_104, %c1_105, %c2_106, %c0_107] : memref<1x16x18x4xbf16, #tpu.memory_space<vmem>>, vector<1x15x16x4xbf16>
    %71 = vector.shape_cast %70 : vector<1x15x16x4xbf16> to vector<15x16x4xbf16>
    %c1_108 = arith.constant 1 : index
    %c0_109 = arith.constant 0 : index
    %c0_110 = arith.constant 0 : index
    %c12_111 = arith.constant 12 : index
    %72 = vector.load %arg7[%c1_108, %c0_109, %c0_110, %c12_111] : memref<2x17x16x16xbf16, #tpu.memory_space<vmem>>, vector<1x15x16x4xbf16>
    %73 = vector.shape_cast %72 : vector<1x15x16x4xbf16> to vector<15x16x4xbf16>
    %74 = vector.shape_cast %71 : vector<15x16x4xbf16> to vector<1x15x16x4xbf16>
    tpu.vector_store %arg7[%c1_108, %c0_109, %c0_110, %c12_111], %74 {strides = array<i32>} : memref<2x17x16x16xbf16, #tpu.memory_space<vmem>>, vector<1x15x16x4xbf16>,
    %c0_112 = arith.constant 0 : index
    %c0_113 = arith.constant 0 : index
    %c2_114 = arith.constant 2 : index
    %c0_115 = arith.constant 0 : index
    %75 = vector.load %arg3[%c0_112, %c0_113, %c2_114, %c0_115] : memref<1x2x18x4xbf16, #tpu.memory_space<vmem>>, vector<1x2x16x4xbf16>
    %76 = vector.shape_cast %75 : vector<1x2x16x4xbf16> to vector<2x16x4xbf16>
    %c1_116 = arith.constant 1 : index
    %c15_117 = arith.constant 15 : index
    %c0_118 = arith.constant 0 : index
    %c12_119 = arith.constant 12 : index
    %77 = vector.load %arg7[%c1_116, %c15_117, %c0_118, %c12_119] : memref<2x17x16x16xbf16, #tpu.memory_space<vmem>>, vector<1x2x16x4xbf16>
    %78 = vector.shape_cast %77 : vector<1x2x16x4xbf16> to vector<2x16x4xbf16>
    %79 = vector.shape_cast %76 : vector<2x16x4xbf16> to vector<1x2x16x4xbf16>
    tpu.vector_store %arg7[%c1_116, %c15_117, %c0_118, %c12_119], %79 {strides = array<i32>} : memref<2x17x16x16xbf16, #tpu.memory_space<vmem>>, vector<1x2x16x4xbf16>,
    %c0_120 = arith.constant 0 : index
    %c0_121 = arith.constant 0 : index
    %80 = vector.load %arg5[%c0_120, %c0_121] : memref<1x4xf32, #tpu.memory_space<vmem>>, vector<1x4xf32>
    %c0_122 = arith.constant 0 : index
    %c0_123 = arith.constant 0 : index
    %c0_124 = arith.constant 0 : index
    %c0_125 = arith.constant 0 : index
    %81 = vector.load %arg7[%c0_122, %c0_123, %c0_124, %c0_125] : memref<2x17x16x16xbf16, #tpu.memory_space<vmem>>, vector<1x16x16x16xbf16>
    %82 = vector.shape_cast %81 : vector<1x16x16x16xbf16> to vector<16x16x16xbf16>
    %83 = vector.shape_cast %82 : vector<16x16x16xbf16> to vector<256x16xbf16>
    %c0_126 = arith.constant 0 : index
    %c0_127 = arith.constant 0 : index
    %c0_128 = arith.constant 0 : index
    %84 = vector.load %arg4[%c0_126, %c0_127, %c0_128] : memref<4x16x4xbf16, #tpu.memory_space<vmem>>, vector<1x16x4xbf16>
    %85 = vector.shape_cast %84 : vector<1x16x4xbf16> to vector<16x4xbf16>
    %cst = arith.constant dense<0.000000e+00> : vector<256x4xf32>
    %86 = tpu.matmul %83, %85, %cst {dimension_numbers = #tpu.dot_dimension_numbers<[1], [0], [0], [1], [0, 0, 1, 1], [], []>} : vector<256x16xbf16>, vector<16x4xbf16>, vector<256x4xf32> -> vector<256x4xf32>
    %87 = vector.broadcast %80 : vector<1x4xf32> to vector<256x4xf32>
    %88 = arith.addf %86, %87 : vector<256x4xf32>
    %89 = vector.shape_cast %88 : vector<256x4xf32> to vector<16x16x4xf32>
    %c0_129 = arith.constant 0 : index
    %c0_130 = arith.constant 0 : index
    %c0_131 = arith.constant 0 : index
    %c0_132 = arith.constant 0 : index
    %c0_133 = arith.constant 0 : index
    %90 = vector.load %arg6[%c0_129, %c0_130, %c0_131, %c0_132, %c0_133] : memref<1x16x2x16x8xf32, #tpu.memory_space<vmem>>, vector<1x16x1x16x4xf32>
    %91 = vector.shape_cast %90 : vector<1x16x1x16x4xf32> to vector<16x16x4xf32>
    %92 = vector.shape_cast %89 : vector<16x16x4xf32> to vector<1x16x1x16x4xf32>
    tpu.vector_store %arg6[%c0_129, %c0_130, %c0_131, %c0_132, %c0_133], %92 {strides = array<i32>} : memref<1x16x2x16x8xf32, #tpu.memory_space<vmem>>, vector<1x16x1x16x4xf32>,
    %c1_134 = arith.constant 1 : index
    %c0_135 = arith.constant 0 : index
    %c0_136 = arith.constant 0 : index
    %c0_137 = arith.constant 0 : index
    %93 = vector.load %arg7[%c1_134, %c0_135, %c0_136, %c0_137] : memref<2x17x16x16xbf16, #tpu.memory_space<vmem>>, vector<1x16x16x16xbf16>
    %94 = vector.shape_cast %93 : vector<1x16x16x16xbf16> to vector<16x16x16xbf16>
    %95 = vector.shape_cast %94 : vector<16x16x16xbf16> to vector<256x16xbf16>
    %c1_138 = arith.constant 1 : index
    %c0_139 = arith.constant 0 : index
    %c0_140 = arith.constant 0 : index
    %96 = vector.load %arg4[%c1_138, %c0_139, %c0_140] : memref<4x16x4xbf16, #tpu.memory_space<vmem>>, vector<1x16x4xbf16>
    %97 = vector.shape_cast %96 : vector<1x16x4xbf16> to vector<16x4xbf16>
    %cst_141 = arith.constant dense<0.000000e+00> : vector<256x4xf32>
    %98 = tpu.matmul %95, %97, %cst_141 {dimension_numbers = #tpu.dot_dimension_numbers<[1], [0], [0], [1], [0, 0, 1, 1], [], []>} : vector<256x16xbf16>, vector<16x4xbf16>, vector<256x4xf32> -> vector<256x4xf32>
    %99 = vector.broadcast %80 : vector<1x4xf32> to vector<256x4xf32>
    %100 = arith.addf %98, %99 : vector<256x4xf32>
    %101 = vector.shape_cast %100 : vector<256x4xf32> to vector<16x16x4xf32>
    %c0_142 = arith.constant 0 : index
    %c0_143 = arith.constant 0 : index
    %c0_144 = arith.constant 0 : index
    %c0_145 = arith.constant 0 : index
    %c4_146 = arith.constant 4 : index
    %102 = vector.load %arg6[%c0_142, %c0_143, %c0_144, %c0_145, %c4_146] : memref<1x16x2x16x8xf32, #tpu.memory_space<vmem>>, vector<1x16x1x16x4xf32>
    %103 = vector.shape_cast %102 : vector<1x16x1x16x4xf32> to vector<16x16x4xf32>
    %104 = vector.shape_cast %101 : vector<16x16x4xf32> to vector<1x16x1x16x4xf32>
    tpu.vector_store %arg6[%c0_142, %c0_143, %c0_144, %c0_145, %c4_146], %104 {strides = array<i32>} : memref<1x16x2x16x8xf32, #tpu.memory_space<vmem>>, vector<1x16x1x16x4xf32>,
    %c0_147 = arith.constant 0 : index
    %c1_148 = arith.constant 1 : index
    %c0_149 = arith.constant 0 : index
    %c0_150 = arith.constant 0 : index
    %105 = vector.load %arg7[%c0_147, %c1_148, %c0_149, %c0_150] : memref<2x17x16x16xbf16, #tpu.memory_space<vmem>>, vector<1x16x16x16xbf16>
    %106 = vector.shape_cast %105 : vector<1x16x16x16xbf16> to vector<16x16x16xbf16>
    %107 = vector.shape_cast %106 : vector<16x16x16xbf16> to vector<256x16xbf16>
    %c2_151 = arith.constant 2 : index
    %c0_152 = arith.constant 0 : index
    %c0_153 = arith.constant 0 : index
    %108 = vector.load %arg4[%c2_151, %c0_152, %c0_153] : memref<4x16x4xbf16, #tpu.memory_space<vmem>>, vector<1x16x4xbf16>
    %109 = vector.shape_cast %108 : vector<1x16x4xbf16> to vector<16x4xbf16>
    %cst_154 = arith.constant dense<0.000000e+00> : vector<256x4xf32>
    %110 = tpu.matmul %107, %109, %cst_154 {dimension_numbers = #tpu.dot_dimension_numbers<[1], [0], [0], [1], [0, 0, 1, 1], [], []>} : vector<256x16xbf16>, vector<16x4xbf16>, vector<256x4xf32> -> vector<256x4xf32>
    %111 = vector.broadcast %80 : vector<1x4xf32> to vector<256x4xf32>
    %112 = arith.addf %110, %111 : vector<256x4xf32>
    %113 = vector.shape_cast %112 : vector<256x4xf32> to vector<16x16x4xf32>
    %c0_155 = arith.constant 0 : index
    %c0_156 = arith.constant 0 : index
    %c1_157 = arith.constant 1 : index
    %c0_158 = arith.constant 0 : index
    %c0_159 = arith.constant 0 : index
    %114 = vector.load %arg6[%c0_155, %c0_156, %c1_157, %c0_158, %c0_159] : memref<1x16x2x16x8xf32, #tpu.memory_space<vmem>>, vector<1x16x1x16x4xf32>
    %115 = vector.shape_cast %114 : vector<1x16x1x16x4xf32> to vector<16x16x4xf32>
    %116 = vector.shape_cast %113 : vector<16x16x4xf32> to vector<1x16x1x16x4xf32>
    tpu.vector_store %arg6[%c0_155, %c0_156, %c1_157, %c0_158, %c0_159], %116 {strides = array<i32>} : memref<1x16x2x16x8xf32, #tpu.memory_space<vmem>>, vector<1x16x1x16x4xf32>,
    %c1_160 = arith.constant 1 : index
    %c1_161 = arith.constant 1 : index
    %c0_162 = arith.constant 0 : index
    %c0_163 = arith.constant 0 : index
    %117 = vector.load %arg7[%c1_160, %c1_161, %c0_162, %c0_163] : memref<2x17x16x16xbf16, #tpu.memory_space<vmem>>, vector<1x16x16x16xbf16>
    %118 = vector.shape_cast %117 : vector<1x16x16x16xbf16> to vector<16x16x16xbf16>
    %119 = vector.shape_cast %118 : vector<16x16x16xbf16> to vector<256x16xbf16>
    %c3 = arith.constant 3 : index
    %c0_164 = arith.constant 0 : index
    %c0_165 = arith.constant 0 : index
    %120 = vector.load %arg4[%c3, %c0_164, %c0_165] : memref<4x16x4xbf16, #tpu.memory_space<vmem>>, vector<1x16x4xbf16>
    %121 = vector.shape_cast %120 : vector<1x16x4xbf16> to vector<16x4xbf16>
    %cst_166 = arith.constant dense<0.000000e+00> : vector<256x4xf32>
    %122 = tpu.matmul %119, %121, %cst_166 {dimension_numbers = #tpu.dot_dimension_numbers<[1], [0], [0], [1], [0, 0, 1, 1], [], []>} : vector<256x16xbf16>, vector<16x4xbf16>, vector<256x4xf32> -> vector<256x4xf32>
    %123 = vector.broadcast %80 : vector<1x4xf32> to vector<256x4xf32>
    %124 = arith.addf %122, %123 : vector<256x4xf32>
    %125 = vector.shape_cast %124 : vector<256x4xf32> to vector<16x16x4xf32>
    %c0_167 = arith.constant 0 : index
    %c0_168 = arith.constant 0 : index
    %c1_169 = arith.constant 1 : index
    %c0_170 = arith.constant 0 : index
    %c4_171 = arith.constant 4 : index
    %126 = vector.load %arg6[%c0_167, %c0_168, %c1_169, %c0_170, %c4_171] : memref<1x16x2x16x8xf32, #tpu.memory_space<vmem>>, vector<1x16x1x16x4xf32>
    %127 = vector.shape_cast %126 : vector<1x16x1x16x4xf32> to vector<16x16x4xf32>
    %128 = vector.shape_cast %125 : vector<16x16x4xf32> to vector<1x16x1x16x4xf32>
    tpu.vector_store %arg6[%c0_167, %c0_168, %c1_169, %c0_170, %c4_171], %128 {strides = array<i32>} : memref<1x16x2x16x8xf32, #tpu.memory_space<vmem>>, vector<1x16x1x16x4xf32>,
    return
  }
  func.func @transform_0(%arg0: i32, %arg1: i32) -> (i32, i32, i32, i32) {
    %c0_i32 = arith.constant 0 : i32
    %c0_i32_0 = arith.constant 0 : i32
    %c0_i32_1 = arith.constant 0 : i32
    return %arg0, %arg1, %c0_i32, %c0_i32_0 : i32, i32, i32, i32
  }
  func.func @transform_1(%arg0: i32, %arg1: i32) -> (i32, i32, i32, i32) {
    %c1_i32 = arith.constant 1 : i32
    %0 = arith.addi %arg1, %c1_i32 : i32
    %c8_i32 = arith.constant 8 : i32
    %1 = arith.muli %0, %c8_i32 : i32
    %c0_i32 = arith.constant 0 : i32
    %c0_i32_0 = arith.constant 0 : i32
    %c0_i32_1 = arith.constant 0 : i32
    return %arg0, %1, %c0_i32, %c0_i32_0 : i32, i32, i32, i32
  }
  func.func @transform_2(%arg0: i32, %arg1: i32) -> (i32, i32, i32) {
    %c0_i32 = arith.constant 0 : i32
    %c0_i32_0 = arith.constant 0 : i32
    %c0_i32_1 = arith.constant 0 : i32
    %c0_i32_2 = arith.constant 0 : i32
    return %c0_i32, %c0_i32_0, %c0_i32_1 : i32, i32, i32
  }
  func.func @transform_3(%arg0: i32, %arg1: i32) -> (i32, i32) {
    %c0_i32 = arith.constant 0 : i32
    %c0_i32_0 = arith.constant 0 : i32
    %c0_i32_1 = arith.constant 0 : i32
    return %c0_i32, %c0_i32_0 : i32, i32
  }
  func.func @transform_4(%arg0: i32, %arg1: i32) -> (i32, i32, i32, i32, i32) {
    %c0_i32 = arith.constant 0 : i32
    %c0_i32_0 = arith.constant 0 : i32
    %c0_i32_1 = arith.constant 0 : i32
    %c0_i32_2 = arith.constant 0 : i32
    return %arg0, %arg1, %c0_i32, %c0_i32_0, %c0_i32_1 : i32, i32, i32, i32, i32
  }
}

</mosaic_0001>

<bundles_post_ra>
// kernel: upsample_forward.1
= control target key start
LH: loop header
LB: loop body
LE: loop exit
PB: predicated region body
PF: predicated region fallthrough
CT: control target
= control target key end

     0   :  { %s5621_s15 = smov 0   ;;  %s5623_s16 = smov 0   ;;  %s7032_s0 = inlined_call_operand.vmem [shape: bf16[2,18,18,4], index: 0, kind: input, shape index: {}, may-alias: {0,1}]   ;;  %s7033_s1 = inlined_call_operand.vmem [shape: bf16[2,18,18,4], index: 1, kind: input, shape index: {}, may-alias: {0,1}]   ;;  %s7034_s2 = inlined_call_operand.vmem [shape: bf16[4,16,4], index: 2, kind: input, shape index: {}]   ;;  %s7035_s3 = inlined_call_operand.vmem [shape: f32[1,4], index: 3, kind: input, shape index: {}]   ;;  %s7036_s4 = inlined_call_operand.vmem [shape: f32[2,16,2,16,8], index: 4, kind: output, shape index: {}]  }
   0x1   :  { %s5625_s17 = smov 0  }
   0x2 LB: > { %s26_s18 = sadd.s32 1, %s5587_s16  ;;  %p4538_p0 = scmp.ge.s32.totalorder %s5591_s17, 1  ;;  %s5591_s17 = sphi %s5625_s17, %s14_s17   ;;  %s5587_s16 = sphi %s5623_s16, %s7038_s16   ;;  %s5583_s15 = sphi %s5621_s15, %s7037_s15  }
   0x3   : > { %p28_p1 = scmp.ge.s32.totalorder %s26_s18, 2  ;;  %p220_p2 = scmp.lt.s32.totalorder %s5591_s17, 3 }
   0x5   : > { %s7040_s18 = smov (%p28_p1, %s26_s18), 0  ;;  %p221_p3 = pnand %p4538_p0, %p220_p2 }
   0x6   : > { %p279_p4 = scmp.lt.s32.totalorder (!%p221_p3), %s5583_s15, 1  ;;  %vm2190_vm0 = vcmask (!%p221_p3), 1046528   ;;  %vm652_vm1 = vsmask.f32 (!%p221_p3), 7424  ;;  %s5593_s23 = smov (!%p221_p3), 12   ;;  %vm449_vm2 = vcmask (!%p221_p3), 31744  }
   0x7   : > { %224 = sbr.rel (%p221_p3) target bundleno = 686 (0x2ae), region = 36  ;;  %s5594_s24 = smov (!%p221_p3), 4   ;;  %vm893_vm3 = vcmask (!%p221_p3), 64544   ;;  %vm1088_vm4 = vcmask (!%p221_p3), 97344   ;;  %vm1517_vm5 = vcmask (!%p221_p3), 130144   ;;  %vm3118_vm6 = vcmask (!%p221_p3), 130048  }
   0x8   : > { %s5595_s25 = smov (!%p221_p3), 8  }
   0xe   : > { %s7042_s15 = smov (!%p279_p4, %s5583_s15), 1 }
   0xf   : > { %s5294_s19 = smul.u32 216, %s7042_s15  ;;  %s5089_s14 = sshll.u32 %s7042_s15, 9 }
  0x10   : > { %s6628_s21 = scalar_lea.vmem %s7036_s4, %s5089_s14 }
  0x11   : > { %s5647_s22 = scalar_lea.vmem %s7032_s0, %s5294_s19  ;;  %s5809_s26 = sadd.s32 192, %s5294_s19 }
  0x12   : > { %v5324_v0 = vld [vmem:[%s5647_s22 + $0x18] sm:$0xfe]   ;;  %v5325_v1 = vld [vmem:[%s5647_s22 + $0x20] ss:$0 sps:$4 sm:$0x11]   ;;  %v5332_v2 = vld [vmem:[%s5647_s22 + $0xc] sm:$0xff]   ;;  %s5839_s29 = scalar_lea.vmem %s7033_s1, %s5809_s26 }
  0x13   : > { %v2949_v3 = vrot.slane %v5324_v0, 1  ;;  %v2950_v4 = vrot.slane %v5325_v1, 1  ;;  %v5326_v5 = vld [vmem:[%s5647_s22] sm:$0xfe]   ;;  %v2487_v7 = vshrl.u32 %v5332_v2, 16  ;;  %v2489_v11 = vshll.u32 %v5332_v2, 16 }
  0x14   : > { %v5327_v6 = vld [vmem:[%s5647_s22 + $0x8] ss:$0 sps:$4 sm:$0x11]   ;;  %v2191_v9 = vrot.slane %v5326_v5, 1  ;;  %v5330_v18 = vld [vmem:[%s5647_s22 + $0xc] sm:$0xfe]  }
  0x15   : > { %v2951_v8 = vsel %vm2190_vm0, %v2949_v3, %v2950_v4  ;;  %v5328_v10 = vld [vmem:[%s5647_s22 + $0x24] sm:$0xfe]   ;;  %v2192_v12 = vrot.slane %v5327_v6, 1  ;;  %v5329_v13 = vld [vmem:[%s5647_s22 + $0x2c] ss:$0 sps:$4 sm:$0x11]  }
  0x16   : > { %2993 = vrot.lane.b32.xlu1 %v2951_v8, %s5593_s23  ;;  %v2200_v14 = vrot.slane %v5328_v10, 1  ;;  %v2491_v15 = vrot.slane %v2489_v11, 1  ;;  %v2201_v17 = vrot.slane %v5329_v13, 1  ;;  %v5331_v19 = vld [vmem:[%s5647_s22 + $0x14] ss:$0 sps:$4 sm:$0x11]  }
  0x17   : > { %v2193_v16 = vsel %vm2190_vm0, %v2191_v9, %v2192_v12  ;;  %v2194_v21 = vrot.slane %v5330_v18, 1  ;;  %v2195_v22 = vrot.slane %v5331_v19, 1  ;;  %v5333_v23 = vld [vmem:[%s5647_s22 + $0x14] ss:$0 sps:$4 sm:$0x11]   ;;  %v5336_v24 = vld [vmem:[%s5647_s22 + $0x18] sm:$0xff]  }
  0x18   : > { %2239 = vrot.lane.b32.xlu0 %v2193_v16, %s5594_s24  ;;  %v2202_v20 = vsel %vm2190_vm0, %v2200_v14, %v2201_v17  ;;  %v2492_v26 = vor.u32 %v2491_v15, %v2487_v7  ;;  %v2494_v27 = vshll.u32 %v5333_v23, 16  ;;  %v5334_v28 = vld [vmem:[%s5647_s22 + $0xc] sm:$0xfe]   ;;  %v5335_v29 = vld [vmem:[%s5647_s22 + $0x14] ss:$0 sps:$4 sm:$0x11]  }
  0x19   : > { %v2196_v25 = vsel %vm2190_vm0, %v2194_v21, %v2195_v22  ;;  %v2946_v31 = vrot.slane %v5334_v28, 1  ;;  %v2947_v32 = vrot.slane %v5335_v29, 1  ;;  %v5337_v33 = vld [vmem:[%s5647_s22 + $0x20] ss:$0 sps:$4 sm:$0x11]   ;;  %v2499_v34 = vshrl.u32 %v5336_v24, 16 }
  0x1a   : > { %2245 = vrot.lane.b32.xlu1 %v2202_v20, %s5594_s24  ;;  %v2496_v30 = vrot.slane %v2494_v27, 1  ;;  %v2501_v35 = vshll.u32 %v5336_v24, 16  ;;  %v2506_v38 = vshll.u32 %v5337_v33, 16  ;;  %v5338_v39 = vld [vmem:[%s5647_s22 + $0x18] sm:$0xfe]   ;;  %v5340_v40 = vld [vmem:[%s5647_s22 + $0x30] sm:$0xff]  }
  0x1b   : > { %v2948_v37 = vsel %vm2190_vm0, %v2946_v31, %v2947_v32  ;;  %v5339_v42 = vld [vmem:[%s5647_s22 + $0x20] ss:$0 sps:$4 sm:$0x11]   ;;  %v2197_v44 = vrot.slane %v5338_v39, 1  ;;  %v2523_v48 = vshrl.u32 %v5340_v40, 16  ;;  %v2525_v49 = vshll.u32 %v5340_v40, 16 }
  0x1c   : > { %2241 = vrot.lane.b32.xlu0 %v2196_v25, %s5594_s24  ;;  %v2497_v36 = vsel %vm652_vm1, %v2492_v26, %v2496_v30  ;;  %v2503_v41 = vrot.slane %v2501_v35, 1  ;;  %v2508_v43 = vrot.slane %v2506_v38, 1  ;;  %v2198_v46 = vrot.slane %v5339_v42, 1  ;;  %v5341_v47 = vld [vmem:[%s5647_s22 + $0x38] ss:$0 sps:$4 sm:$0x11]  }
  0x1d   : > { %v2527_v52 = vrot.slane %v2525_v49, 1  ;;  %v2530_v53 = vshll.u32 %v5341_v47, 16  ;;  %v5342_v54 = vld [vmem:[%s5647_s22 + $0x24] sm:$0xff]   ;;  %v5343_v55 = vld [vmem:[%s5647_s22 + $0x2c] ss:$0 sps:$4 sm:$0x11]  }
  0x1e   : > { %2666 = vrot.lane.b32.xlu1 %v2497_v36, %s5595_s25  ;;  %v2504_v45 = vor.u32 %v2503_v41, %v2499_v34  ;;  %v2199_v51 = vsel %vm2190_vm0, %v2197_v44, %v2198_v46  ;;  %v2511_v58 = vshrl.u32 %v5342_v54, 16  ;;  %v2513_v59 = vshll.u32 %v5342_v54, 16  ;;  %v5352_v60 = vld [vmem:[%s5647_s22 + $0x48] sm:$0xff]   ;;  %v5344_v62 = vld [vmem:[%s5647_s22 + $0x30] sm:$0xfe]   ;;  %v5354_v10 = vld [vmem:[%s5647_s22 + $0x3c] sm:$0xff]  }
  0x1f   : > { %v2528_v56 = vor.u32 %v2527_v52, %v2523_v48  ;;  %v2532_v57 = vrot.slane %v2530_v53, 1  ;;  %v2518_v61 = vshll.u32 %v5343_v55, 16  ;;  %v5345_v63 = vld [vmem:[%s5647_s22 + $0x38] ss:$0 sps:$4 sm:$0x11]   ;;  %v2547_v2 = vshrl.u32 %v5352_v60, 16 }
  0x20   : > { %2991 = vrot.lane.b32.xlu0 %v2948_v37, %s5593_s23  ;;  %v2509_v50 = vsel %vm652_vm1, %v2504_v45, %v2508_v43  ;;  %v2515_v1 = vrot.slane %v2513_v59, 1  ;;  %v2955_v4 = vrot.slane %v5344_v62, 1  ;;  %v2956_v5 = vrot.slane %v5345_v63, 1  ;;  %v5346_v8 = vld [vmem:[%s5647_s22 + $0x24] sm:$0xfe]   ;;  %v5366_v52 = vld [vmem:[%s5647_s22 + $0x54] sm:$0xff]  }
  0x21   : > { %v2533_v0 = vsel %vm652_vm1, %v2528_v56, %v2532_v57  ;;  %v2520_v3 = vrot.slane %v2518_v61, 1  ;;  %v2549_v6 = vshll.u32 %v5352_v60, 16  ;;  %v5347_v9 = vld [vmem:[%s5647_s22 + $0x2c] ss:$0 sps:$4 sm:$0x11]   ;;  %v2952_v13 = vrot.slane %v5346_v8, 1 }
  0x22   : > { %2668 = vrot.lane.b32.xlu1 %v2509_v50, %s5595_s25  ;;  %v2516_v7 = vor.u32 %v2515_v1, %v2511_v58  ;;  %v2957_v11 = vsel %vm2190_vm0, %v2955_v4, %v2956_v5  ;;  %v2953_v14 = vrot.slane %v5347_v9, 1  ;;  %v5348_v15 = vld [vmem:[%s5647_s22 + $0x3c] sm:$0xfe]   ;;  %v5349_v16 = vld [vmem:[%s5647_s22 + $0x44] ss:$0 sps:$4 sm:$0x11]  }
  0x23   : > { %v2551_v17 = vrot.slane %v2549_v6, 1  ;;  %v2206_v19 = vrot.slane %v5348_v15, 1  ;;  %v5350_v20 = vld [vmem:[%s5647_s22 + $0x30] sm:$0xfe]   ;;  %v2535_v21 = vshrl.u32 %v5354_v10, 16  ;;  %v2207_v22 = vrot.slane %v5349_v16, 1 }
  0x24   : > { %2243 = vrot.lane.b32.xlu0 %v2199_v51, %s5594_s24  ;;  %v2521_v12 = vsel %vm652_vm1, %v2516_v7, %v2520_v3  ;;  %v2954_v18 = vsel %vm2190_vm0, %v2952_v13, %v2953_v14  ;;  %v5351_v23 = vld [vmem:[%s5647_s22 + $0x38] ss:$0 sps:$4 sm:$0x11]   ;;  %v2203_v24 = vrot.slane %v5350_v20, 1  ;;  %v2537_v25 = vshll.u32 %v5354_v10, 16  ;;  %v5364_v30 = vld [vmem:[%s5647_s22 + $0x60] sm:$0xff]  }
  0x25   : > { %v2208_v26 = vsel %vm2190_vm0, %v2206_v19, %v2207_v22  ;;  %v2204_v27 = vrot.slane %v5351_v23, 1  ;;  %v5353_v28 = vld [vmem:[%s5647_s22 + $0x50] ss:$0 sps:$4 sm:$0x11]   ;;  %v2552_v32 = vor.u32 %v2551_v17, %v2547_v2  ;;  %v5356_v35 = vld [vmem:[%s5647_s22 + $0x48] sm:$0xfe]  }
  0x26   : > { %2672 = vrot.lane.b32.xlu1 %v2533_v0, %s5595_s25  ;;  %v2539_v29 = vrot.slane %v2537_v25, 1  ;;  %v2554_v33 = vshll.u32 %v5353_v28, 16  ;;  %v5355_v34 = vld [vmem:[%s5647_s22 + $0x44] ss:$0 sps:$4 sm:$0x11]   ;;  %v2571_v40 = vshrl.u32 %v5364_v30, 16 }
  0x27   : > { %v2205_v31 = vsel %vm2190_vm0, %v2203_v24, %v2204_v27  ;;  %v2542_v38 = vshll.u32 %v5355_v34, 16  ;;  %v5357_v39 = vld [vmem:[%s5647_s22 + $0x50] ss:$0 sps:$4 sm:$0x11]   ;;  %v2961_v41 = vrot.slane %v5356_v35, 1  ;;  %v2573_v42 = vshll.u32 %v5364_v30, 16 }
  0x28   : > { %2670 = vrot.lane.b32.xlu0 %v2521_v12, %s5595_s25  ;;  %v2556_v36 = vrot.slane %v2554_v33, 1  ;;  %v2540_v37 = vor.u32 %v2539_v29, %v2535_v21  ;;  %v2962_v45 = vrot.slane %v5357_v39, 1  ;;  %v5358_v46 = vld [vmem:[%s5647_s22 + $0x3c] sm:$0xfe]   ;;  %v5360_v54 = vld [vmem:[%s5647_s22 + $0x54] sm:$0xfe]  }
  0x29   : > { %v2544_v44 = vrot.slane %v2542_v38, 1  ;;  %v5359_v47 = vld [vmem:[%s5647_s22 + $0x44] ss:$0 sps:$4 sm:$0x11]   ;;  %v2575_v48 = vrot.slane %v2573_v42, 1  ;;  %v2958_v51 = vrot.slane %v5358_v46, 1 }
  0x2a   : > { %2997 = vrot.lane.b32.xlu1 %v2957_v11, %s5593_s23  ;;  %v2557_v43 = vsel %vm652_vm1, %v2552_v32, %v2556_v36  ;;  %v2963_v50 = vsel %vm2190_vm0, %v2961_v41, %v2962_v45  ;;  %v2959_v53 = vrot.slane %v5359_v47, 1  ;;  %v5361_v55 = vld [vmem:[%s5647_s22 + $0x5c] ss:$0 sps:$4 sm:$0x11]   ;;  %v2212_v57 = vrot.slane %v5360_v54, 1  ;;  %v5388_v46 = vld [vmem:[%s5647_s22 + $0x90] sm:$0xff]  }
  0x2b   : > { %v2545_v49 = vsel %vm652_vm1, %v2540_v37, %v2544_v44  ;;  %v2213_v58 = vrot.slane %v5361_v55, 1  ;;  %v5362_v59 = vld [vmem:[%s5647_s22 + $0x48] sm:$0xfe]   ;;  %v5363_v60 = vld [vmem:[%s5647_s22 + $0x50] ss:$0 sps:$4 sm:$0x11]   ;;  %v2576_v3 = vor.u32 %v2575_v48, %v2571_v40 }
  0x2c   : > { %2995 = vrot.lane.b32.xlu0 %v2954_v18, %s5593_s23  ;;  %v2960_v56 = vsel %vm2190_vm0, %v2958_v51, %v2959_v53  ;;  %v2559_v61 = vshrl.u32 %v5366_v52, 16  ;;  %v2209_v63 = vrot.slane %v5362_v59, 1  ;;  %v5365_v0 = vld [vmem:[%s5647_s22 + $0x68] ss:$0 sps:$4 sm:$0x11]   ;;  %v2210_v1 = vrot.slane %v5363_v60, 1 }
  0x2d   : > { %v2214_v62 = vsel %vm2190_vm0, %v2212_v57, %v2213_v58  ;;  %v2561_v2 = vshll.u32 %v5366_v52, 16  ;;  %v2578_v4 = vshll.u32 %v5365_v0, 16  ;;  %v5367_v5 = vld [vmem:[%s5647_s22 + $0x5c] ss:$0 sps:$4 sm:$0x11]   ;;  %v2619_v52 = vshrl.u32 %v5388_v46, 16 }
  0x2e   : > { %2249 = vrot.lane.b32.xlu1 %v2208_v26, %s5594_s24  ;;  %v2211_v6 = vsel %vm2190_vm0, %v2209_v63, %v2210_v1  ;;  %v5376_v8 = vld [vmem:[%s5647_s22 + $0x78] sm:$0xff]   ;;  %v2566_v10 = vshll.u32 %v5367_v5, 16  ;;  %v5368_v11 = vld [vmem:[%s5647_s22 + $0x60] sm:$0xfe]   ;;  %v5372_v25 = vld [vmem:[%s5647_s22 + $0x6c] sm:$0xfe]  }
  0x2f   : > { %v2563_v7 = vrot.slane %v2561_v2, 1  ;;  %v2580_v9 = vrot.slane %v2578_v4, 1  ;;  %v5369_v13 = vld [vmem:[%s5647_s22 + $0x68] ss:$0 sps:$4 sm:$0x11]   ;;  %v2595_v14 = vshrl.u32 %v5376_v8, 16 }
  0x30   : > { %2247 = vrot.lane.b32.xlu0 %v2205_v31, %s5594_s24  ;;  %v2568_v16 = vrot.slane %v2566_v10, 1  ;;  %v2967_v17 = vrot.slane %v5368_v11, 1  ;;  %v2968_v18 = vrot.slane %v5369_v13, 1  ;;  %v5370_v19 = vld [vmem:[%s5647_s22 + $0x54] sm:$0xfe]   ;;  %v2597_v27 = vshll.u32 %v5376_v8, 16 }
  0x31   : > { %v2564_v12 = vor.u32 %v2563_v7, %v2559_v61  ;;  %v2581_v15 = vsel %vm652_vm1, %v2576_v3, %v2580_v9  ;;  %v5371_v20 = vld [vmem:[%s5647_s22 + $0x5c] ss:$0 sps:$4 sm:$0x11]   ;;  %v2964_v23 = vrot.slane %v5370_v19, 1  ;;  %v2218_v29 = vrot.slane %v5372_v25, 1  ;;  %v5378_v31 = vld [vmem:[%s5647_s22 + $0x6c] sm:$0xff]  }
  0x32   : > { %2676 = vrot.lane.b32.xlu1 %v2557_v43, %s5595_s25  ;;  %v2969_v22 = vsel %vm2190_vm0, %v2967_v17, %v2968_v18  ;;  %v2965_v24 = vrot.slane %v5371_v20, 1  ;;  %v5373_v26 = vld [vmem:[%s5647_s22 + $0x74] ss:$0 sps:$4 sm:$0x11]   ;;  %v5374_v30 = vld [vmem:[%s5647_s22 + $0x60] sm:$0xfe]  }
  0x33   : > { %v2569_v21 = vsel %vm652_vm1, %v2564_v12, %v2568_v16  ;;  %v2219_v32 = vrot.slane %v5373_v26, 1  ;;  %v5375_v33 = vld [vmem:[%s5647_s22 + $0x68] ss:$0 sps:$4 sm:$0x11]   ;;  %v2215_v34 = vrot.slane %v5374_v30, 1  ;;  %v2599_v35 = vrot.slane %v2597_v27, 1 }
  0x34   : > { %2674 = vrot.lane.b32.xlu0 %v2545_v49, %s5595_s25  ;;  %v2966_v28 = vsel %vm2190_vm0, %v2964_v23, %v2965_v24  ;;  %v2216_v37 = vrot.slane %v5375_v33, 1  ;;  %v5377_v38 = vld [vmem:[%s5647_s22 + $0x80] ss:$0 sps:$4 sm:$0x11]   ;;  %v2583_v39 = vshrl.u32 %v5378_v31, 16  ;;  %v2585_v40 = vshll.u32 %v5378_v31, 16 }
  0x35   : > { %v2220_v36 = vsel %vm2190_vm0, %v2218_v29, %v2219_v32  ;;  %v2600_v42 = vor.u32 %v2599_v35, %v2595_v14  ;;  %v2602_v43 = vshll.u32 %v5377_v38, 16  ;;  %v5379_v44 = vld [vmem:[%s5647_s22 + $0x74] ss:$0 sps:$4 sm:$0x11]   ;;  %v5380_v49 = vld [vmem:[%s5647_s22 + $0x78] sm:$0xfe]  }
  0x36   : > { %3001 = vrot.lane.b32.xlu1 %v2963_v50, %s5593_s23  ;;  %v2217_v41 = vsel %vm2190_vm0, %v2215_v34, %v2216_v37  ;;  %v2587_v45 = vrot.slane %v2585_v40, 1  ;;  %v2590_v48 = vshll.u32 %v5379_v44, 16  ;;  %v5381_v51 = vld [vmem:[%s5647_s22 + $0x80] ss:$0 sps:$4 sm:$0x11]   ;;  %v2973_v55 = vrot.slane %v5380_v49, 1 }
  0x37   : > { %v2604_v47 = vrot.slane %v2602_v43, 1  ;;  %v2974_v57 = vrot.slane %v5381_v51, 1  ;;  %v5383_v58 = vld [vmem:[%s5647_s22 + $0x74] ss:$0 sps:$4 sm:$0x11]   ;;  %v2621_v61 = vshll.u32 %v5388_v46, 16 }
  0x38   : > { %2999 = vrot.lane.b32.xlu0 %v2960_v56, %s5593_s23  ;;  %v2588_v50 = vor.u32 %v2587_v45, %v2583_v39  ;;  %v2592_v54 = vrot.slane %v2590_v48, 1  ;;  %v5382_v56 = vld [vmem:[%s5647_s22 + $0x6c] sm:$0xfe]   ;;  %v2971_v63 = vrot.slane %v5383_v58, 1  ;;  %v5384_v0 = vld [vmem:[%s5647_s22 + $0x84] sm:$0xfe]  }
  0x39   : > { %v2605_v53 = vsel %vm652_vm1, %v2600_v42, %v2604_v47  ;;  %v2970_v60 = vrot.slane %v5382_v56, 1  ;;  %v5385_v1 = vld [vmem:[%s5647_s22 + $0x8c] ss:$0 sps:$4 sm:$0x11]   ;;  %v2224_v3 = vrot.slane %v5384_v0, 1  ;;  %v2623_v7 = vrot.slane %v2621_v61, 1 }
  0x3a   : > { %2253 = vrot.lane.b32.xlu1 %v2214_v62, %s5594_s24  ;;  %v2593_v59 = vsel %vm652_vm1, %v2588_v50, %v2592_v54  ;;  %v2975_v62 = vsel %vm2190_vm0, %v2973_v55, %v2974_v57  ;;  %v2225_v4 = vrot.slane %v5385_v1, 1  ;;  %v5386_v5 = vld [vmem:[%s5647_s22 + $0x78] sm:$0xfe]   ;;  %v5389_v10 = vld [vmem:[%s5647_s22 + $0x98] ss:$0 sps:$4 sm:$0x11]  }
  0x3b   : > { %v2972_v2 = vsel %vm2190_vm0, %v2970_v60, %v2971_v63  ;;  %v2221_v9 = vrot.slane %v5386_v5, 1  ;;  %v5390_v12 = vld [vmem:[%s5647_s22 + $0x84] sm:$0xff]   ;;  %v2624_v13 = vor.u32 %v2623_v7, %v2619_v52  ;;  %v2626_v14 = vshll.u32 %v5389_v10, 16  ;;  %v5393_v23 = vld [vmem:[%s5647_s22 + $0x98] ss:$0 sps:$4 sm:$0x11]  }
  0x3c   : > { %2251 = vrot.lane.b32.xlu0 %v2211_v6, %s5594_s24  ;;  %v5387_v6 = vld [vmem:[%s5647_s22 + $0x80] ss:$0 sps:$4 sm:$0x11]   ;;  %v2226_v8 = vsel %vm2190_vm0, %v2224_v3, %v2225_v4  ;;  %v2607_v17 = vshrl.u32 %v5390_v12, 16  ;;  %v2609_v18 = vshll.u32 %v5390_v12, 16  ;;  %v5400_v37 = vld [vmem:[%s5647_s22 + $0xa8] sm:$0xff]  }
  0x3d   : > { %v2222_v11 = vrot.slane %v5387_v6, 1  ;;  %v2628_v19 = vrot.slane %v2626_v14, 1  ;;  %v5394_v29 = vld [vmem:[%s5647_s22 + $0x84] sm:$0xfe]   ;;  %v5396_v35 = vld [vmem:[%s5647_s22 + $0x9c] sm:$0xfe]  }
  0x3e   : > { %2680 = vrot.lane.b32.xlu1 %v2581_v15, %s5595_s25  ;;  %v5391_v15 = vld [vmem:[%s5647_s22 + $0x8c] ss:$0 sps:$4 sm:$0x11]   ;;  %v2976_v33 = vrot.slane %v5394_v29, 1  ;;  %v2230_v39 = vrot.slane %v5396_v35, 1  ;;  %v2643_v45 = vshrl.u32 %v5400_v37, 16 }
  0x3f   : > { %v2223_v16 = vsel %vm2190_vm0, %v2221_v9, %v2222_v11  ;;  %v2614_v20 = vshll.u32 %v5391_v15, 16  ;;  %v2629_v24 = vsel %vm652_vm1, %v2624_v13, %v2628_v19  ;;  %v5395_v30 = vld [vmem:[%s5647_s22 + $0x8c] ss:$0 sps:$4 sm:$0x11]   ;;  %v5398_v40 = vld [vmem:[%s5647_s22 + $0x90] sm:$0xfe]  }
  0x40   : > { %2678 = vrot.lane.b32.xlu0 %v2569_v21, %s5595_s25  ;;  %v5392_v21 = vld [vmem:[%s5647_s22 + $0x90] sm:$0xfe]   ;;  %v2977_v34 = vrot.slane %v5395_v30, 1  ;;  %v5399_v43 = vld [vmem:[%s5647_s22 + $0x98] ss:$0 sps:$4 sm:$0x11]  }
  0x41   : > { %v2616_v25 = vrot.slane %v2614_v20, 1  ;;  %v2979_v26 = vrot.slane %v5392_v21, 1  ;;  %v2227_v44 = vrot.slane %v5398_v40, 1  ;;  %v2228_v47 = vrot.slane %v5399_v43, 1  ;;  %v5404_v60 = vld [vmem:[%s5647_s22 + $0xa8] sm:$0xfe]  }
  0x42   : > { %3005 = vrot.lane.b32.xlu1 %v2969_v22, %s5593_s23  ;;  %v2611_v22 = vrot.slane %v2609_v18, 1  ;;  %v2978_v38 = vsel %vm2190_vm0, %v2976_v33, %v2977_v34  ;;  %v5401_v48 = vld [vmem:[%s5647_s22 + $0xb0] ss:$0 sps:$4 sm:$0x11]   ;;  %v2645_v49 = vshll.u32 %v5400_v37, 16  ;;  %v2985_v1 = vrot.slane %v5404_v60, 1 }
  0x43   : > { %v2229_v51 = vsel %vm2190_vm0, %v2227_v44, %v2228_v47  ;;  %v5403_v54 = vld [vmem:[%s5647_s22 + $0xa4] ss:$0 sps:$4 sm:$0x11]   ;;  %v5405_v61 = vld [vmem:[%s5647_s22 + $0xb0] ss:$0 sps:$4 sm:$0x11]  }
  0x44   : > { %3003 = vrot.lane.b32.xlu0 %v2966_v28, %s5593_s23  ;;  %v2612_v27 = vor.u32 %v2611_v22, %v2607_v17  ;;  %v2980_v28 = vrot.slane %v5393_v23, 1  ;;  %v2647_v52 = vrot.slane %v2645_v49, 1  ;;  %v2986_v3 = vrot.slane %v5405_v61, 1  ;;  %v5406_v4 = vld [vmem:[%s5647_s22 + $0x9c] sm:$0xfe]   ;;  %v5414_v11 = vld [vmem:[%s5647_s22 + $0xb4] sm:$0xff]  }
  0x45   : > { %v5407_v5 = vld [vmem:[%s5647_s22 + $0xa4] ss:$0 sps:$4 sm:$0x11]   ;;  %v5408_v10 = vld [vmem:[%s5647_s22 + $0xa8] sm:$0xfe]   ;;  %v2655_v21 = vshrl.u32 %v5414_v11, 16 }
  0x46   : > { %2257 = vrot.lane.b32.xlu1 %v2220_v36, %s5594_s24  ;;  %v2617_v31 = vsel %vm652_vm1, %v2612_v27, %v2616_v25  ;;  %v2981_v32 = vsel %vm2190_vm0, %v2979_v26, %v2980_v28  ;;  %v5397_v36 = vld [vmem:[%s5647_s22 + $0xa4] ss:$0 sps:$4 sm:$0x11]   ;;  %v2648_v56 = vor.u32 %v2647_v52, %v2643_v45  ;;  %v2987_v7 = vsel %vm2190_vm0, %v2985_v1, %v2986_v3  ;;  %v5409_v12 = vld [vmem:[%s5647_s22 + $0xb0] ss:$0 sps:$4 sm:$0x11]  }
  0x47   : > { %v2231_v42 = vrot.slane %v5397_v36, 1  ;;  %v2983_v9 = vrot.slane %v5407_v5, 1  ;;  %v2233_v15 = vrot.slane %v5408_v10, 1  ;;  %v2234_v17 = vrot.slane %v5409_v12, 1  ;;  %v5412_v20 = vld [vmem:[%s5647_s22 + $0xb4] sm:$0xfe]  }
  0x48   : > { %2255 = vrot.lane.b32.xlu0 %v2217_v41, %s5594_s24  ;;  %v5402_v41 = vld [vmem:[%s5647_s22 + $0x9c] sm:$0xff]   ;;  %v2236_v26 = vrot.slane %v5412_v20, 1  ;;  %v2657_v30 = vshll.u32 %v5414_v11, 16  ;;  %v5417_v36 = vld [vmem:[%s5647_s22 + $0x14] ss:$0 sps:$4 sm:$0x11]  }
  0x49   : > { %v2232_v46 = vsel %vm2190_vm0, %v2230_v39, %v2231_v42  ;;  %v2631_v50 = vshrl.u32 %v5402_v41, 16  ;;  %v2633_v55 = vshll.u32 %v5402_v41, 16  ;;  %v2235_v22 = vsel %vm2190_vm0, %v2233_v15, %v2234_v17  ;;  %v5415_v29 = vld [vmem:[%s5647_s22 + $0xbc] ss:$0 sps:$4 sm:$0x11]   ;;  %v5418_v43 = vld [vmem:[%s5647_s22 + $0xc] sm:$0xff]  }
  0x4a   : > { %2684 = vrot.lane.b32.xlu1 %v2605_v53, %s5595_s25  ;;  %v2650_v53 = vshll.u32 %v5401_v48, 16  ;;  %v2659_v34 = vrot.slane %v2657_v30, 1  ;;  %v2662_v35 = vshll.u32 %v5415_v29, 16  ;;  %v673_v41 = vshll.u32 %v5417_v36, 16  ;;  %v5419_v44 = vld [vmem:[%s5839_s29] sm:$0xff]  }
  0x4b   : > { %v2635_v58 = vrot.slane %v2633_v55, 1  ;;  %v5420_v47 = vld [vmem:[%s5839_s29 + $0x8] ss:$0 sps:$4 sm:$0x11]   ;;  %v2749_v49 = vshrl.u32 %v5419_v44, 16  ;;  %v5436_v36 = vld [vmem:[%s5647_s22] sm:$0xff]  }
  0x4c   : > { %2682 = vrot.lane.b32.xlu0 %v2593_v59, %s5595_s25  ;;  %v2652_v57 = vrot.slane %v2650_v53, 1  ;;  %v2638_v59 = vshll.u32 %v5403_v54, 16  ;;  %v2660_v39 = vor.u32 %v2659_v34, %v2655_v21  ;;  %v2664_v40 = vrot.slane %v2662_v35, 1  ;;  %v5422_v53 = vld [vmem:[%s5647_s22 + $0xbc] ss:$0 sps:$4 sm:$0x11]  }
  0x4d   : > { %v2636_v63 = vor.u32 %v2635_v58, %v2631_v50  ;;  %v2751_v50 = vshll.u32 %v5419_v44, 16  ;;  %v2756_v52 = vshll.u32 %v5420_v47, 16  ;;  %v5425_v61 = vld [vmem:[%s5647_s22 + $0x14] ss:$0 sps:$4 sm:$0x11]   ;;  %v5432_v21 = vld [vmem:[%s5647_s22 + $0x24] sm:$0xff]  }
  0x4e   : > { %3009 = vrot.lane.b32.xlu1 %v2975_v62, %s5593_s23  ;;  %v2653_v62 = vsel %vm652_vm1, %v2648_v56, %v2652_v57  ;;  %v2640_v0 = vrot.slane %v2638_v59, 1  ;;  %v2665_v45 = vsel %vm652_vm1, %v2660_v39, %v2664_v40  ;;  %v5424_v57 = vld [vmem:[%s5647_s22 + $0xc] sm:$0xff]   ;;  %v2989_v59 = vrot.slane %v5422_v53, 1  ;;  %v5426_v5 = vld [vmem:[%s5839_s29] sm:$0xfe]  }
  0x4f   : > { %v2753_v55 = vrot.slane %v2751_v50, 1  ;;  %v2758_v58 = vrot.slane %v2756_v52, 1  ;;  %v1295_v1 = vshll.u32 %v5424_v57, 16  ;;  %v3073_v10 = vrot.slane %v5426_v5, 1  ;;  %v5438_v47 = vld [vmem:[%s5647_s22 + $0x24] sm:$0xff]   ;;  %v5440_v50 = vld [vmem:[%s5647_s22 + $0x30] sm:$0xff]  }
  0x50   : > { %3007 = vrot.lane.b32.xlu0 %v2972_v2, %s5593_s23  ;;  %v5410_v2 = vld [vmem:[%s5647_s22] sm:$0xff]   ;;  %v2641_v6 = vsel %vm652_vm1, %v2636_v63, %v2640_v0  ;;  %v5423_v0 = vld [vmem:[%s5647_s22 + $0x18] sm:$0xff]   ;;  %v5433_v30 = vld [vmem:[%s5647_s22 + $0x2c] ss:$0 sps:$4 sm:$0x11]  }
  0x51   : > { %v654_v13 = vshrl.u32 %v5410_v2, 16  ;;  %v656_v18 = vshll.u32 %v5410_v2, 16  ;;  %v2754_v60 = vor.u32 %v2753_v55, %v2749_v49  ;;  %v5428_v2 = vld [vmem:[%s5647_s22 + $0x18] sm:$0xff]   ;;  %v5431_v20 = vld [vmem:[%s5647_s22 + $0x20] ss:$0 sps:$4 sm:$0x11]  }
  0x52   : > { %2261 = vrot.lane.b32.xlu1 %v2226_v8, %s5594_s24  ;;  %v2982_v8 = vrot.slane %v5406_v4, 1  ;;  %v1300_v4 = vshll.u32 %v5425_v61, 16  ;;  %v1307_v15 = vshll.u32 %v5428_v2, 16  ;;  %v697_v39 = vshll.u32 %v5433_v30, 16 }
  0x53   : > { %v658_v23 = vrot.slane %v656_v18, 1  ;;  %v2759_v3 = vsel %vm652_vm1, %v2754_v60, %v2758_v58  ;;  %v1766_v49 = vshll.u32 %v5436_v36, 16  ;;  %v5439_v53 = vld [vmem:[%s5647_s22 + $0x2c] ss:$0 sps:$4 sm:$0x11]   ;;  %v1329_v58 = vshrl.u32 %v5440_v50, 16 }
  0x54   : > { %2259 = vrot.lane.b32.xlu0 %v2223_v16, %s5594_s24  ;;  %v2984_v14 = vsel %vm2190_vm0, %v2982_v8, %v2983_v9  ;;  %v5411_v16 = vld [vmem:[%s5647_s22 + $0x8] ss:$0 sps:$4 sm:$0x11]   ;;  %v1302_v9 = vrot.slane %v1300_v4, 1  ;;  %v1309_v18 = vrot.slane %v1307_v15, 1  ;;  %v699_v44 = vrot.slane %v697_v39, 1 }
  0x55   : > { %v661_v19 = vshll.u32 %v5411_v16, 16  ;;  %v659_v27 = vor.u32 %v658_v23, %v654_v13  ;;  %v5427_v8 = vld [vmem:[%s5839_s29 + $0x8] ss:$0 sps:$4 sm:$0x11]   ;;  %v1768_v55 = vrot.slane %v1766_v49, 1  ;;  %v1324_v61 = vshll.u32 %v5439_v53, 16 }
  0x56   : > { %2688 = vrot.lane.b32.xlu1 %v2629_v24, %s5595_s25  ;;  %v5413_v24 = vld [vmem:[%s5647_s22 + $0xbc] ss:$0 sps:$4 sm:$0x11]   ;;  %v3074_v12 = vrot.slane %v5427_v8, 1  ;;  %v5444_v4 = vld [vmem:[%s5647_s22 + $0xc] sm:$0xff]  }
  0x57   : > { %v663_v25 = vrot.slane %v661_v19, 1  ;;  %v2237_v28 = vrot.slane %v5413_v24, 1  ;;  %v5429_v13 = vld [vmem:[%s5647_s22 + $0x20] ss:$0 sps:$4 sm:$0x11]  }
  0x58   : > { %2686 = vrot.lane.b32.xlu0 %v2617_v31, %s5595_s25  ;;  %v5416_v31 = vld [vmem:[%s5647_s22 + $0xc] sm:$0xff]   ;;  %v1312_v19 = vshll.u32 %v5429_v13, 16  ;;  %v1776_v13 = vshrl.u32 %v5444_v4, 16 }
  0x59   : > { %v2238_v33 = vsel %vm2190_vm0, %v2236_v26, %v2237_v28  ;;  %v666_v37 = vshrl.u32 %v5416_v31, 16  ;;  %v685_v28 = vshll.u32 %v5431_v20, 16 }
  0x5a   : > { %3013 = vrot.lane.b32.xlu1 %v2981_v32, %s5593_s23  ;;  %v664_v32 = vsel %vm652_vm1, %v659_v27, %v663_v25  ;;  %v1314_v27 = vrot.slane %v1312_v19, 1 }
  0x5b   : > { %v687_v35 = vrot.slane %v685_v28, 1 }
  0x5c   : > { %3011 = vrot.lane.b32.xlu0 %v2978_v38, %s5593_s23  ;;  %v668_v38 = vshll.u32 %v5416_v31, 16  ;;  %v690_v31 = vshrl.u32 %v5432_v21, 16 }
  0x5e   : > { %2265 = vrot.lane.b32.xlu1 %v2232_v46, %s5594_s24  ;;  %v670_v42 = vrot.slane %v668_v38, 1  ;;  %v675_v46 = vrot.slane %v673_v41, 1  ;;  %v5434_v41 = vld [vmem:[%s5647_s22 + $0x24] sm:$0xff]  }
  0x60   : > { %2263 = vrot.lane.b32.xlu0 %v2229_v51, %s5594_s24  ;;  %v671_v48 = vor.u32 %v670_v42, %v666_v37  ;;  %v5421_v51 = vld [vmem:[%s5647_s22 + $0xb4] sm:$0xfe]  }
  0x61   : > { %v2988_v56 = vrot.slane %v5421_v51, 1 }
  0x62   : > { %2692 = vrot.lane.b32.xlu1 %v2653_v62, %s5595_s25  ;;  %v676_v54 = vsel %vm652_vm1, %v671_v48, %v675_v46  ;;  %v1293_v62 = vshrl.u32 %v5424_v57, 16  ;;  %v1764_v46 = vshrl.u32 %v5436_v36, 16  ;;  %v5435_v48 = vld [vmem:[%s5647_s22 + $0x30] sm:$0xff]   ;;  %v1319_v57 = vshll.u32 %v5438_v47, 16 }
  0x63   : > { %v2990_v63 = vsel %vm2190_vm0, %v2988_v56, %v2989_v59  ;;  %v1317_v56 = vshrl.u32 %v5438_v47, 16 }
  0x64   : > { %2690 = vrot.lane.b32.xlu0 %v2641_v6, %s5595_s25  ;;  %v5430_v6 = vld [vmem:[%s5647_s22 + $0x18] sm:$0xff]  }
  0x65   : > { %v678_v23 = vshrl.u32 %v5430_v6, 16  ;;  %v680_v24 = vshll.u32 %v5430_v6, 16 }
  0x66   : > { %3017 = vrot.lane.b32.xlu1 %v2987_v7, %s5593_s23  ;;  %v1297_v7 = vrot.slane %v1295_v1, 1  ;;  %v1331_v1 = vshll.u32 %v5440_v50, 16 }
  0x67   : > { %v682_v29 = vrot.slane %v680_v24, 1 }
  0x68   : > { %3015 = vrot.lane.b32.xlu0 %v2984_v14, %s5593_s23  ;;  %v1298_v11 = vor.u32 %v1297_v7, %v1293_v62  ;;  %v1305_v14 = vshrl.u32 %v5428_v2, 16  ;;  %v1769_v62 = vor.u32 %v1768_v55, %v1764_v46  ;;  %v5442_v2 = vld [vmem:[%s5647_s22 + $0x24] sm:$0xff]   ;;  %v1333_v7 = vrot.slane %v1331_v1, 1 }
  0x69   : > { %v683_v37 = vor.u32 %v682_v29, %v678_v23  ;;  %v5446_v23 = vld [vmem:[%s5647_s22 + $0x30] sm:$0xff]  }
  0x6a   : > { %845 = vrot.lane.b32.xlu1 %v664_v32, %s5594_s24  ;;  %v1303_v17 = vsel %vm652_vm1, %v1298_v11, %v1302_v9  ;;  %v1310_v26 = vor.u32 %v1309_v18, %v1305_v14  ;;  %v692_v32 = vshll.u32 %v5432_v21, 16  ;;  %v1800_v11 = vshrl.u32 %v5442_v2, 16 }
  0x6b   : > { %v688_v42 = vsel %vm652_vm1, %v683_v37, %v687_v35  ;;  %v1334_v15 = vor.u32 %v1333_v7, %v1329_v58  ;;  %v1778_v18 = vshll.u32 %v5444_v4, 16  ;;  %v704_v35 = vshll.u32 %v5446_v23, 16  ;;  %v5457_v7 = vld [vmem:[%s5647_s22 + $0x50] ss:$0 sps:$4 sm:$0x11]  }
  0x6c   : > { %2267 = vrot.lane.b32.xlu0 %v2235_v22, %s5594_s24  ;;  %v3075_v22 = vsel %vm2190_vm0, %v3073_v10, %v3074_v12  ;;  %v1315_v34 = vsel %vm652_vm1, %v1310_v26, %v1314_v27  ;;  %v694_v38 = vrot.slane %v692_v32, 1  ;;  %v5443_v10 = vld [vmem:[%s5647_s22 + $0x2c] ss:$0 sps:$4 sm:$0x11]   ;;  %v1802_v12 = vshll.u32 %v5442_v2, 16  ;;  %v5448_v27 = vld [vmem:[%s5647_s22 + $0x3c] sm:$0xff]  }
  0x6d   : > { %v1807_v21 = vshll.u32 %v5443_v10, 16  ;;  %v1780_v26 = vrot.slane %v1778_v18, 1  ;;  %v706_v39 = vrot.slane %v704_v35, 1 }
  0x6e   : > { %2694 = vrot.lane.b32.xlu1 %v2665_v45, %s5595_s25  ;;  %v5437_v45 = vld [vmem:[%s5647_s22 + $0x8] ss:$0 sps:$4 sm:$0x11]   ;;  %v1804_v20 = vrot.slane %v1802_v12, 1 }
  0x6f   : > { %v1771_v52 = vshll.u32 %v5437_v45, 16  ;;  %v1809_v29 = vrot.slane %v1807_v21, 1  ;;  %v1781_v32 = vor.u32 %v1780_v26, %v1776_v13  ;;  %v5459_v13 = vld [vmem:[%s5647_s22 + $0x48] sm:$0xff]  }
  0x70   : > { %2269 = vrot.lane.b32.xlu0 %v2238_v33, %s5594_s24  ;;  %v1805_v28 = vor.u32 %v1804_v20, %v1800_v11  ;;  %v5458_v11 = vld [vmem:[%s7034_s2 + $0x8] sm:$0xff]   ;;  %v726_v26 = vshrl.u32 %v5459_v13, 16 }
  0x71   : > { %v1773_v60 = vrot.slane %v1771_v52, 1  ;;  %5192 = vmatprep.subr.bf16.mxu1 %v5458_v11 }
  0x72   : > { %1043 = vrot.lane.b32.xlu1 %v5418_v43, %s5595_s25  ;;  %v695_v43 = vor.u32 %v694_v38, %v690_v31  ;;  %v702_v31 = vshrl.u32 %v5446_v23, 16  ;;  %v1810_v36 = vsel %vm652_vm1, %v1805_v28, %v1809_v29  ;;  %v714_v38 = vshrl.u32 %v5448_v27, 16  ;;  %5193 = vmatpush3.bf16.msra.mxu1 %v5458_v11 }
  0x73   : > { %v1774_v5 = vsel %vm652_vm1, %v1769_v62, %v1773_v60  ;;  %1975 = vst.msk [vmem:[#allocation2 + $0xa0] sm:$0xff] %vm449_vm2, %v1810_v36 }
  0x74   : > { %847 = vrot.lane.b32.xlu0 %v676_v54, %s5594_s24  ;;  %v700_v51 = vsel %vm652_vm1, %v695_v43, %v699_v44  ;;  %1972 = vst.msk [vmem:[#allocation2 + $0x88] sm:$0xff] %vm449_vm2, %v1774_v5  ;;  %v716_v43 = vshll.u32 %v5448_v27, 16  ;;  %v707_v47 = vor.u32 %v706_v39, %v702_v31  ;;  %v728_v27 = vshll.u32 %v5459_v13, 16 }
  0x76   : > { %3019 = vrot.lane.b32.xlu1 %v2990_v63, %s5593_s23  ;;  %v1321_v63 = vrot.slane %v1319_v57, 1  ;;  %v718_v49 = vrot.slane %v716_v43, 1  ;;  %v5454_v57 = vld [vmem:[%s5647_s22 + $0x3c] sm:$0xff]  }
  0x77   : > { %v1343_v1 = vshll.u32 %v5454_v57, 16 }
  0x78   : > { %2772 = vrot.lane.b32.xlu0 %v2759_v3, %s5595_s25  ;;  %v1326_v3 = vrot.slane %v1324_v61, 1  ;;  %v1322_v6 = vor.u32 %v1321_v63, %v1317_v56  ;;  %v719_v52 = vor.u32 %v718_v49, %v714_v38  ;;  %v5451_v56 = vld [vmem:[%s5647_s22 + $0x48] sm:$0xff]   ;;  %v5455_v63 = vld [vmem:[%s5647_s22 + $0x44] ss:$0 sps:$4 sm:$0x11]  }
  0x79   : > { %v1345_v5 = vrot.slane %v1343_v1, 1  ;;  %v5470_v1 = vld [vmem:[%s5647_s22 + $0x5c] ss:$0 sps:$4 sm:$0x11]  }
  0x7a   : > { %1472 = vrot.lane.b32.xlu1 %v1303_v17, %s5593_s23  ;;  %v1327_v14 = vsel %vm652_vm1, %v1322_v6, %v1326_v3  ;;  %v5456_v3 = vld [vmem:[%s5647_s22 + $0x48] sm:$0xff]   ;;  %v1348_v6 = vshll.u32 %v5455_v63, 16 }
  0x7b   : > { %v1355_v10 = vshll.u32 %v5456_v3, 16 }
  0x7c   : > { %1045 = vrot.lane.b32.xlu0 %v5423_v0, %s5595_s25  ;;  %v5441_v0 = vld [vmem:[%s5647_s22 + $0x38] ss:$0 sps:$4 sm:$0x11]  }
  0x7d   : > { %v1336_v8 = vshll.u32 %v5441_v0, 16  ;;  %v1341_v0 = vshrl.u32 %v5454_v57, 16  ;;  %v1357_v21 = vrot.slane %v1355_v10, 1 }
  0x7e   : > { %1474 = vrot.lane.b32.xlu1 %v1315_v34, %s5593_s23  ;;  %v5447_v34 = vld [vmem:[%s5647_s22 + $0x38] ss:$0 sps:$4 sm:$0x11]  }
  0x7f   : > { %v1338_v17 = vrot.slane %v1336_v8, 1 }
  0x80   : > { %3079 = vrot.lane.b32.xlu0 %v3075_v22, %s5593_s23  ;;  %v5445_v22 = vld [vmem:[%s5647_s22 + $0x14] ss:$0 sps:$4 sm:$0x11]  }
  0x81   : > { %v1339_v24 = vsel %vm652_vm1, %v1334_v15, %v1338_v17  ;;  %v1783_v30 = vshll.u32 %v5445_v22, 16  ;;  %v1350_v15 = vrot.slane %v1348_v6, 1  ;;  %v1360_v17 = vshll.u32 %v5457_v7, 16  ;;  %v5460_v22 = vld [vmem:[%s5647_s22 + $0x50] ss:$0 sps:$4 sm:$0x11]  }
  0x82   : > { %851 = vrot.lane.b32.xlu1 %v700_v51, %s5594_s24 }
  0x83   : > { %v1785_v37 = vrot.slane %v1783_v30, 1  ;;  %v733_v30 = vshll.u32 %v5460_v22, 16 }
  0x84   : > { %849 = vrot.lane.b32.xlu0 %v688_v42, %s5594_s24  ;;  %v5449_v42 = vld [vmem:[%s5647_s22 + $0x44] ss:$0 sps:$4 sm:$0x11]  }
  0x85   : > { %v1786_v46 = vsel %vm652_vm1, %v1781_v32, %v1785_v37  ;;  %v721_v50 = vshll.u32 %v5449_v42, 16  ;;  %v730_v32 = vrot.slane %v728_v27, 1 }
  0x86   : > { %1049 = vrot.lane.b32.xlu1 %v5435_v48, %s5595_s25  ;;  %1973 = vst.msk [vmem:[#allocation2 + $0x90] sm:$0xff] %vm449_vm2, %v1786_v46 }
  0x87   : > { %v723_v53 = vrot.slane %v721_v50, 1  ;;  %v731_v39 = vor.u32 %v730_v32, %v726_v26  ;;  %v5464_v50 = vld [vmem:[%s5647_s22 + $0x60] sm:$0xff]  }
  0x88   : > { %v5865_v16 = vpop.permute.xlu1 %2993  ;;  %1047 = vrot.lane.b32.xlu0 %v5434_v41, %s5595_s25  ;;  %v709_v41 = vshll.u32 %v5447_v34, 16  ;;  %v5462_v34 = vld [vmem:[%s5647_s22 + $0x5c] ss:$0 sps:$4 sm:$0x11]  }
  0x89   : > { %v745_v42 = vshll.u32 %v5462_v34, 16 }
  0x8a   : > { %v2240_v25 = vpop.permute.xlu0 %2239  ;;  %1478 = vrot.lane.b32.xlu1 %v1339_v24, %s5593_s23  ;;  %v711_v48 = vrot.slane %v709_v41, 1  ;;  %v1362_v24 = vrot.slane %v1360_v17, 1  ;;  %v5473_v17 = vld [vmem:[%s5647_s22 + $0x60] sm:$0xff]  }
  0x8b   : > { %2287 = vst.msk [vmem:[#allocation2 + $0x88] sm:$0xff] %vm893_vm3, %v2240_v25  ;;  %v752_v32 = vshll.u32 %v5473_v17, 16 }
  0x8c   : > { %v5874_v33 = vpop.permute.xlu1 %2245  ;;  %1476 = vrot.lane.b32.xlu0 %v1327_v14, %s5593_s23  ;;  %v712_v51 = vsel %vm652_vm1, %v707_v47, %v711_v48  ;;  %v1346_v14 = vor.u32 %v1345_v5, %v1341_v0  ;;  %v747_v47 = vrot.slane %v745_v42, 1  ;;  %v5465_v48 = vld [vmem:[%s5647_s22 + $0x3c] sm:$0xff]  }
  0x8d   : > { %2290 = vst.msk [vmem:[#allocation2 + $0xa0] sm:$0xff] %vm893_vm3, %v5874_v33  ;;  %v5450_v33 = vld [vmem:[%s5647_s22 + $0x3c] sm:$0xff]  }
  0x8e   : > { %v5880_v40 = vpop.permute.xlu0 %2241  ;;  %v1351_v23 = vsel %vm652_vm1, %v1346_v14, %v1350_v15  ;;  %v5472_v14 = vld [vmem:[%s5647_s22 + $0x68] ss:$0 sps:$4 sm:$0x11]  }
  0x8f   : > { %2288 = vst.msk [vmem:[#allocation2 + $0x90] sm:$0xff] %vm893_vm3, %v5880_v40  ;;  %v5453_v40 = vld [vmem:[%s5647_s22 + $0x20] ss:$0 sps:$4 sm:$0x11]  }
  0x90   : > { %v5891_v54 = vpop.permute.xlu1 %2666  ;;  %853 = vrot.lane.b32.xlu0 %v712_v51, %s5594_s24  ;;  %v1795_v62 = vshll.u32 %v5453_v40, 16  ;;  %v5467_v51 = vld [vmem:[%s5647_s22 + $0x30] sm:$0xff]   ;;  %v5468_v40 = vld [vmem:[%s5647_s22 + $0x38] ss:$0 sps:$4 sm:$0x11]  }
  0x91   : > { %2711 = vst.msk [vmem:[#allocation2 + $0x88] sm:$0xff] %vm1088_vm4, %v5891_v54  ;;  %v5452_v54 = vld [vmem:[%s5647_s22 + $0x18] sm:$0xff]   ;;  %v1812_v57 = vshrl.u32 %v5467_v51, 16  ;;  %v1819_v0 = vshll.u32 %v5468_v40, 16 }
  0x92   : > { %v5894_v59 = vpop.permute.xlu0 %2991  ;;  %v1788_v60 = vshrl.u32 %v5452_v54, 16  ;;  %v1790_v61 = vshll.u32 %v5452_v54, 16  ;;  %v1826_v54 = vshll.u32 %v5465_v48, 16 }
  0x93   : > { %3036 = vst.msk [vmem:[#allocation2 + $0x88] sm:$0xff] %vm1517_vm5, %v5894_v59  ;;  %v724_v59 = vsel %vm652_vm1, %v719_v52, %v723_v53  ;;  %v1824_v53 = vshrl.u32 %v5465_v48, 16  ;;  %v1821_v7 = vrot.slane %v1819_v0, 1  ;;  %v5477_v48 = vld [vmem:[%s5647_s22 + $0x6c] sm:$0xff]   ;;  %v5485_v0 = vld [vmem:[%s5647_s22 + $0x78] sm:$0xff]  }
  0x94   : > { %v2669_v9 = vpop.permute.xlu1 %2668  ;;  %855 = vrot.lane.b32.xlu1 %v724_v59, %s5594_s24  ;;  %v1792_v2 = vrot.slane %v1790_v61, 1  ;;  %1051 = vrot.lane.b32.xlu0 %v5450_v33, %s5595_s25  ;;  %v5466_v33 = vld [vmem:[%s5647_s22 + $0x44] ss:$0 sps:$4 sm:$0x11]   ;;  %v1814_v59 = vshll.u32 %v5467_v51, 16  ;;  %v5469_v61 = vld [vmem:[%s5647_s22 + $0x54] sm:$0xff]  }
  0x95   : > { %2712 = vst.msk [vmem:[#allocation2 + $0x90] sm:$0xff] %vm1088_vm4, %v2669_v9  ;;  %v1353_v9 = vshrl.u32 %v5456_v3, 16  ;;  %v1367_v5 = vshll.u32 %v5469_v61, 16 }
  0x96   : > { %v5906_v19 = vpop.permute.xlu0 %2243  ;;  %3037 = vst.msk [vmem:[#allocation2 + $0x90] sm:$0xff] %vm1517_vm5, %v5865_v16  ;;  %v1797_v16 = vrot.slane %v1795_v62, 1  ;;  %v1793_v8 = vor.u32 %v1792_v2, %v1788_v60  ;;  %v1828_v60 = vrot.slane %v1826_v54, 1  ;;  %v1816_v63 = vrot.slane %v1814_v59, 1 }
  0x97   : > { %v1358_v29 = vor.u32 %v1357_v21, %v1353_v9  ;;  %v5471_v9 = vld [vmem:[%s5647_s22 + $0x60] sm:$0xff]   ;;  %v1369_v13 = vrot.slane %v1367_v5, 1 }
  0x98   : > { %v2673_v25 = vpop.permute.xlu1 %2672  ;;  %1053 = vrot.lane.b32.xlu1 %v5451_v56, %s5595_s25  ;;  %v1798_v20 = vsel %vm652_vm1, %v1793_v8, %v1797_v16  ;;  %1480 = vrot.lane.b32.xlu0 %v1351_v23, %s5593_s23  ;;  %v1831_v56 = vshll.u32 %v5466_v33, 16  ;;  %v1829_v3 = vor.u32 %v1828_v60, %v1824_v53  ;;  %v1365_v16 = vshrl.u32 %v5469_v61, 16  ;;  %v5480_v33 = vld [vmem:[%s5647_s22 + $0x5c] ss:$0 sps:$4 sm:$0x11]  }
  0x99   : > { %2714 = vst.msk [vmem:[#allocation2 + $0xa0] sm:$0xff] %vm1088_vm4, %v2673_v25  ;;  %v5461_v25 = vld [vmem:[%s5647_s22 + $0x54] sm:$0xff]   ;;  %v1363_v38 = vsel %vm652_vm1, %v1358_v29, %v1362_v24  ;;  %v1817_v6 = vor.u32 %v1816_v63, %v1812_v57  ;;  %v1372_v8 = vshll.u32 %v5470_v1, 16  ;;  %v1377_v22 = vshrl.u32 %v5471_v9, 16  ;;  %v5475_v24 = vld [vmem:[%s5647_s22 + $0x6c] sm:$0xff]  }
  0x9a   : > { %v5918_v44 = vpop.permute.xlu0 %2670  ;;  %v3360_v12 = vld [vmem:[#allocation2 + $0x88] sm:$0xff]  ;;  %1974 = vst.msk [vmem:[#allocation2 + $0x98] sm:$0xff] %vm449_vm2, %v1798_v20  ;;  %v738_v35 = vshrl.u32 %v5461_v25, 16  ;;  %v740_v36 = vshll.u32 %v5461_v25, 16  ;;  %v1833_v62 = vrot.slane %v1831_v56, 1  ;;  %v1379_v23 = vshll.u32 %v5471_v9, 16 }
  0x9b   : > { %5194 = vmatprep.mubr.msk.bf16.mxu1 %vm3118_vm6, %v3360_v12  ;;  %2289 = vst.msk [vmem:[#allocation2 + $0x98] sm:$0xff] %vm893_vm3, %v5906_v19  ;;  %v735_v19 = vrot.slane %v733_v30, 1  ;;  %v1822_v20 = vsel %vm652_vm1, %v1817_v6, %v1821_v7  ;;  %v1374_v21 = vrot.slane %v1372_v8, 1  ;;  %v1370_v27 = vor.u32 %v1369_v13, %v1365_v16  ;;  %v5478_v53 = vld [vmem:[%s5647_s22 + $0x78] sm:$0xff]   ;;  %v5483_v57 = vld [vmem:[%s5647_s22 + $0x6c] sm:$0xff]  }
  0x9c   : > { %v2998_v45 = vpop.permute.xlu1 %2997  ;;  %2713 = vst.msk [vmem:[#allocation2 + $0x98] sm:$0xff] %vm1088_vm4, %v5918_v44  ;;  %1482 = vrot.lane.b32.xlu1 %v1363_v38, %s5593_s23  ;;  %v742_v41 = vrot.slane %v740_v36, 1  ;;  %v5463_v44 = vld [vmem:[%s5647_s22 + $0x54] sm:$0xff]   ;;  %v1834_v12 = vsel %vm652_vm1, %v1829_v3, %v1833_v62  ;;  %v1384_v25 = vshll.u32 %v5472_v14, 16  ;;  %v750_v29 = vshrl.u32 %v5473_v17, 16 }
  0x9d   : > { %3039 = vst.msk [vmem:[#allocation2 + $0xa0] sm:$0xff] %vm1517_vm5, %v2998_v45  ;;  %v3361_v31 = vld [vmem:[#allocation2 + $0x90] sm:$0xff]  ;;  %v736_v45 = vsel %vm652_vm1, %v731_v39, %v735_v19  ;;  %v1381_v30 = vrot.slane %v1379_v23, 1  ;;  %v762_v34 = vshrl.u32 %v5475_v24, 16  ;;  %v764_v38 = vshll.u32 %v5475_v24, 16 }
  0x9e   : > { %v2996_v55 = vpop.permute.xlu0 %2995  ;;  %5195 = vmatmul.mubr.msk.bf16.vlgmr.msra.gmra.mrb[0].mxu1 %vm3118_vm6, %v3361_v31  ;;  %v743_v46 = vor.u32 %v742_v41, %v738_v35  ;;  %857 = vrot.lane.b32.xlu0 %v736_v45, %s5594_s24  ;;  %1977 = vst.msk [vmem:[#allocation2 + $0xb0] sm:$0xff] %vm449_vm2, %v1834_v12  ;;  %1976 = vst.msk [vmem:[#allocation2 + $0xa8] sm:$0xff] %vm449_vm2, %v1822_v20  ;;  %v5474_v31 = vld [vmem:[%s5647_s22 + $0x68] ss:$0 sps:$4 sm:$0x11]   ;;  %v1386_v36 = vrot.slane %v1384_v25, 1 }
  0x9f   : > { %3038 = vst.msk [vmem:[#allocation2 + $0x98] sm:$0xff] %vm1517_vm5, %v2996_v55  ;;  %v757_v19 = vshll.u32 %v5474_v31, 16  ;;  %v5476_v41 = vld [vmem:[%s5647_s22 + $0x74] ss:$0 sps:$4 sm:$0x11]   ;;  %v1855_v40 = vshll.u32 %v5480_v33, 16 }
  0xa0   : > { %v5942_v58 = vpop.permute.xlu1 %2249  ;;  %v748_v52 = vsel %vm652_vm1, %v743_v46, %v747_v47  ;;  %v769_v47 = vshll.u32 %v5476_v41, 16  ;;  %v5482_v61 = vld [vmem:[%s5647_s22 + $0x50] ss:$0 sps:$4 sm:$0x11]   ;;  %v1389_v7 = vshrl.u32 %v5483_v57, 16  ;;  %v1391_v8 = vshll.u32 %v5483_v57, 16 }
  0xa1   : > { %859 = vrot.lane.b32.xlu1 %v748_v52, %s5594_s24  ;;  %2292 = vst.msk [vmem:[#allocation2 + $0xb0] sm:$0xff] %vm893_vm3, %v5942_v58  ;;  %v1375_v58 = vsel %vm652_vm1, %v1370_v27, %v1374_v21  ;;  %v5481_v52 = vld [vmem:[%s5647_s22 + $0x48] sm:$0xff]   ;;  %v1857_v3 = vrot.slane %v1855_v40, 1  ;;  %v1843_v6 = vshll.u32 %v5482_v61, 16  ;;  %v1401_v12 = vshrl.u32 %v5485_v0, 16 }
  0xa2   : > { %v5948_v4 = vpop.permute.xlu0 %2247  ;;  %1055 = vrot.lane.b32.xlu0 %v5463_v44, %s5595_s25  ;;  %v759_v44 = vrot.slane %v757_v19, 1  ;;  %v771_v51 = vrot.slane %v769_v47, 1  ;;  %v1836_v62 = vshrl.u32 %v5481_v52, 16  ;;  %v1838_v63 = vshll.u32 %v5481_v52, 16  ;;  %v5497_v57 = vld [vmem:[%s5647_s22 + $0x84] sm:$0xff]  }
  0xa3   : > { %2291 = vst.msk [vmem:[#allocation2 + $0xa8] sm:$0xff] %vm893_vm3, %v5948_v4  ;;  %v1382_v4 = vor.u32 %v1381_v30, %v1377_v22  ;;  %v1393_v17 = vrot.slane %v1391_v8, 1  ;;  %v5486_v22 = vld [vmem:[%s5647_s22 + $0x80] ss:$0 sps:$4 sm:$0x11]   ;;  %v1403_v23 = vshll.u32 %v5485_v0, 16 }
  0xa4   : > { %v5958_v18 = vpop.permute.xlu1 %2676  ;;  %v3363_v15 = vld [vmem:[#allocation2 + $0xa0] sm:$0xff]  ;;  %v1840_v5 = vrot.slane %v1838_v63, 1  ;;  %v1413_v8 = vshrl.u32 %v5497_v57, 16 }
  0xa5   : > { %1057 = vrot.lane.b32.xlu1 %v5464_v50, %s5595_s25  ;;  %2716 = vst.msk [vmem:[#allocation2 + $0xb0] sm:$0xff] %vm1088_vm4, %v5958_v18  ;;  %v754_v18 = vrot.slane %v752_v32, 1  ;;  %v1387_v42 = vsel %vm652_vm1, %v1382_v4, %v1386_v36  ;;  %v5479_v50 = vld [vmem:[%s5647_s22 + $0x54] sm:$0xff]   ;;  %v1405_v32 = vrot.slane %v1403_v23, 1  ;;  %v5489_v4 = vld [vmem:[%s5647_s22 + $0x84] sm:$0xff]  }
  0xa6   : > { %v5965_v28 = vpop.permute.xlu0 %2674  ;;  %v3362_v10 = vld [vmem:[#allocation2 + $0x98] sm:$0xff]  ;;  %1484 = vrot.lane.b32.xlu0 %v1375_v58, %s5593_s23  ;;  %v1848_v54 = vshrl.u32 %v5479_v50, 16  ;;  %v1850_v56 = vshll.u32 %v5479_v50, 16  ;;  %v1841_v14 = vor.u32 %v1840_v5, %v1836_v62  ;;  %v5493_v50 = vld [vmem:[%s5647_s22 + $0x6c] sm:$0xff]  }
  0xa7   : > { %5198 = vmatprep.mubr.msk.bf16.mxu1 %vm3118_vm6, %v3362_v10  ;;  %2715 = vst.msk [vmem:[#allocation2 + $0xa8] sm:$0xff] %vm1088_vm4, %v5965_v28  ;;  %v766_v28 = vrot.slane %v764_v38, 1  ;;  %v5484_v10 = vld [vmem:[%s5647_s22 + $0x74] ss:$0 sps:$4 sm:$0x11]   ;;  %v5487_v58 = vld [vmem:[%s5647_s22 + $0x78] sm:$0xff]  }
  0xa8   : > { %v5973_v37 = vpop.permute.xlu1 %3001  ;;  %5199 = vmatmul.mubr.msk.bf16.gmra.mrb[4].mxu1 %vm3118_vm6, %v3363_v15  ;;  %v1852_v1 = vrot.slane %v1850_v56, 1  ;;  %v1845_v15 = vrot.slane %v1843_v6, 1  ;;  %v1396_v21 = vshll.u32 %v5484_v10, 16  ;;  %v5488_v38 = vld [vmem:[%s5647_s22 + $0x80] ss:$0 sps:$4 sm:$0x11]  }
  0xa9   : > { %3041 = vst.msk [vmem:[#allocation2 + $0xb0] sm:$0xff] %vm1517_vm5, %v5973_v37  ;;  %v755_v37 = vor.u32 %v754_v18, %v750_v29  ;;  %1486 = vrot.lane.b32.xlu1 %v1387_v42, %s5593_s23  ;;  %v767_v46 = vor.u32 %v766_v28, %v762_v34  ;;  %v1394_v29 = vor.u32 %v1393_v17, %v1389_v7  ;;  %v1408_v34 = vshll.u32 %v5486_v22, 16  ;;  %v5490_v42 = vld [vmem:[%s5647_s22 + $0x8c] ss:$0 sps:$4 sm:$0x11]   ;;  %v5492_v62 = vld [vmem:[%s5647_s22 + $0x90] sm:$0xff]  }
  0xaa   : > { %v5979_v43 = vpop.permute.xlu0 %2999  ;;  %v1853_v9 = vor.u32 %v1852_v1, %v1848_v54  ;;  %v1846_v25 = vsel %vm652_vm1, %v1841_v14, %v1845_v15  ;;  %v1398_v31 = vrot.slane %v1396_v21, 1  ;;  %v1406_v18 = vor.u32 %v1405_v32, %v1401_v12  ;;  %v5494_v54 = vld [vmem:[%s5647_s22 + $0x74] ss:$0 sps:$4 sm:$0x11]  }
  0xab   : > { %3040 = vst.msk [vmem:[#allocation2 + $0xa8] sm:$0xff] %vm1517_vm5, %v5979_v43  ;;  %v760_v43 = vsel %vm652_vm1, %v755_v37, %v759_v44  ;;  %v772_v60 = vsel %vm652_vm1, %v767_v46, %v771_v51  ;;  %v1410_v19 = vrot.slane %v1408_v34, 1  ;;  %v776_v28 = vshll.u32 %v5487_v58, 16  ;;  %v5496_v5 = vld [vmem:[%s5647_s22 + $0x68] ss:$0 sps:$4 sm:$0x11]  }
  0xac   : > { %v5984_v49 = vpop.permute.xlu1 %2253  ;;  %861 = vrot.lane.b32.xlu0 %v760_v43, %s5594_s24  ;;  %v1858_v20 = vsel %vm652_vm1, %v1853_v9, %v1857_v3  ;;  %1978 = vst.msk [vmem:[#allocation2 + $0xb8] sm:$0xff] %vm449_vm2, %v1846_v25  ;;  %v786_v37 = vshrl.u32 %v5489_v4, 16  ;;  %v788_v44 = vshll.u32 %v5489_v4, 16  ;;  %v793_v47 = vshll.u32 %v5490_v42, 16  ;;  %v5499_v15 = vld [vmem:[%s5647_s22 + $0x90] sm:$0xff]   ;;  %v5503_v42 = vld [vmem:[%s5647_s22 + $0x9c] sm:$0xff]  }
  0xad   : > { %863 = vrot.lane.b32.xlu1 %v772_v60, %s5594_s24  ;;  %1979 = vst.msk [vmem:[#allocation2 + $0xc0] sm:$0xff] %vm449_vm2, %v1858_v20  ;;  %v1872_v56 = vshrl.u32 %v5493_v50, 16  ;;  %v1874_v40 = vshll.u32 %v5493_v50, 16  ;;  %v1879_v3 = vshll.u32 %v5494_v54, 16  ;;  %v1867_v12 = vshll.u32 %v5496_v5, 16  ;;  %v5506_v5 = vld [vmem:[%s5647_s22 + $0xa8] sm:$0xff]  }
  0xae   : > { %v5991_v55 = vpop.permute.xlu0 %2251  ;;  %2294 = vst.msk [vmem:[#allocation2 + $0xc0] sm:$0xff] %vm893_vm3, %v5984_v49  ;;  %v1399_v49 = vsel %vm652_vm1, %v1394_v29, %v1398_v31  ;;  %v790_v43 = vrot.slane %v788_v44, 1  ;;  %v795_v51 = vrot.slane %v793_v47, 1  ;;  %v1415_v14 = vshll.u32 %v5497_v57, 16  ;;  %v5505_v57 = vld [vmem:[%s5647_s22 + $0x9c] sm:$0xff]  }
  0xaf   : > { %2293 = vst.msk [vmem:[#allocation2 + $0xb8] sm:$0xff] %vm893_vm3, %v5991_v55  ;;  %v774_v55 = vshrl.u32 %v5487_v58, 16  ;;  %v1876_v1 = vrot.slane %v1874_v40, 1  ;;  %v1881_v10 = vrot.slane %v1879_v3, 1  ;;  %v1425_v32 = vshrl.u32 %v5499_v15, 16 }
  0xb0   : > { %v5998_v2 = vpop.permute.xlu1 %2680  ;;  %1059 = vrot.lane.b32.xlu0 %v5477_v48, %s5595_s25  ;;  %v3365_v30 = vld [vmem:[#allocation2 + $0xb0] sm:$0xff]  ;;  %v791_v52 = vor.u32 %v790_v43, %v786_v37  ;;  %v5498_v21 = vld [vmem:[%s5647_s22 + $0x8c] ss:$0 sps:$4 sm:$0x11]   ;;  %v1417_v25 = vrot.slane %v1415_v14, 1  ;;  %v1427_v34 = vshll.u32 %v5499_v15, 16 }
  0xb1   : > { %1061 = vrot.lane.b32.xlu1 %v5478_v53, %s5595_s25  ;;  %2718 = vst.msk [vmem:[#allocation2 + $0xc0] sm:$0xff] %vm1088_vm4, %v5998_v2  ;;  %v781_v2 = vshll.u32 %v5488_v38, 16  ;;  %v5491_v53 = vld [vmem:[%s5647_s22 + $0x84] sm:$0xff]   ;;  %v1877_v9 = vor.u32 %v1876_v1, %v1872_v56  ;;  %v5500_v31 = vld [vmem:[%s5647_s22 + $0x98] ss:$0 sps:$4 sm:$0x11]  }
  0xb2   : > { %v6002_v11 = vpop.permute.xlu0 %2678  ;;  %v3364_v24 = vld [vmem:[#allocation2 + $0xa8] sm:$0xff]  ;;  %v796_v0 = vsel %vm652_vm1, %v791_v52, %v795_v51  ;;  %v1418_v58 = vor.u32 %v1417_v25, %v1413_v8  ;;  %v812_v43 = vshll.u32 %v5503_v42, 16  ;;  %v5504_v50 = vld [vmem:[%s5647_s22 + $0xa4] ss:$0 sps:$4 sm:$0x11]  }
  0xb3   : > { %5202 = vmatprep.mubr.msk.bf16.mxu1 %vm3118_vm6, %v3364_v24  ;;  %2717 = vst.msk [vmem:[#allocation2 + $0xb8] sm:$0xff] %vm1088_vm4, %v6002_v11  ;;  %v1411_v11 = vsel %vm652_vm1, %v1406_v18, %v1410_v19  ;;  %v783_v46 = vrot.slane %v781_v2, 1  ;;  %v1882_v23 = vsel %vm652_vm1, %v1877_v9, %v1881_v10  ;;  %v1869_v24 = vrot.slane %v1867_v12, 1  ;;  %v5501_v2 = vld [vmem:[%s5647_s22 + $0x90] sm:$0xff]   ;;  %v5509_v9 = vld [vmem:[%s5647_s22 + $0x78] sm:$0xff]  }
  0xb4   : > { %v6012_v26 = vpop.permute.xlu1 %3005  ;;  %5203 = vmatmul.mubr.msk.bf16.gmra.mrb[8].mxu1 %vm3118_vm6, %v3365_v30  ;;  %1488 = vrot.lane.b32.xlu0 %v1399_v49, %s5593_s23  ;;  %1981 = vst.msk [vmem:[#allocation2 + $0xd0] sm:$0xff] %vm449_vm2, %v1882_v23  ;;  %v1420_v30 = vshll.u32 %v5498_v21, 16  ;;  %v798_v44 = vshrl.u32 %v5501_v2, 16  ;;  %v817_v52 = vshll.u32 %v5504_v50, 16  ;;  %v1884_v15 = vshrl.u32 %v5509_v9, 16  ;;  %v5511_v21 = vld [vmem:[%s5647_s22 + $0x9c] sm:$0xff]  }
  0xb5   : > { %3043 = vst.msk [vmem:[#allocation2 + $0xc0] sm:$0xff] %vm1517_vm5, %v6012_v26  ;;  %1490 = vrot.lane.b32.xlu1 %v1411_v11, %s5593_s23  ;;  %v778_v26 = vrot.slane %v776_v28, 1  ;;  %v1432_v28 = vshll.u32 %v5500_v31, 16  ;;  %v5510_v10 = vld [vmem:[%s5647_s22 + $0x80] ss:$0 sps:$4 sm:$0x11]  }
  0xb6   : > { %v6022_v35 = vpop.permute.xlu0 %3003  ;;  %v1422_v19 = vrot.slane %v1420_v30, 1  ;;  %v819_v40 = vrot.slane %v817_v52, 1  ;;  %v5512_v25 = vld [vmem:[%s5647_s22 + $0xa4] ss:$0 sps:$4 sm:$0x11]   ;;  %v1437_v31 = vshrl.u32 %v5511_v21, 16 }
  0xb7   : > { %3042 = vst.msk [vmem:[#allocation2 + $0xb8] sm:$0xff] %vm1517_vm5, %v6022_v35  ;;  %v779_v33 = vor.u32 %v778_v26, %v774_v55  ;;  %v5495_v35 = vld [vmem:[%s5647_s22 + $0x60] sm:$0xff]   ;;  %v1429_v55 = vrot.slane %v1427_v34, 1  ;;  %v1434_v37 = vrot.slane %v1432_v28, 1  ;;  %v5513_v34 = vld [vmem:[%s5647_s22 + $0xa8] sm:$0xff]   ;;  %v5517_v50 = vld [vmem:[%s5647_s22 + $0xb4] sm:$0xff]  }
  0xb8   : > { %v6032_v39 = vpop.permute.xlu1 %2257  ;;  %v1860_v6 = vshrl.u32 %v5495_v35, 16  ;;  %v1862_v7 = vshll.u32 %v5495_v35, 16 }
  0xb9   : > { %v784_v61 = vsel %vm652_vm1, %v779_v33, %v783_v46  ;;  %867 = vrot.lane.b32.xlu1 %v796_v0, %s5594_s24  ;;  %2296 = vst.msk [vmem:[#allocation2 + $0xd0] sm:$0xff] %vm893_vm3, %v6032_v39  ;;  %v5502_v39 = vld [vmem:[%s5647_s22 + $0x98] ss:$0 sps:$4 sm:$0x11]   ;;  %v1430_v11 = vor.u32 %v1429_v55, %v1425_v32  ;;  %v800_v46 = vshll.u32 %v5501_v2, 16  ;;  %v1439_v32 = vshll.u32 %v5511_v21, 16 }
  0xba   : > { %v6036_v45 = vpop.permute.xlu0 %2255  ;;  %865 = vrot.lane.b32.xlu0 %v784_v61, %s5594_s24  ;;  %v1864_v20 = vrot.slane %v1862_v7, 1  ;;  %v805_v47 = vshll.u32 %v5502_v39, 16  ;;  %v5508_v61 = vld [vmem:[%s5647_s22 + $0x8c] ss:$0 sps:$4 sm:$0x11]  }
  0xbb   : > { %v802_v51 = vrot.slane %v800_v46, 1  ;;  %v1903_v8 = vshll.u32 %v5508_v61, 16  ;;  %v5514_v55 = vld [vmem:[%s5647_s22 + $0xb0] ss:$0 sps:$4 sm:$0x11]   ;;  %v1441_v39 = vrot.slane %v1439_v32, 1 }
  0xbc   : > { %v6047_v59 = vpop.permute.xlu1 %2684  ;;  %v1865_v29 = vor.u32 %v1864_v20, %v1860_v6  ;;  %v6125_v4 = vld [vmem:[#allocation2 + $0xc0] sm:$0xff]  ;;  %v807_v35 = vrot.slane %v805_v47, 1  ;;  %v1886_v20 = vshll.u32 %v5509_v9, 16  ;;  %v1456_v46 = vshll.u32 %v5514_v55, 16  ;;  %v5519_v9 = vld [vmem:[%s5647_s22 + $0xb4] sm:$0xff]  }
  0xbd   : > { %1065 = vrot.lane.b32.xlu1 %v5492_v62, %s5595_s25  ;;  %2720 = vst.msk [vmem:[#allocation2 + $0xd0] sm:$0xff] %vm1088_vm4, %v6047_v59  ;;  %v1423_v59 = vsel %vm652_vm1, %v1418_v58, %v1422_v19  ;;  %v803_v54 = vor.u32 %v802_v51, %v798_v44  ;;  %v1905_v14 = vrot.slane %v1903_v8, 1  ;;  %v1444_v19 = vshll.u32 %v5512_v25, 16  ;;  %v5525_v55 = vld [vmem:[%s5647_s22 + $0xb4] sm:$0xff]  }
  0xbe   : > { %v6053_v16 = vpop.permute.xlu0 %2682  ;;  %1063 = vrot.lane.b32.xlu0 %v5491_v53, %s5595_s25  ;;  %v6123_v38 = vld [vmem:[#allocation2 + $0xb8] sm:$0xff]  ;;  %v1870_v18 = vsel %vm652_vm1, %v1865_v29, %v1869_v24  ;;  %v5507_v53 = vld [vmem:[%s5647_s22 + $0x84] sm:$0xff]   ;;  %v1891_v24 = vshll.u32 %v5510_v10, 16  ;;  %v1888_v30 = vrot.slane %v1886_v20, 1  ;;  %v1442_v47 = vor.u32 %v1441_v39, %v1437_v31 }
  0xbf   : > { %5206 = vmatprep.mubr.msk.bf16.mxu1 %vm3118_vm6, %v6123_v38  ;;  %1980 = vst.msk [vmem:[#allocation2 + $0xc8] sm:$0xff] %vm449_vm2, %v1870_v18  ;;  %v1896_v62 = vshrl.u32 %v5507_v53, 16  ;;  %v1898_v0 = vshll.u32 %v5507_v53, 16  ;;  %v808_v3 = vsel %vm652_vm1, %v803_v54, %v807_v35  ;;  %v1446_v44 = vrot.slane %v1444_v19, 1  ;;  %v5520_v20 = vld [vmem:[%s5839_s29] sm:$0xff]  }
  0xc0   : > { %v6057_v13 = vpop.permute.xlu1 %3009  ;;  %5207 = vmatmul.mubr.msk.bf16.gmra.mrb[12].mxu1 %vm3118_vm6, %v6125_v4  ;;  %2295 = vst.msk [vmem:[#allocation2 + $0xc8] sm:$0xff] %vm893_vm3, %v6036_v45  ;;  %v1435_v45 = vsel %vm652_vm1, %v1430_v11, %v1434_v37  ;;  %v1893_v18 = vrot.slane %v1891_v24, 1  ;;  %v1889_v2 = vor.u32 %v1888_v30, %v1884_v15  ;;  %v1458_v35 = vrot.slane %v1456_v46, 1  ;;  %v5518_v54 = vld [vmem:[%s5647_s22 + $0xbc] ss:$0 sps:$4 sm:$0x11]  }
  0xc1   : > { %3045 = vst.msk [vmem:[#allocation2 + $0xd0] sm:$0xff] %vm1517_vm5, %v6057_v13  ;;  %v810_v13 = vshrl.u32 %v5503_v42, 16  ;;  %1494 = vrot.lane.b32.xlu1 %v1435_v45, %s5593_s23  ;;  %v1900_v7 = vrot.slane %v1898_v0, 1  ;;  %v1449_v42 = vshrl.u32 %v5513_v34, 16  ;;  %v5523_v30 = vld [vmem:[%s5647_s22 + $0x90] sm:$0xff]  }
  0xc2   : > { %v6062_v27 = vpop.permute.xlu0 %3007  ;;  %1492 = vrot.lane.b32.xlu0 %v1423_v59, %s5593_s23  ;;  %2719 = vst.msk [vmem:[#allocation2 + $0xc8] sm:$0xff] %vm1088_vm4, %v6053_v16  ;;  %v814_v16 = vrot.slane %v812_v43, 1  ;;  %v1451_v59 = vshll.u32 %v5513_v34, 16  ;;  %v5515_v43 = vld [vmem:[%s5647_s22 + $0xa8] sm:$0xff]   ;;  %v1910_v19 = vshll.u32 %v5523_v30, 16 }
  0xc3   : > { %3044 = vst.msk [vmem:[#allocation2 + $0xc8] sm:$0xff] %vm1517_vm5, %v6062_v27  ;;  %v1901_v12 = vor.u32 %v1900_v7, %v1896_v62  ;;  %v5516_v45 = vld [vmem:[%s5647_s22 + $0xb0] ss:$0 sps:$4 sm:$0x11]   ;;  %v822_v52 = vshrl.u32 %v5515_v43, 16  ;;  %v824_v53 = vshll.u32 %v5515_v43, 16 }
  0xc4   : > { %v6072_v36 = vpop.permute.xlu1 %2261  ;;  %v815_v56 = vor.u32 %v814_v16, %v810_v13  ;;  %v1453_v13 = vrot.slane %v1451_v59, 1  ;;  %v5522_v10 = vld [vmem:[%s5647_s22 + $0xa4] ss:$0 sps:$4 sm:$0x11]   ;;  %v1912_v46 = vrot.slane %v1910_v19, 1 }
  0xc5   : > { %v1906_v29 = vsel %vm652_vm1, %v1901_v12, %v1905_v14  ;;  %v826_v61 = vrot.slane %v824_v53, 1  ;;  %v5524_v31 = vld [vmem:[%s5647_s22 + $0x98] ss:$0 sps:$4 sm:$0x11]  }
  0xc6   : > { %v6085_v41 = vpop.permute.xlu0 %2259  ;;  %869 = vrot.lane.b32.xlu0 %v808_v3, %s5594_s24  ;;  %v820_v6 = vsel %vm652_vm1, %v815_v56, %v819_v40  ;;  %1983 = vst.msk [vmem:[#allocation2 + $0xe0] sm:$0xff] %vm449_vm2, %v1906_v29  ;;  %v1454_v16 = vor.u32 %v1453_v13, %v1449_v42  ;;  %v834_v56 = vshrl.u32 %v5517_v50, 16  ;;  %v836_v40 = vshll.u32 %v5517_v50, 16  ;;  %v5526_v42 = vld [vmem:[%s5647_s22 + $0xbc] ss:$0 sps:$4 sm:$0x11]  }
  0xc7   : > { %871 = vrot.lane.b32.xlu1 %v820_v6, %s5594_s24  ;;  %2298 = vst.msk [vmem:[#allocation2 + $0xe0] sm:$0xff] %vm893_vm3, %v6072_v36  ;;  %v1894_v36 = vsel %vm652_vm1, %v1889_v2, %v1893_v18  ;;  %v841_v3 = vshll.u32 %v5518_v54, 16  ;;  %v827_v6 = vor.u32 %v826_v61, %v822_v52  ;;  %v1927_v29 = vshll.u32 %v5522_v10, 16  ;;  %v5527_v13 = vld [vmem:[%s5839_s29] sm:$0xff]  }
  0xc8   : > { %v6093_v48 = vpop.permute.xlu1 %2688  ;;  %v6189_v11 = vld [vmem:[#allocation2 + $0xd0] sm:$0xff]  ;;  %1982 = vst.msk [vmem:[#allocation2 + $0xd8] sm:$0xff] %vm449_vm2, %v1894_v36  ;;  %v838_v0 = vrot.slane %v836_v40, 1  ;;  %v1908_v18 = vshrl.u32 %v5523_v30, 16  ;;  %v1915_v39 = vshll.u32 %v5524_v31, 16  ;;  %v1461_v36 = vshrl.u32 %v5525_v55, 16 }
  0xc9   : > { %2722 = vst.msk [vmem:[#allocation2 + $0xe0] sm:$0xff] %vm1088_vm4, %v6093_v48  ;;  %v1447_v48 = vsel %vm652_vm1, %v1442_v47, %v1446_v44  ;;  %v843_v8 = vrot.slane %v841_v3, 1  ;;  %v1929_v34 = vrot.slane %v1927_v29, 1  ;;  %v1463_v47 = vshll.u32 %v5525_v55, 16  ;;  %v5536_v30 = vld [vmem:[%s5647_s22 + $0xa8] sm:$0xff]  }
  0xca   : > { %v6100_v60 = vpop.permute.xlu0 %2686  ;;  %1067 = vrot.lane.b32.xlu0 %v5505_v57, %s5595_s25  ;;  %v6183_v28 = vld [vmem:[#allocation2 + $0xc8] sm:$0xff]  ;;  %2297 = vst.msk [vmem:[#allocation2 + $0xd8] sm:$0xff] %vm893_vm3, %v6085_v41  ;;  %v1459_v41 = vsel %vm652_vm1, %v1454_v16, %v1458_v35  ;;  %v839_v7 = vor.u32 %v838_v0, %v834_v56  ;;  %v1917_v43 = vrot.slane %v1915_v39, 1  ;;  %v1556_v52 = vshrl.u32 %v5527_v13, 16  ;;  %v5529_v0 = vld [vmem:[%s5839_s29] sm:$0xfe]  }
  0xcb   : > { %1069 = vrot.lane.b32.xlu1 %v5506_v5, %s5595_s25  ;;  %5210 = vmatprep.mubr.msk.bf16.mxu1 %vm3118_vm6, %v6183_v28  ;;  %2721 = vst.msk [vmem:[#allocation2 + $0xd8] sm:$0xff] %vm1088_vm4, %v6100_v60  ;;  %v5521_v5 = vld [vmem:[%s5647_s22 + $0x9c] sm:$0xff]   ;;  %v5528_v50 = vld [vmem:[%s5839_s29 + $0x8] ss:$0 sps:$4 sm:$0x11]   ;;  %v1465_v16 = vrot.slane %v1463_v47, 1 }
  0xcc   : > { %v6104_v63 = vpop.permute.xlu1 %3013  ;;  %5211 = vmatmul.mubr.msk.bf16.gmra.mrb[16].mxu1 %vm3118_vm6, %v6189_v11  ;;  %v1920_v12 = vshrl.u32 %v5521_v5, 16  ;;  %v1922_v14 = vshll.u32 %v5521_v5, 16  ;;  %v844_v24 = vsel %vm652_vm1, %v839_v7, %v843_v8  ;;  %v1558_v53 = vshll.u32 %v5527_v13, 16  ;;  %v5530_v3 = vld [vmem:[%s5839_s29 + $0x8] ss:$0 sps:$4 sm:$0x11]  }
  0xcd   : > { %3047 = vst.msk [vmem:[#allocation2 + $0xe0] sm:$0xff] %vm1517_vm5, %v6104_v63  ;;  %v829_v63 = vshll.u32 %v5516_v45, 16  ;;  %v1468_v45 = vshll.u32 %v5526_v42, 16  ;;  %v1563_v40 = vshll.u32 %v5528_v50, 16  ;;  %v1466_v61 = vor.u32 %v1465_v16, %v1461_v36  ;;  %v5539_v39 = vld [vmem:[%s5647_s22 + $0xb4] sm:$0xff]  }
  0xce   : > { %v6111_v17 = vpop.permute.xlu0 %3011  ;;  %1496 = vrot.lane.b32.xlu0 %v1447_v48, %s5593_s23  ;;  %v1924_v25 = vrot.slane %v1922_v14, 1  ;;  %v1913_v48 = vor.u32 %v1912_v46, %v1908_v18  ;;  %v2314_v8 = vrot.slane %v5529_v0, 1  ;;  %v5534_v29 = vld [vmem:[%s5839_s29 + $0x14] ss:$0 sps:$4 sm:$0x11]   ;;  %v1946_v50 = vshll.u32 %v5539_v39, 16 }
  0xcf   : > { %3046 = vst.msk [vmem:[#allocation2 + $0xd8] sm:$0xff] %vm1517_vm5, %v6111_v17  ;;  %1498 = vrot.lane.b32.xlu1 %v1459_v41, %s5593_s23  ;;  %v831_v60 = vrot.slane %v829_v63, 1  ;;  %v1470_v56 = vrot.slane %v1468_v45, 1  ;;  %v1565_v5 = vrot.slane %v1563_v40, 1  ;;  %v3077_v55 = vrot.slane %v5534_v29, 1  ;;  %v5542_v0 = vld [vmem:[%s5647_s22 + $0x18] sm:$0xff]  }
  0xd0   : > { %v6114_v22 = vpop.permute.xlu1 %2265  ;;  %v1925_v32 = vor.u32 %v1924_v25, %v1920_v12  ;;  %v1918_v41 = vsel %vm652_vm1, %v1913_v48, %v1917_v43  ;;  %v5537_v42 = vld [vmem:[%s5647_s22 + $0xb0] ss:$0 sps:$4 sm:$0x11]   ;;  %v1944_v45 = vshrl.u32 %v5539_v39, 16  ;;  %v1948_v40 = vrot.slane %v1946_v50, 1  ;;  %452 = vst.msk [vmem:[#allocation2 + $0x10] sm:$0xff] %vm449_vm2, %v5542_v0 }
  0xd1   : > { %v832_v15 = vsel %vm652_vm1, %v827_v6, %v831_v60  ;;  %v1560_v60 = vrot.slane %v1558_v53, 1  ;;  %1984 = vst.msk [vmem:[#allocation2 + $0xe8] sm:$0xff] %vm449_vm2, %v1918_v41  ;;  %v5531_v6 = vld [vmem:[%s5839_s29 + $0xc] sm:$0xff]   ;;  %v1939_v43 = vshll.u32 %v5537_v42, 16  ;;  %v4024_v39 = vld [vmem:[#allocation2 + $0x98] sm:$0xff] }
  0xd2   : > { %v6127_v49 = vpop.permute.xlu0 %2263  ;;  %873 = vrot.lane.b32.xlu0 %v832_v15, %s5594_s24  ;;  %v1930_v44 = vsel %vm652_vm1, %v1925_v32, %v1929_v34  ;;  %v2761_v10 = vshrl.u32 %v5531_v6, 16  ;;  %v2763_v12 = vshll.u32 %v5531_v6, 16  ;;  %v5538_v34 = vld [vmem:[%s5647_s22] sm:$0xff]   ;;  %v5540_v48 = vld [vmem:[%s5647_s22 + $0xbc] ss:$0 sps:$4 sm:$0x11]  }
  0xd3   : > { %875 = vrot.lane.b32.xlu1 %v844_v24, %s5594_s24  ;;  %1985 = vst.msk [vmem:[#allocation2 + $0xf0] sm:$0xff] %vm449_vm2, %v1930_v44  ;;  %v1561_v7 = vor.u32 %v1560_v60, %v1556_v52  ;;  %v5533_v24 = vld [vmem:[%s5839_s29 + $0xc] sm:$0xfe]   ;;  %v1934_v44 = vshll.u32 %v5536_v30, 16  ;;  %450 = vst.msk [vmem:[#allocation2] sm:$0xff] %vm449_vm2, %v5538_v34  ;;  %v1949_v60 = vor.u32 %v1948_v40, %v1944_v45 }
  0xd4   : > { %v6145_v26 = vpop.permute.xlu1 %2692  ;;  %2300 = vst.msk [vmem:[#allocation2 + $0xf0] sm:$0xff] %vm893_vm3, %v6114_v22  ;;  %v6253_v63 = vld [vmem:[#allocation2 + $0xe0] sm:$0xff]  ;;  %2299 = vst.msk [vmem:[#allocation2 + $0xe8] sm:$0xff] %vm893_vm3, %v6127_v49  ;;  %v5535_v49 = vld [vmem:[%s7034_s2 + $0x18] sm:$0xff]   ;;  %v3076_v32 = vrot.slane %v5533_v24, 1 }
  0xd5   : > { %2724 = vst.msk [vmem:[#allocation2 + $0xf0] sm:$0xff] %vm1088_vm4, %v6145_v26  ;;  %v1471_v26 = vsel %vm652_vm1, %v1466_v61, %v1470_v56  ;;  %v1566_v15 = vsel %vm652_vm1, %v1561_v7, %v1565_v5  ;;  %5260 = vmatprep.subr.bf16.mxu1 %v5535_v49  ;;  %v1936_v13 = vrot.slane %v1934_v44, 1  ;;  %v1941_v56 = vrot.slane %v1939_v43, 1  ;;  %v5541_v41 = vld [vmem:[%s5647_s22 + $0xc] sm:$0xff]   ;;  %v5544_v5 = vld [vmem:[%s5647_s22 + $0x24] sm:$0xff]  }
  0xd6   : > { %v6154_v33 = vpop.permute.xlu0 %2690  ;;  %1071 = vrot.lane.b32.xlu0 %v5519_v9, %s5595_s25  ;;  %v6247_v35 = vld [vmem:[#allocation2 + $0xd8] sm:$0xff]  ;;  %v2315_v9 = vrot.slane %v5530_v3, 1  ;;  %5261 = vmatpush3.bf16.msra.mxu1 %v5535_v49  ;;  %v3078_v36 = vsel %vm2190_vm0, %v3076_v32, %v3077_v55  ;;  %451 = vst.msk [vmem:[#allocation2 + $0x8] sm:$0xff] %vm449_vm2, %v5541_v41  ;;  %453 = vst.msk [vmem:[#allocation2 + $0x18] sm:$0xff] %vm449_vm2, %v5544_v5  ;;  %v5555_v29 = vld [vmem:[%s5647_s22 + $0xa8] sm:$0xff]  }
  0xd7   : > { %1118 = vrot.lane.b32.xlu1 %v5520_v20, %s5595_s25  ;;  %5214 = vmatprep.mubr.msk.bf16.mxu1 %vm3118_vm6, %v6247_v35  ;;  %2723 = vst.msk [vmem:[#allocation2 + $0xe8] sm:$0xff] %vm1088_vm4, %v6154_v33  ;;  %v2765_v33 = vrot.slane %v2763_v12, 1  ;;  %v5557_v32 = vld [vmem:[%s5839_s29] sm:$0xff]   ;;  %v5558_v34 = vld [vmem:[%s5839_s29 + $0x8] ss:$0 sps:$4 sm:$0x11]  }
  0xd8   : > { %v6160_v27 = vpop.permute.xlu1 %3017  ;;  %5215 = vmatmul.mubr.msk.bf16.gmra.mrb[20].mxu1 %vm3118_vm6, %v6253_v63  ;;  %v2316_v20 = vsel %vm2190_vm0, %v2314_v8, %v2315_v9  ;;  %v5550_v8 = vld [vmem:[%s5647_s22 + $0x6c] sm:$0xff]   ;;  %v5551_v9 = vld [vmem:[%s5647_s22 + $0x78] sm:$0xff]   ;;  %464 = vst.msk [vmem:[#allocation2 + $0x70] sm:$0xff] %vm449_vm2, %v5555_v29  ;;  %v2000_v55 = vshrl.u32 %v5557_v32, 16  ;;  %v2007_v42 = vshll.u32 %v5558_v34, 16 }
  0xd9   : > { %3049 = vst.msk [vmem:[#allocation2 + $0xf0] sm:$0xff] %vm1517_vm5, %v6160_v27  ;;  %v5532_v27 = vld [vmem:[%s5839_s29 + $0x14] ss:$0 sps:$4 sm:$0x11]   ;;  %v2766_v18 = vor.u32 %v2765_v33, %v2761_v10  ;;  %v5554_v33 = vld [vmem:[%s5647_s22 + $0x9c] sm:$0xff]   ;;  %v5561_v43 = vld [vmem:[%s5839_s29 + $0xc] sm:$0xff]  }
  0xda   : > { %v6162_v1 = vpop.permute.xlu0 %3015  ;;  %1500 = vrot.lane.b32.xlu0 %v1471_v26, %s5593_s23  ;;  %v2768_v25 = vshll.u32 %v5532_v27, 16  ;;  %v5545_v26 = vld [vmem:[%s5647_s22 + $0x30] sm:$0xff]   ;;  %459 = vst.msk [vmem:[#allocation2 + $0x48] sm:$0xff] %vm449_vm2, %v5550_v8  ;;  %v5552_v27 = vld [vmem:[%s5647_s22 + $0x84] sm:$0xff]   ;;  %460 = vst.msk [vmem:[#allocation2 + $0x50] sm:$0xff] %vm449_vm2, %v5551_v9  ;;  %v2009_v50 = vrot.slane %v2007_v42, 1 }
  0xdb   : > { %3048 = vst.msk [vmem:[#allocation2 + $0xe8] sm:$0xff] %vm1517_vm5, %v6162_v1  ;;  %1579 = vrot.lane.b32.xlu1 %v1566_v15, %s5593_s23  ;;  %v1932_v1 = vshrl.u32 %v5536_v30, 16  ;;  %v4023_v15 = vld [vmem:[#allocation2 + $0x90] sm:$0xff]  ;;  %v5560_v44 = vld [vmem:[%s5839_s29 + $0x8] ss:$0 sps:$4 sm:$0x11]  }
  0xdc   : > { %v6178_v58 = vpop.permute.xlu1 %845  ;;  %v2770_v19 = vrot.slane %v2768_v25, 1  ;;  %454 = vst.msk [vmem:[#allocation2 + $0x20] sm:$0xff] %vm449_vm2, %v5545_v26  ;;  %461 = vst.msk [vmem:[#allocation2 + $0x58] sm:$0xff] %vm449_vm2, %v5552_v27  ;;  %v5564_v40 = vld [vmem:[%s7034_s2 + $0x10] sm:$0xff]  }
  0xdd   : > { %894 = vst.msk [vmem:[#allocation2] sm:$0xff] %vm893_vm3, %v6178_v58  ;;  %v1937_v53 = vor.u32 %v1936_v13, %v1932_v1  ;;  %v2002_v1 = vshll.u32 %v5557_v32, 16  ;;  %v5563_v0 = vld [vmem:[%s5839_s29 + $0x14] ss:$0 sps:$4 sm:$0x11]  }
  0xde   : > { %v6172_v23 = vpop.permute.xlu0 %2267  ;;  %2317 = vrot.lane.b32.xlu0 %v2316_v20, %s5594_s24  ;;  %v2771_v46 = vsel %vm652_vm1, %v2766_v18, %v2770_v19  ;;  %463 = vst.msk [vmem:[#allocation2 + $0x68] sm:$0xff] %vm449_vm2, %v5554_v33  ;;  %v5559_v18 = vld [vmem:[%s5839_s29] sm:$0xff]   ;;  %v5567_v8 = vld [vmem:[#allocation2 + $0xb0] sm:$0xff] }
  0xdf   : > { %2774 = vrot.lane.b32.xlu1 %v2771_v46, %s5595_s25  ;;  %v1942_v61 = vsel %vm652_vm1, %v1937_v53, %v1941_v56  ;;  %v922_v46 = vshrl.u32 %v5559_v18, 16  ;;  %v2004_v13 = vrot.slane %v2002_v1, 1  ;;  %v5562_v53 = vld [vmem:[%s5839_s29 + $0xc] sm:$0xff]  }
  0xe0   : > { %v6203_v51 = vpop.permute.xlu1 %2694  ;;  %v6306_v52 = vld [vmem:[#allocation2 + $0xf0] sm:$0xff]  ;;  %1986 = vst.msk [vmem:[#allocation2 + $0xf8] sm:$0xff] %vm449_vm2, %v1942_v61  ;;  %v1570_v5 = vshll.u32 %v5562_v53, 16 }
  0xe1   : > { %2301 = vst.msk [vmem:[#allocation2 + $0xf8] sm:$0xff] %vm893_vm3, %v6172_v23  ;;  %v2005_v56 = vor.u32 %v2004_v13, %v2000_v55  ;;  %v5565_v55 = vld [vmem:[%s5839_s29] sm:$0xff]  }
  0xe2   : > { %v6191_v37 = vpop.permute.xlu0 %2269  ;;  %3081 = vrot.lane.b32.xlu0 %v3078_v36, %s5593_s23  ;;  %v6304_v16 = vld [vmem:[#allocation2 + $0xe8] sm:$0xff]  ;;  %2725 = vst.msk [vmem:[#allocation2 + $0xf8] sm:$0xff] %vm1088_vm4, %v6203_v51  ;;  %v924_v36 = vshll.u32 %v5559_v18, 16 }
  0xe3   : > { %5218 = vmatprep.mubr.msk.bf16.mxu1 %vm3118_vm6, %v6304_v16  ;;  %475 = vst.msk [vmem:[#allocation2 + $0x80] sm:$0xff] %vm449_vm2, %v5565_v55 }
  0xe4   : > { %v6218_v62 = vpop.permute.xlu1 %1043  ;;  %5219 = vmatmul.mubr.msk.bf16.gmra.mrb[24].mxu1 %vm3118_vm6, %v6306_v52 }
  0xe5   : > { %1089 = vst.msk [vmem:[#allocation2] sm:$0xff] %vm1088_vm4, %v6218_v62  ;;  %v1951_v62 = vshll.u32 %v5540_v48, 16  ;;  %v926_v48 = vrot.slane %v924_v36, 1 }
  0xe6   : > { %v6213_v57 = vpop.permute.xlu0 %847  ;;  %1120 = vrot.lane.b32.xlu0 %v5561_v43, %s5595_s25 }
  0xe7   : > { %v1953_v3 = vrot.slane %v1951_v62, 1  ;;  %895 = vst.msk [vmem:[#allocation2 + $0x8] sm:$0xff] %vm893_vm3, %v6213_v57  ;;  %v5546_v57 = vld [vmem:[%s5647_s22 + $0x3c] sm:$0xff]   ;;  %v927_v61 = vor.u32 %v926_v48, %v922_v46 }
  0xe8   : > { %v6228_v21 = vpop.permute.xlu1 %3019  ;;  %455 = vst.msk [vmem:[#allocation2 + $0x28] sm:$0xff] %vm449_vm2, %v5546_v57 }
  0xe9   : > { %v1954_v7 = vsel %vm652_vm1, %v1949_v60, %v1953_v3  ;;  %3050 = vst.msk [vmem:[#allocation2 + $0xf8] sm:$0xff] %vm1517_vm5, %v6228_v21  ;;  %v5547_v21 = vld [vmem:[%s5647_s22 + $0x48] sm:$0xff]   ;;  %v1568_v3 = vshrl.u32 %v5562_v53, 16 }
  0xea   : > { %v6224_v17 = vpop.permute.xlu0 %2772  ;;  %1987 = vst.msk [vmem:[#allocation2 + $0x100] sm:$0xff] %vm449_vm2, %v1954_v7  ;;  %456 = vst.msk [vmem:[#allocation2 + $0x30] sm:$0xff] %vm449_vm2, %v5547_v21  ;;  %v1575_v7 = vshll.u32 %v5563_v0, 16 }
  0xeb   : > { %2302 = vst.msk [vmem:[#allocation2 + $0x100] sm:$0xff] %vm893_vm3, %v6191_v37 }
  0xec   : > { %v6239_v59 = vpop.permute.xlu1 %1472  ;;  %2779 = vst.msk [vmem:[#allocation2 + $0x100] sm:$0xff] %vm1088_vm4, %v6224_v17  ;;  %v1577_v21 = vrot.slane %v1575_v7, 1 }
  0xed   : > { %1518 = vst.msk [vmem:[#allocation2] sm:$0xff] %vm1517_vm5, %v6239_v59  ;;  %v5543_v59 = vld [vmem:[%s7034_s2] sm:$0xff]  }
  0xee   : > { %v6236_v2 = vpop.permute.xlu0 %1045  ;;  %5158 = vmatprep.subr.bf16.mxu0 %v5543_v59 }
  0xef   : > { %1090 = vst.msk [vmem:[#allocation2 + $0x8] sm:$0xff] %vm1088_vm4, %v6236_v2  ;;  %5159 = vmatpush3.bf16.msra.mxu0 %v5543_v59  ;;  %v5548_v2 = vld [vmem:[%s5647_s22 + $0x54] sm:$0xff]   ;;  %v2010_v59 = vsel %vm652_vm1, %v2005_v56, %v2009_v50  ;;  %v6529_v56 = vld [vmem:[%s7035_s3] ss:$0 sm:$0xff] }
  0xf0   : > { %v6261_v22 = vpop.permute.xlu1 %1474  ;;  %457 = vst.msk [vmem:[#allocation2 + $0x38] sm:$0xff] %vm449_vm2, %v5548_v2  ;;  %5226 = vmatprep.subr.bf16.mxu0 %v5564_v40  ;;  %2013 = vst.msk [vmem:[#allocation2 + $0x108] sm:$0xff] %vm449_vm2, %v2010_v59 }
  0xf1   : > { %1519 = vst.msk [vmem:[#allocation2 + $0x8] sm:$0xff] %vm1517_vm5, %v6261_v22  ;;  %v5549_v22 = vld [vmem:[%s5647_s22 + $0x60] sm:$0xff]  }
  0xf2   : > { %v6255_v54 = vpop.permute.xlu0 %3079  ;;  %458 = vst.msk [vmem:[#allocation2 + $0x40] sm:$0xff] %vm449_vm2, %v5549_v22 }
  0xf3   : > { %3085 = vst.msk [vmem:[#allocation2 + $0x100] sm:$0xff] %vm1517_vm5, %v6255_v54  ;;  %v6369_v54 = vld [vmem:[#allocation2 + $0xf8] sm:$0xff] }
  0xf4   : > { %v852_v31 = vpop.permute.xlu1 %851  ;;  %v3088_v51 = vld [vmem:[#allocation2] sm:$0xff]  ;;  %5222 = vmatprep.mubr.msk.bf16.mxu1 %vm3118_vm6, %v6369_v54 }
  0xf5   : > { %897 = vst.msk [vmem:[#allocation2 + $0x18] sm:$0xff] %vm893_vm3, %v852_v31  ;;  %5160 = vmatprep.mubr.msk.bf16.mxu0 %vm3118_vm6, %v3088_v51  ;;  %v5556_v31 = vld [vmem:[%s5647_s22 + $0xb4] sm:$0xff]   ;;  %v1572_v51 = vrot.slane %v1570_v5, 1 }
  0xf6   : > { %v6280_v14 = vpop.permute.xlu0 %849  ;;  %465 = vst.msk [vmem:[#allocation2 + $0x78] sm:$0xff] %vm449_vm2, %v5556_v31 }
  0xf7   : > { %896 = vst.msk [vmem:[#allocation2 + $0x10] sm:$0xff] %vm893_vm3, %v6280_v14  ;;  %v5553_v14 = vld [vmem:[%s5647_s22 + $0x90] sm:$0xff]   ;;  %v1573_v2 = vor.u32 %v1572_v51, %v1568_v3 }
  0xf8   : > { %v1050_v58 = vpop.permute.xlu1 %1049  ;;  %v6371_v10 = vld [vmem:[#allocation2 + $0x8] sm:$0xff]  ;;  %462 = vst.msk [vmem:[#allocation2 + $0x60] sm:$0xff] %vm449_vm2, %v5553_v14 }
  0xf9   : > { %1092 = vst.msk [vmem:[#allocation2 + $0x18] sm:$0xff] %vm1088_vm4, %v1050_v58  ;;  %5161 = vmatmul.mubr.msk.bf16.vlgmr.msra.gmra.mrb[0].mxu0 %vm3118_vm6, %v6371_v10  ;;  %v929_v58 = vshll.u32 %v5560_v44, 16  ;;  %v1578_v22 = vsel %vm652_vm1, %v1573_v2, %v1577_v21 }
  0xfa   : > { %v1048_v47 = vpop.permute.xlu0 %1047  ;;  %v6385_v24 = vld [vmem:[#allocation2 + $0x100] sm:$0xff]  ;;  %5227 = vmatpush3.bf16.msra.mxu0 %v5564_v40 }
  0xfb   : > { %1091 = vst.msk [vmem:[#allocation2 + $0x10] sm:$0xff] %vm1088_vm4, %v1048_v47  ;;  %5223 = vmatmul.mubr.msk.bf16.gmra.mrb[28].mxu1 %vm3118_vm6, %v6385_v24  ;;  %v4025_v47 = vld [vmem:[#allocation2 + $0xa0] sm:$0xff]  ;;  %v931_v60 = vrot.slane %v929_v58, 1 }
  0xfc   : > { %v1479_v23 = vpop.permute.xlu1 %1478  ;;  %5262 = vmatprep.mubr.msk.bf16.mxu1 %vm3118_vm6, %v4023_v15 }
  0xfd   : > { %1521 = vst.msk [vmem:[#allocation2 + $0x18] sm:$0xff] %vm1517_vm5, %v1479_v23  ;;  %v932_v26 = vsel %vm652_vm1, %v927_v61, %v931_v60 }
  0xfe   : > { %v1477_v6 = vpop.permute.xlu0 %1476  ;;  %933 = vrot.lane.b32.xlu1 %v932_v26, %s5594_s24 }
  0xff   : > { %1520 = vst.msk [vmem:[#allocation2 + $0x10] sm:$0xff] %vm1517_vm5, %v1477_v6 }
 0x102   : > { %v854_v37 = vpop.permute.xlu0 %853  ;;  %1581 = vrot.lane.b32.xlu1 %v1578_v22, %s5593_s23 }
 0x103   : > { %898 = vst.msk [vmem:[#allocation2 + $0x20] sm:$0xff] %vm893_vm3, %v854_v37  ;;  %5263 = vmatmul.mubr.msk.bf16.vlgmr.msra.gmra.mrb[32].mxu1 %vm3118_vm6, %v4024_v39  ;;  %v5566_v37 = vld [vmem:[#allocation2 + $0xa8] sm:$0xff] }
 0x104   : > { %v6392_v25 = vld [vmem:[#allocation2 + $0x18] sm:$0xff]  ;;  %5266 = vmatprep.mubr.msk.bf16.mxu1 %vm3118_vm6, %v4025_v47 }
 0x106   : > { %v856_v17 = vpop.permute.xlu1 %855  ;;  %v1052_v12 = vpop.permute.xlu0 %1051  ;;  %v6379_v49 = vld [vmem:[#allocation2 + $0x10] sm:$0xff] }
 0x107   : > { %899 = vst.msk [vmem:[#allocation2 + $0x28] sm:$0xff] %vm893_vm3, %v856_v17  ;;  %5164 = vmatprep.mubr.msk.bf16.mxu0 %vm3118_vm6, %v6379_v49 }
 0x108   : > { %1093 = vst.msk [vmem:[#allocation2 + $0x20] sm:$0xff] %vm1088_vm4, %v1052_v12  ;;  %5165 = vmatmul.mubr.msk.bf16.gmra.mrb[4].mxu0 %vm3118_vm6, %v6392_v25 }
 0x10a   : > { %v1054_v20 = vpop.permute.xlu1 %1053  ;;  %v1481_v30 = vpop.permute.xlu0 %1480 }
 0x10b   : > { %1094 = vst.msk [vmem:[#allocation2 + $0x28] sm:$0xff] %vm1088_vm4, %v1054_v20  ;;  %5267 = vmatmul.mubr.msk.bf16.gmra.mrb[36].mxu1 %vm3118_vm6, %v5566_v37 }
 0x10c   : > { %1522 = vst.msk [vmem:[#allocation2 + $0x20] sm:$0xff] %vm1517_vm5, %v1481_v30  ;;  %5270 = vmatprep.mubr.msk.bf16.mxu1 %vm3118_vm6, %v5567_v8 }
 0x10e   : > { %v1483_v19 = vpop.permute.xlu1 %1482 }
 0x10f   : > { %1523 = vst.msk [vmem:[#allocation2 + $0x28] sm:$0xff] %vm1517_vm5, %v1483_v19 }
 0x110   : > { %v858_v45 = vpop.permute.xlu0 %857 }
 0x111   : > { %900 = vst.msk [vmem:[#allocation2 + $0x30] sm:$0xff] %vm893_vm3, %v858_v45 }
 0x113   : > { %v860_v62 = vpop.permute.xlu1 %859  ;;  %v6417_v41 = vld [vmem:[#allocation2 + $0x20] sm:$0xff]  ;;  %5271 = vmatmul.mubr.msk.bf16.gmra.mrb[40].mxu1 %vm3118_vm6, %v6123_v38 }
 0x114   : > { %901 = vst.msk [vmem:[#allocation2 + $0x38] sm:$0xff] %vm893_vm3, %v860_v62  ;;  %5168 = vmatprep.mubr.msk.bf16.mxu0 %vm3118_vm6, %v6417_v41  ;;  %v1056_v6 = vpop.permute.xlu0 %1055  ;;  %5274 = vmatprep.mubr.msk.bf16.mxu1 %vm3118_vm6, %v6125_v4 }
 0x115   : > { %1095 = vst.msk [vmem:[#allocation2 + $0x30] sm:$0xff] %vm1088_vm4, %v1056_v6 }
 0x116   : > { %v6427_v23 = vld [vmem:[#allocation2 + $0x28] sm:$0xff] }
 0x117   : > { %v1058_v57 = vpop.permute.xlu1 %1057  ;;  %5169 = vmatmul.mubr.msk.bf16.gmra.mrb[8].mxu0 %vm3118_vm6, %v6427_v23 }
 0x118   : > { %1096 = vst.msk [vmem:[#allocation2 + $0x38] sm:$0xff] %vm1088_vm4, %v1058_v57  ;;  %v1485_v17 = vpop.permute.xlu0 %1484 }
 0x119   : > { %1524 = vst.msk [vmem:[#allocation2 + $0x30] sm:$0xff] %vm1517_vm5, %v1485_v17 }
 0x11b   : > { %v1487_v9 = vpop.permute.xlu1 %1486  ;;  %5275 = vmatmul.mubr.msk.bf16.gmra.mrb[44].mxu1 %vm3118_vm6, %v6183_v28 }
 0x11c   : > { %1525 = vst.msk [vmem:[#allocation2 + $0x38] sm:$0xff] %vm1517_vm5, %v1487_v9  ;;  %5278 = vmatprep.mubr.msk.bf16.mxu1 %vm3118_vm6, %v6189_v11 }
 0x11e   : > { %v862_v27 = vpop.permute.xlu0 %861 }
 0x11f   : > { %902 = vst.msk [vmem:[#allocation2 + $0x40] sm:$0xff] %vm893_vm3, %v862_v27  ;;  %v864_v12 = vpop.permute.xlu1 %863 }
 0x120   : > { %v6444_v14 = vld [vmem:[#allocation2 + $0x30] sm:$0xff]  ;;  %903 = vst.msk [vmem:[#allocation2 + $0x48] sm:$0xff] %vm893_vm3, %v864_v12 }
 0x121   : > { %5172 = vmatprep.mubr.msk.bf16.mxu0 %vm3118_vm6, %v6444_v14 }
 0x122   : > { %v1060_v15 = vpop.permute.xlu0 %1059 }
 0x123   : > { %1097 = vst.msk [vmem:[#allocation2 + $0x40] sm:$0xff] %vm1088_vm4, %v1060_v15  ;;  %v6450_v20 = vld [vmem:[#allocation2 + $0x38] sm:$0xff]  ;;  %v1062_v38 = vpop.permute.xlu1 %1061  ;;  %5279 = vmatmul.mubr.msk.bf16.gmra.mrb[48].mxu1 %vm3118_vm6, %v6247_v35 }
 0x124   : > { %5173 = vmatmul.mubr.msk.bf16.gmra.mrb[12].mxu0 %vm3118_vm6, %v6450_v20  ;;  %1098 = vst.msk [vmem:[#allocation2 + $0x48] sm:$0xff] %vm1088_vm4, %v1062_v38  ;;  %5282 = vmatprep.mubr.msk.bf16.mxu1 %vm3118_vm6, %v6253_v63 }
 0x126   : > { %v1489_v4 = vpop.permute.xlu0 %1488 }
 0x127   : > { %1526 = vst.msk [vmem:[#allocation2 + $0x40] sm:$0xff] %vm1517_vm5, %v1489_v4  ;;  %v1491_v33 = vpop.permute.xlu1 %1490 }
 0x128   : > { %1527 = vst.msk [vmem:[#allocation2 + $0x48] sm:$0xff] %vm1517_vm5, %v1491_v33 }
 0x12b   : > { %v868_v28 = vpop.permute.xlu1 %867  ;;  %5283 = vmatmul.mubr.msk.bf16.gmra.mrb[52].mxu1 %vm3118_vm6, %v6304_v16 }
 0x12c   : > { %v866_v29 = vpop.permute.xlu0 %865  ;;  %905 = vst.msk [vmem:[#allocation2 + $0x58] sm:$0xff] %vm893_vm3, %v868_v28  ;;  %5286 = vmatprep.mubr.msk.bf16.mxu1 %vm3118_vm6, %v6306_v52 }
 0x12d   : > { %904 = vst.msk [vmem:[#allocation2 + $0x50] sm:$0xff] %vm893_vm3, %v866_v29 }
 0x12e   : > { %v6466_v30 = vld [vmem:[#allocation2 + $0x40] sm:$0xff] }
 0x12f   : > { %5176 = vmatprep.mubr.msk.bf16.mxu0 %vm3118_vm6, %v6466_v30  ;;  %v6471_v11 = vld [vmem:[#allocation2 + $0x48] sm:$0xff]  ;;  %v1066_v35 = vpop.permute.xlu1 %1065 }
 0x130   : > { %v1064_v31 = vpop.permute.xlu0 %1063  ;;  %5177 = vmatmul.mubr.msk.bf16.gmra.mrb[16].mxu0 %vm3118_vm6, %v6471_v11  ;;  %1100 = vst.msk [vmem:[#allocation2 + $0x58] sm:$0xff] %vm1088_vm4, %v1066_v35 }
 0x131   : > { %1099 = vst.msk [vmem:[#allocation2 + $0x50] sm:$0xff] %vm1088_vm4, %v1064_v31 }
 0x133   : > { %v1495_v32 = vpop.permute.xlu1 %1494  ;;  %5287 = vmatmul.mubr.msk.bf16.gmra.mrb[56].mxu1 %vm3118_vm6, %v6369_v54 }
 0x134   : > { %v1493_v63 = vpop.permute.xlu0 %1492  ;;  %1529 = vst.msk [vmem:[#allocation2 + $0x58] sm:$0xff] %vm1517_vm5, %v1495_v32  ;;  %5290 = vmatprep.mubr.msk.bf16.mxu1 %vm3118_vm6, %v6385_v24 }
 0x135   : > { %1528 = vst.msk [vmem:[#allocation2 + $0x50] sm:$0xff] %vm1517_vm5, %v1493_v63 }
 0x138   : > { %v870_v16 = vpop.permute.xlu0 %869 }
 0x139   : > { %906 = vst.msk [vmem:[#allocation2 + $0x60] sm:$0xff] %vm893_vm3, %v870_v16  ;;  %v872_v34 = vpop.permute.xlu1 %871 }
 0x13a   : > { %907 = vst.msk [vmem:[#allocation2 + $0x68] sm:$0xff] %vm893_vm3, %v872_v34 }
 0x13b   : > { %v6493_v52 = vld [vmem:[#allocation2 + $0x58] sm:$0xff] }
 0x13c   : > { %v6488_v18 = vld [vmem:[#allocation2 + $0x50] sm:$0xff]  ;;  %v1068_v19 = vpop.permute.xlu0 %1067 }
 0x13d   : > { %5180 = vmatprep.mubr.msk.bf16.mxu0 %vm3118_vm6, %v6488_v18  ;;  %1101 = vst.msk [vmem:[#allocation2 + $0x60] sm:$0xff] %vm1088_vm4, %v1068_v19  ;;  %v1070_v54 = vpop.permute.xlu1 %1069 }
 0x13e   : > { %5181 = vmatmul.mubr.msk.bf16.gmra.mrb[20].mxu0 %vm3118_vm6, %v6493_v52  ;;  %1102 = vst.msk [vmem:[#allocation2 + $0x68] sm:$0xff] %vm1088_vm4, %v1070_v54 }
 0x140   : > { %v1497_v24 = vpop.permute.xlu0 %1496 }
 0x141   : > { %1530 = vst.msk [vmem:[#allocation2 + $0x60] sm:$0xff] %vm1517_vm5, %v1497_v24  ;;  %v1499_v1 = vpop.permute.xlu1 %1498 }
 0x142   : > { %1531 = vst.msk [vmem:[#allocation2 + $0x68] sm:$0xff] %vm1517_vm5, %v1499_v1 }
 0x144   : > { %v874_v39 = vpop.permute.xlu0 %873 }
 0x145   : > { %908 = vst.msk [vmem:[#allocation2 + $0x70] sm:$0xff] %vm893_vm3, %v874_v39  ;;  %v876_v42 = vpop.permute.xlu1 %875 }
 0x146   : > { %909 = vst.msk [vmem:[#allocation2 + $0x78] sm:$0xff] %vm893_vm3, %v876_v42 }
 0x148   : > { %v6505_v44 = vld [vmem:[#allocation2 + $0x60] sm:$0xff]  ;;  %v1072_v46 = vpop.permute.xlu0 %1071 }
 0x149   : > { %5184 = vmatprep.mubr.msk.bf16.mxu0 %vm3118_vm6, %v6505_v44  ;;  %v6509_v36 = vld [vmem:[#allocation2 + $0x68] sm:$0xff]  ;;  %1103 = vst.msk [vmem:[#allocation2 + $0x70] sm:$0xff] %vm1088_vm4, %v1072_v46  ;;  %v1119_v47 = vpop.permute.xlu1 %1118 }
 0x14a   : > { %5185 = vmatmul.mubr.msk.bf16.gmra.mrb[24].mxu0 %vm3118_vm6, %v6509_v36  ;;  %1125 = vst.msk [vmem:[#allocation2 + $0x78] sm:$0xff] %vm1088_vm4, %v1119_v47 }
 0x14c   : > { %v1501_v13 = vpop.permute.xlu0 %1500 }
 0x14d   : > { %1532 = vst.msk [vmem:[#allocation2 + $0x70] sm:$0xff] %vm1517_vm5, %v1501_v13  ;;  %v1580_v43 = vpop.permute.xlu1 %1579 }
 0x14e   : > { %1585 = vst.msk [vmem:[#allocation2 + $0x78] sm:$0xff] %vm1517_vm5, %v1580_v43 }
 0x150   : > { %v2318_v45 = vpop.permute.xlu0 %2317 }
 0x151   : > { %2320 = vst.msk [vmem:[#allocation2 + $0x108] sm:$0xff] %vm893_vm3, %v2318_v45  ;;  %v2775_v50 = vpop.permute.xlu1 %2774 }
 0x152   : > { %2780 = vst.msk [vmem:[#allocation2 + $0x108] sm:$0xff] %vm1088_vm4, %v2775_v50 }
 0x154   : > { %v3082_v48 = vpop.permute.xlu0 %3081  ;;  %v6519_v58 = vld [vmem:[#allocation2 + $0x70] sm:$0xff] }
 0x155   : > { %3086 = vst.msk [vmem:[#allocation2 + $0x108] sm:$0xff] %vm1517_vm5, %v3082_v48  ;;  %5188 = vmatprep.mubr.msk.bf16.mxu0 %vm3118_vm6, %v6519_v58  ;;  %v6524_v53 = vld [vmem:[#allocation2 + $0x78] sm:$0xff] }
 0x156   : > { %5189 = vmatmul.mubr.msk.bf16.gmra.mrb[28].mxu0 %vm3118_vm6, %v6524_v53 }
 0x157   : > { %5228 = vmatprep.mubr.msk.bf16.mxu0 %vm3118_vm6, %v6371_v10 }
 0x15c   : > { %v4038_v3 = vld [vmem:[#allocation2 + $0x108] sm:$0xff] }
 0x15d   : > { %5291 = vmatmul.mubr.msk.bf16.gmra.mrb[60].mxu1 %vm3118_vm6, %v4038_v3 }
 0x15e   : > { %5229 = vmatmul.mubr.msk.bf16.vlgmr.msra.gmra.mrb[32].mxu0 %vm3118_vm6, %v6379_v49 }
 0x15f   : > { %5232 = vmatprep.mubr.msk.bf16.mxu0 %vm3118_vm6, %v6392_v25 }
 0x166   : > { %5233 = vmatmul.mubr.msk.bf16.gmra.mrb[36].mxu0 %vm3118_vm6, %v6417_v41  ;;  %v1121_v41 = vpop.permute.xlu0 %1120 }
 0x167   : > { %5236 = vmatprep.mubr.msk.bf16.mxu0 %vm3118_vm6, %v6427_v23 }
 0x16e   : > { %5237 = vmatmul.mubr.msk.bf16.gmra.mrb[40].mxu0 %vm3118_vm6, %v6444_v14 }
 0x16f   : > { %5240 = vmatprep.mubr.msk.bf16.mxu0 %vm3118_vm6, %v6450_v20 }
 0x170   : > { %v934_v2 = vpop.permute.xlu1 %933 }
 0x171   : > { %v5196_v40 = vpop.f32.mrb[0].mxu1  ;;  %936 = vst.msk [vmem:[#allocation2 + $0x80] sm:$0xff] %vm893_vm3, %v934_v2 }
 0x172   : > { %v3476_v62 = vadd.f32 %v5196_v40, %v6529_v56  ;;  %v3467_v61 = vpop.f32.mrb[1].mxu1  ;;  %1126 = vst.msk [vmem:[#allocation2 + $0x80] sm:$0xff] %vm1088_vm4, %v1121_v41 }
 0x173   : > { %v5197_v60 = vpop.f32.mrb[2].mxu1  ;;  %v3468_v5 = vadd.f32 %v6529_v56, %v3467_v61 }
 0x174   : > { %v3479_v0 = vadd.f32 %v5197_v60, %v6529_v56  ;;  %v3470_v59 = vpop.f32.mrb[3].mxu1  ;;  %3630 = vrot.lane.b32.xlu0 %v3476_v62, %s5594_s24  ;;  %v1582_v8 = vpop.permute.xlu1 %1581 }
 0x175   : > { %v3471_v10 = vadd.f32 %v6529_v56, %v3470_v59  ;;  %1586 = vst.msk [vmem:[#allocation2 + $0x80] sm:$0xff] %vm1517_vm5, %v1582_v8 }
 0x176   : > { %3632 = vrot.lane.b32.xlu1 %v3479_v0, %s5594_s24  ;;  %5241 = vmatmul.mubr.msk.bf16.gmra.mrb[44].mxu0 %vm3118_vm6, %v6466_v30 }
 0x177   : > { %5244 = vmatprep.mubr.msk.bf16.mxu0 %vm3118_vm6, %v6471_v11 }
 0x178   : > { %3626 = vrot.lane.b32.xlu0 %v3468_v5, %s5594_s24 }
 0x17a   : > { %3628 = vrot.lane.b32.xlu1 %v3471_v10, %s5594_s24 }
 0x17b   : > { %v5200_v6 = vpop.f32.mrb[4].mxu1 }
 0x17c   : > { %v3492_v26 = vadd.f32 %v5200_v6, %v6529_v56  ;;  %v3483_v7 = vpop.f32.mrb[5].mxu1  ;;  %v3770_v11 = vld [vmem:[#allocation2 + $0x80] sm:$0xff] }
 0x17d   : > { %v5201_v51 = vpop.f32.mrb[6].mxu1  ;;  %v3484_v25 = vadd.f32 %v6529_v56, %v3483_v7 }
 0x17e   : > { %v3495_v57 = vadd.f32 %v5201_v51, %v6529_v56  ;;  %v3486_v49 = vpop.f32.mrb[7].mxu1  ;;  %3638 = vrot.lane.b32.xlu0 %v3492_v26, %s5594_s24  ;;  %5245 = vmatmul.mubr.msk.bf16.gmra.mrb[48].mxu0 %vm3118_vm6, %v6488_v18 }
 0x17f   : > { %v3487_v21 = vadd.f32 %v6529_v56, %v3486_v49  ;;  %5248 = vmatprep.mubr.msk.bf16.mxu0 %vm3118_vm6, %v6493_v52 }
 0x180   : > { %3640 = vrot.lane.b32.xlu1 %v3495_v57, %s5594_s24 }
 0x182   : > { %3634 = vrot.lane.b32.xlu0 %v3484_v25, %s5594_s24 }
 0x184   : > { %3636 = vrot.lane.b32.xlu1 %v3487_v21, %s5594_s24 }
 0x186   : > { %5249 = vmatmul.mubr.msk.bf16.gmra.mrb[52].mxu0 %vm3118_vm6, %v6505_v44 }
 0x187   : > { %v5204_v23 = vpop.f32.mrb[8].mxu1  ;;  %5252 = vmatprep.mubr.msk.bf16.mxu0 %vm3118_vm6, %v6509_v36 }
 0x188   : > { %v3508_v37 = vadd.f32 %v5204_v23, %v6529_v56  ;;  %v3499_v22 = vpop.f32.mrb[9].mxu1 }
 0x189   : > { %v5205_v17 = vpop.f32.mrb[10].mxu1  ;;  %v3500_v12 = vadd.f32 %v6529_v56, %v3499_v22 }
 0x18a   : > { %v3511_v9 = vadd.f32 %v5205_v17, %v6529_v56  ;;  %v3502_v27 = vpop.f32.mrb[11].mxu1  ;;  %3646 = vrot.lane.b32.xlu0 %v3508_v37, %s5594_s24 }
 0x18b   : > { %v3503_v14 = vadd.f32 %v6529_v56, %v3502_v27 }
 0x18c   : > { %3648 = vrot.lane.b32.xlu1 %v3511_v9, %s5594_s24 }
 0x18e   : > { %3642 = vrot.lane.b32.xlu0 %v3500_v12, %s5594_s24  ;;  %5253 = vmatmul.mubr.msk.bf16.gmra.mrb[56].mxu0 %vm3118_vm6, %v6519_v58 }
 0x18f   : > { %5256 = vmatprep.mubr.msk.bf16.mxu0 %vm3118_vm6, %v6524_v53 }
 0x190   : > { %3644 = vrot.lane.b32.xlu1 %v3503_v14, %s5594_s24 }
 0x193   : > { %v5208_v15 = vpop.f32.mrb[12].mxu1 }
 0x194   : > { %v3524_v20 = vadd.f32 %v5208_v15, %v6529_v56  ;;  %v3515_v38 = vpop.f32.mrb[13].mxu1 }
 0x195   : > { %v5209_v4 = vpop.f32.mrb[14].mxu1  ;;  %v3516_v28 = vadd.f32 %v6529_v56, %v3515_v38 }
 0x196   : > { %v3527_v33 = vadd.f32 %v5209_v4, %v6529_v56  ;;  %v3518_v29 = vpop.f32.mrb[15].mxu1  ;;  %3654 = vrot.lane.b32.xlu0 %v3524_v20, %s5594_s24  ;;  %5257 = vmatmul.mubr.msk.bf16.gmra.mrb[60].mxu0 %vm3118_vm6, %v3770_v11 }
 0x197   : > { %v3519_v30 = vadd.f32 %v6529_v56, %v3518_v29 }
 0x198   : > { %3656 = vrot.lane.b32.xlu1 %v3527_v33, %s5594_s24 }
 0x19a   : > { %3650 = vrot.lane.b32.xlu0 %v3516_v28, %s5594_s24 }
 0x19c   : > { %3652 = vrot.lane.b32.xlu1 %v3519_v30, %s5594_s24 }
 0x19f   : > { %v5212_v31 = vpop.f32.mrb[16].mxu1 }
 0x1a0   : > { %v3540_v35 = vadd.f32 %v5212_v31, %v6529_v56  ;;  %v3531_v63 = vpop.f32.mrb[17].mxu1 }
 0x1a1   : > { %v5213_v32 = vpop.f32.mrb[18].mxu1  ;;  %v3532_v18 = vadd.f32 %v6529_v56, %v3531_v63 }
 0x1a2   : > { %v3543_v16 = vadd.f32 %v5213_v32, %v6529_v56  ;;  %v3534_v34 = vpop.f32.mrb[19].mxu1  ;;  %3662 = vrot.lane.b32.xlu0 %v3540_v35, %s5594_s24 }
 0x1a3   : > { %v3535_v52 = vadd.f32 %v6529_v56, %v3534_v34 }
 0x1a4   : > { %3664 = vrot.lane.b32.xlu1 %v3543_v16, %s5594_s24 }
 0x1a6   : > { %3658 = vrot.lane.b32.xlu0 %v3532_v18, %s5594_s24 }
 0x1a8   : > { %3660 = vrot.lane.b32.xlu1 %v3535_v52, %s5594_s24 }
 0x1ab   : > { %v5216_v19 = vpop.f32.mrb[20].mxu1 }
 0x1ac   : > { %v3556_v54 = vadd.f32 %v5216_v19, %v6529_v56  ;;  %v3547_v24 = vpop.f32.mrb[21].mxu1 }
 0x1ad   : > { %v5217_v55 = vpop.f32.mrb[22].mxu1  ;;  %v3548_v42 = vadd.f32 %v6529_v56, %v3547_v24 }
 0x1ae   : > { %v3559_v1 = vadd.f32 %v5217_v55, %v6529_v56  ;;  %v3550_v39 = vpop.f32.mrb[23].mxu1  ;;  %3670 = vrot.lane.b32.xlu0 %v3556_v54, %s5594_s24 }
 0x1af   : > { %v3551_v44 = vadd.f32 %v6529_v56, %v3550_v39 }
 0x1b0   : > { %3672 = vrot.lane.b32.xlu1 %v3559_v1, %s5594_s24 }
 0x1b2   : > { %3666 = vrot.lane.b32.xlu0 %v3548_v42, %s5594_s24 }
 0x1b4   : > { %3668 = vrot.lane.b32.xlu1 %v3551_v44, %s5594_s24 }
 0x1b7   : > { %v5220_v46 = vpop.f32.mrb[24].mxu1 }
 0x1b8   : > { %v3572_v36 = vadd.f32 %v5220_v46, %v6529_v56  ;;  %v3563_v47 = vpop.f32.mrb[25].mxu1 }
 0x1b9   : > { %v5221_v13 = vpop.f32.mrb[26].mxu1  ;;  %v3564_v50 = vadd.f32 %v6529_v56, %v3563_v47 }
 0x1ba   : > { %v3575_v43 = vadd.f32 %v5221_v13, %v6529_v56  ;;  %v3566_v45 = vpop.f32.mrb[27].mxu1  ;;  %3678 = vrot.lane.b32.xlu0 %v3572_v36, %s5594_s24 }
 0x1bb   : > { %v3567_v48 = vadd.f32 %v6529_v56, %v3566_v45 }
 0x1bc   : > { %3680 = vrot.lane.b32.xlu1 %v3575_v43, %s5594_s24 }
 0x1be   : > { %3674 = vrot.lane.b32.xlu0 %v3564_v50, %s5594_s24 }
 0x1c0   : > { %3676 = vrot.lane.b32.xlu1 %v3567_v48, %s5594_s24 }
 0x1cc   : > { %v5162_v58 = vpop.f32.mrb[0].mxu0 }
 0x1cd   : > { %v3210_v53 = vadd.f32 %v5162_v58, %v6529_v56  ;;  %v3201_v40 = vpop.f32.mrb[1].mxu0 }
 0x1ce   : > { %v3202_v62 = vadd.f32 %v6529_v56, %v3201_v40  ;;  %v5163_v61 = vpop.f32.mrb[2].mxu0  ;;  %v5224_v60 = vpop.f32.mrb[28].mxu1 }
 0x1cf   : > { %3330 = vst.msk [vmem:[%s6628_s21 + $0x20] sm:$0xff] %vm449_vm2, %v3210_v53  ;;  %v3213_v0 = vadd.f32 %v5163_v61, %v6529_v56  ;;  %v3204_v59 = vpop.f32.mrb[3].mxu0  ;;  %v3588_v3 = vadd.f32 %v5224_v60, %v6529_v56  ;;  %v3579_v5 = vpop.f32.mrb[29].mxu1 }
 0x1d0   : > { %3328 = vst.msk [vmem:[%s6628_s21] sm:$0xff] %vm449_vm2, %v3202_v62  ;;  %v3205_v10 = vadd.f32 %v6529_v56, %v3204_v59  ;;  %v5225_v6 = vpop.f32.mrb[30].mxu1  ;;  %v3580_v51 = vadd.f32 %v6529_v56, %v3579_v5 }
 0x1d1   : > { %3331 = vst.msk [vmem:[%s6628_s21 + $0x28] sm:$0xff] %vm449_vm2, %v3213_v0  ;;  %v3591_v26 = vadd.f32 %v5225_v6, %v6529_v56  ;;  %3686 = vrot.lane.b32.xlu0 %v3588_v3, %s5594_s24  ;;  %v3582_v7 = vpop.f32.mrb[31].mxu1 }
 0x1d2   : > { %3329 = vst.msk [vmem:[%s6628_s21 + $0x8] sm:$0xff] %vm449_vm2, %v3205_v10  ;;  %v3583_v41 = vadd.f32 %v6529_v56, %v3582_v7 }
 0x1d3   : > { %3688 = vrot.lane.b32.xlu1 %v3591_v26, %s5594_s24 }
 0x1d5   : > { %3682 = vrot.lane.b32.xlu0 %v3580_v51, %s5594_s24 }
 0x1d6   : > { %v5264_v37 = vpop.f32.mrb[32].mxu1 }
 0x1d7   : > { %v4139_v17 = vadd.f32 %v5264_v37, %v6529_v56  ;;  %v4130_v9 = vpop.f32.mrb[33].mxu1  ;;  %3684 = vrot.lane.b32.xlu1 %v3583_v41, %s5594_s24 }
 0x1d8   : > { %v5265_v14 = vpop.f32.mrb[34].mxu1  ;;  %v4131_v4 = vadd.f32 %v6529_v56, %v4130_v9 }
 0x1d9   : > { %v4142_v20 = vadd.f32 %v5265_v14, %v6529_v56  ;;  %v4133_v38 = vpop.f32.mrb[35].mxu1  ;;  %4293 = vrot.lane.b32.xlu0 %v4139_v17, %s5594_s24 }
 0x1da   : > { %v4134_v11 = vadd.f32 %v6529_v56, %v4133_v38 }
 0x1db   : > { %v5166_v57 = vpop.f32.mrb[4].mxu0  ;;  %4295 = vrot.lane.b32.xlu1 %v4142_v20, %s5594_s24 }
 0x1dc   : > { %v3226_v49 = vadd.f32 %v5166_v57, %v6529_v56  ;;  %v3217_v25 = vpop.f32.mrb[5].mxu0 }
 0x1dd   : > { %v3218_v2 = vadd.f32 %v6529_v56, %v3217_v25  ;;  %v5167_v23 = vpop.f32.mrb[6].mxu0  ;;  %4289 = vrot.lane.b32.xlu0 %v4131_v4, %s5594_s24 }
 0x1de   : > { %3334 = vst.msk [vmem:[%s6628_s21 + $0x60] sm:$0xff] %vm449_vm2, %v3226_v49  ;;  %v3229_v22 = vadd.f32 %v5167_v23, %v6529_v56  ;;  %v3220_v8 = vpop.f32.mrb[7].mxu0  ;;  %v5268_v63 = vpop.f32.mrb[36].mxu1 }
 0x1df   : > { %3332 = vst.msk [vmem:[%s6628_s21 + $0x40] sm:$0xff] %vm449_vm2, %v3218_v2  ;;  %v3221_v27 = vadd.f32 %v6529_v56, %v3220_v8  ;;  %v4155_v34 = vadd.f32 %v5268_v63, %v6529_v56  ;;  %v4146_v18 = vpop.f32.mrb[37].mxu1  ;;  %4291 = vrot.lane.b32.xlu1 %v4134_v11, %s5594_s24 }
 0x1e0   : > { %3335 = vst.msk [vmem:[%s6628_s21 + $0x68] sm:$0xff] %vm449_vm2, %v3229_v22  ;;  %v5269_v19 = vpop.f32.mrb[38].mxu1  ;;  %v4147_v39 = vadd.f32 %v6529_v56, %v4146_v18 }
 0x1e1   : > { %3333 = vst.msk [vmem:[%s6628_s21 + $0x48] sm:$0xff] %vm449_vm2, %v3221_v27  ;;  %v4158_v24 = vadd.f32 %v5269_v19, %v6529_v56  ;;  %v4149_v55 = vpop.f32.mrb[39].mxu1  ;;  %4301 = vrot.lane.b32.xlu0 %v4155_v34, %s5594_s24 }
 0x1e2   : > { %v4150_v44 = vadd.f32 %v6529_v56, %v4149_v55 }
 0x1e3   : > { %4303 = vrot.lane.b32.xlu1 %v4158_v24, %s5594_s24 }
 0x1e5   : > { %4297 = vrot.lane.b32.xlu0 %v4147_v39, %s5594_s24 }
 0x1e6   : > { %v3631_v21 = vpop.permute.xlu0 %3630  ;;  %v5272_v46 = vpop.f32.mrb[40].mxu1 }
 0x1e7   : > { %3724 = vst.msk [vmem:[%s6628_s21 + $0x20] sm:$0xff] %vm893_vm3, %v3631_v21  ;;  %v4171_v47 = vadd.f32 %v5272_v46, %v6529_v56  ;;  %v4162_v13 = vpop.f32.mrb[41].mxu1  ;;  %4299 = vrot.lane.b32.xlu1 %v4150_v44, %s5594_s24 }
 0x1e8   : > { %v3633_v12 = vpop.permute.xlu1 %3632  ;;  %v5273_v43 = vpop.f32.mrb[42].mxu1  ;;  %v4163_v48 = vadd.f32 %v6529_v56, %v4162_v13 }
 0x1e9   : > { %3725 = vst.msk [vmem:[%s6628_s21 + $0x28] sm:$0xff] %vm893_vm3, %v3633_v12  ;;  %v4174_v45 = vadd.f32 %v5273_v43, %v6529_v56  ;;  %v4165_v50 = vpop.f32.mrb[43].mxu1  ;;  %4309 = vrot.lane.b32.xlu0 %v4171_v47, %s5594_s24 }
 0x1ea   : > { %v3627_v15 = vpop.permute.xlu0 %3626  ;;  %v5170_v33 = vpop.f32.mrb[8].mxu0  ;;  %v4166_v58 = vadd.f32 %v6529_v56, %v4165_v50 }
 0x1eb   : > { %3722 = vst.msk [vmem:[%s6628_s21] sm:$0xff] %vm893_vm3, %v3627_v15  ;;  %v3242_v28 = vadd.f32 %v5170_v33, %v6529_v56  ;;  %v3233_v30 = vpop.f32.mrb[9].mxu0  ;;  %4311 = vrot.lane.b32.xlu1 %v4174_v45, %s5594_s24 }
 0x1ec   : > { %v3629_v29 = vpop.permute.xlu1 %3628  ;;  %v3234_v31 = vadd.f32 %v6529_v56, %v3233_v30  ;;  %v5171_v35 = vpop.f32.mrb[10].mxu0 }
 0x1ed   : > { %3723 = vst.msk [vmem:[%s6628_s21 + $0x8] sm:$0xff] %vm893_vm3, %v3629_v29  ;;  %v3245_v32 = vadd.f32 %v5171_v35, %v6529_v56  ;;  %v3236_v16 = vpop.f32.mrb[11].mxu0  ;;  %4305 = vrot.lane.b32.xlu0 %v4163_v48, %s5594_s24 }
 0x1ee   : > { %3338 = vst.msk [vmem:[%s6628_s21 + $0xa0] sm:$0xff] %vm449_vm2, %v3242_v28  ;;  %3336 = vst.msk [vmem:[%s6628_s21 + $0x80] sm:$0xff] %vm449_vm2, %v3234_v31  ;;  %v3237_v52 = vadd.f32 %v6529_v56, %v3236_v16  ;;  %v5276_v40 = vpop.f32.mrb[44].mxu1 }
 0x1ef   : > { %3339 = vst.msk [vmem:[%s6628_s21 + $0xa8] sm:$0xff] %vm449_vm2, %v3245_v32  ;;  %v4187_v60 = vadd.f32 %v5276_v40, %v6529_v56  ;;  %v4178_v0 = vpop.f32.mrb[45].mxu1  ;;  %4307 = vrot.lane.b32.xlu1 %v4166_v58, %s5594_s24 }
 0x1f0   : > { %v3639_v54 = vpop.permute.xlu0 %3638  ;;  %3337 = vst.msk [vmem:[%s6628_s21 + $0x88] sm:$0xff] %vm449_vm2, %v3237_v52  ;;  %v5277_v5 = vpop.f32.mrb[46].mxu1  ;;  %v4179_v49 = vadd.f32 %v6529_v56, %v4178_v0 }
 0x1f1   : > { %3728 = vst.msk [vmem:[%s6628_s21 + $0x60] sm:$0xff] %vm893_vm3, %v3639_v54  ;;  %v4190_v26 = vadd.f32 %v5277_v5, %v6529_v56  ;;  %v4181_v7 = vpop.f32.mrb[47].mxu1  ;;  %4317 = vrot.lane.b32.xlu0 %v4187_v60, %s5594_s24 }
 0x1f2   : > { %v3641_v1 = vpop.permute.xlu1 %3640  ;;  %v4182_v21 = vadd.f32 %v6529_v56, %v4181_v7 }
 0x1f3   : > { %3729 = vst.msk [vmem:[%s6628_s21 + $0x68] sm:$0xff] %vm893_vm3, %v3641_v1  ;;  %4319 = vrot.lane.b32.xlu1 %v4190_v26, %s5594_s24 }
 0x1f4   : > { %v3635_v42 = vpop.permute.xlu0 %3634 }
 0x1f5   : > { %3726 = vst.msk [vmem:[%s6628_s21 + $0x40] sm:$0xff] %vm893_vm3, %v3635_v42  ;;  %4313 = vrot.lane.b32.xlu0 %v4179_v49, %s5594_s24 }
 0x1f6   : > { %v3637_v36 = vpop.permute.xlu1 %3636  ;;  %v5280_v41 = vpop.f32.mrb[48].mxu1 }
 0x1f7   : > { %3727 = vst.msk [vmem:[%s6628_s21 + $0x48] sm:$0xff] %vm893_vm3, %v3637_v36  ;;  %v5174_v53 = vpop.f32.mrb[12].mxu0  ;;  %v4203_v23 = vadd.f32 %v5280_v41, %v6529_v56  ;;  %v4194_v37 = vpop.f32.mrb[49].mxu1  ;;  %4315 = vrot.lane.b32.xlu1 %v4182_v21, %s5594_s24 }
 0x1f8   : > { %v3258_v62 = vadd.f32 %v5174_v53, %v6529_v56  ;;  %v3249_v61 = vpop.f32.mrb[13].mxu0  ;;  %v5281_v22 = vpop.f32.mrb[50].mxu1  ;;  %v4195_v27 = vadd.f32 %v6529_v56, %v4194_v37 }
 0x1f9   : > { %v3250_v59 = vadd.f32 %v6529_v56, %v3249_v61  ;;  %v5175_v3 = vpop.f32.mrb[14].mxu0  ;;  %v4206_v17 = vadd.f32 %v5281_v22, %v6529_v56  ;;  %v4197_v9 = vpop.f32.mrb[51].mxu1  ;;  %4325 = vrot.lane.b32.xlu0 %v4203_v23, %s5594_s24 }
 0x1fa   : > { %3342 = vst.msk [vmem:[%s6628_s21 + $0xe0] sm:$0xff] %vm449_vm2, %v3258_v62  ;;  %v3261_v10 = vadd.f32 %v5175_v3, %v6529_v56  ;;  %v3252_v6 = vpop.f32.mrb[15].mxu0  ;;  %v4198_v12 = vadd.f32 %v6529_v56, %v4197_v9 }
 0x1fb   : > { %3340 = vst.msk [vmem:[%s6628_s21 + $0xc0] sm:$0xff] %vm449_vm2, %v3250_v59  ;;  %v3253_v51 = vadd.f32 %v6529_v56, %v3252_v6  ;;  %4327 = vrot.lane.b32.xlu1 %v4206_v17, %s5594_s24 }
 0x1fc   : > { %3343 = vst.msk [vmem:[%s6628_s21 + $0xe8] sm:$0xff] %vm449_vm2, %v3261_v10  ;;  %v3647_v57 = vpop.permute.xlu0 %3646 }
 0x1fd   : > { %3341 = vst.msk [vmem:[%s6628_s21 + $0xc8] sm:$0xff] %vm449_vm2, %v3253_v51  ;;  %4321 = vrot.lane.b32.xlu0 %v4195_v27, %s5594_s24 }
 0x1fe   : > { %3732 = vst.msk [vmem:[%s6628_s21 + $0xa0] sm:$0xff] %vm893_vm3, %v3647_v57  ;;  %v3649_v25 = vpop.permute.xlu1 %3648  ;;  %v5284_v15 = vpop.f32.mrb[52].mxu1 }
 0x1ff   : > { %3733 = vst.msk [vmem:[%s6628_s21 + $0xa8] sm:$0xff] %vm893_vm3, %v3649_v25  ;;  %v4219_v4 = vadd.f32 %v5284_v15, %v6529_v56  ;;  %v4210_v33 = vpop.f32.mrb[53].mxu1  ;;  %4323 = vrot.lane.b32.xlu1 %v4198_v12, %s5594_s24 }
 0x200   : > { %v3643_v2 = vpop.permute.xlu0 %3642  ;;  %v5285_v30 = vpop.f32.mrb[54].mxu1  ;;  %v4211_v16 = vadd.f32 %v6529_v56, %v4210_v33 }
 0x201   : > { %3730 = vst.msk [vmem:[%s6628_s21 + $0x80] sm:$0xff] %vm893_vm3, %v3643_v2  ;;  %v4222_v35 = vadd.f32 %v5285_v30, %v6529_v56  ;;  %v4213_v63 = vpop.f32.mrb[55].mxu1  ;;  %4333 = vrot.lane.b32.xlu0 %v4219_v4, %s5594_s24 }
 0x202   : > { %v3645_v8 = vpop.permute.xlu1 %3644  ;;  %v4214_v18 = vadd.f32 %v6529_v56, %v4213_v63 }
 0x203   : > { %3731 = vst.msk [vmem:[%s6628_s21 + $0x88] sm:$0xff] %vm893_vm3, %v3645_v8  ;;  %v5178_v14 = vpop.f32.mrb[16].mxu0  ;;  %4335 = vrot.lane.b32.xlu1 %v4222_v35, %s5594_s24 }
 0x204   : > { %v3274_v20 = vadd.f32 %v5178_v14, %v6529_v56  ;;  %v3265_v38 = vpop.f32.mrb[17].mxu0 }
 0x205   : > { %v3266_v29 = vadd.f32 %v6529_v56, %v3265_v38  ;;  %v5179_v28 = vpop.f32.mrb[18].mxu0  ;;  %4329 = vrot.lane.b32.xlu0 %v4211_v16, %s5594_s24 }
 0x206   : > { %3346 = vst.msk [vmem:[%s6628_s21 + $0x120] sm:$0xff] %vm449_vm2, %v3274_v20  ;;  %v3277_v11 = vadd.f32 %v5179_v28, %v6529_v56  ;;  %v3268_v31 = vpop.f32.mrb[19].mxu0  ;;  %v5288_v52 = vpop.f32.mrb[56].mxu1 }
 0x207   : > { %3344 = vst.msk [vmem:[%s6628_s21 + $0x100] sm:$0xff] %vm449_vm2, %v3266_v29  ;;  %v3269_v32 = vadd.f32 %v6529_v56, %v3268_v31  ;;  %v4235_v54 = vadd.f32 %v5288_v52, %v6529_v56  ;;  %v4226_v24 = vpop.f32.mrb[57].mxu1  ;;  %4331 = vrot.lane.b32.xlu1 %v4214_v18, %s5594_s24 }
 0x208   : > { %3347 = vst.msk [vmem:[%s6628_s21 + $0x128] sm:$0xff] %vm449_vm2, %v3277_v11  ;;  %v3655_v34 = vpop.permute.xlu0 %3654  ;;  %v5289_v55 = vpop.f32.mrb[58].mxu1  ;;  %v4227_v46 = vadd.f32 %v6529_v56, %v4226_v24 }
 0x209   : > { %3345 = vst.msk [vmem:[%s6628_s21 + $0x108] sm:$0xff] %vm449_vm2, %v3269_v32  ;;  %v4238_v39 = vadd.f32 %v5289_v55, %v6529_v56  ;;  %v4229_v42 = vpop.f32.mrb[59].mxu1  ;;  %4341 = vrot.lane.b32.xlu0 %v4235_v54, %s5594_s24 }
 0x20a   : > { %3736 = vst.msk [vmem:[%s6628_s21 + $0xe0] sm:$0xff] %vm893_vm3, %v3655_v34  ;;  %v3657_v19 = vpop.permute.xlu1 %3656  ;;  %v4230_v36 = vadd.f32 %v6529_v56, %v4229_v42 }
 0x20b   : > { %3737 = vst.msk [vmem:[%s6628_s21 + $0xe8] sm:$0xff] %vm893_vm3, %v3657_v19  ;;  %4343 = vrot.lane.b32.xlu1 %v4238_v39, %s5594_s24 }
 0x20c   : > { %v3651_v1 = vpop.permute.xlu0 %3650 }
 0x20d   : > { %3734 = vst.msk [vmem:[%s6628_s21 + $0xc0] sm:$0xff] %vm893_vm3, %v3651_v1  ;;  %4337 = vrot.lane.b32.xlu0 %v4227_v46, %s5594_s24 }
 0x20e   : > { %v3653_v44 = vpop.permute.xlu1 %3652 }
 0x20f   : > { %3735 = vst.msk [vmem:[%s6628_s21 + $0xc8] sm:$0xff] %vm893_vm3, %v3653_v44  ;;  %4339 = vrot.lane.b32.xlu1 %v4230_v36, %s5594_s24 }
 0x211   : > { %v5182_v47 = vpop.f32.mrb[20].mxu0 }
 0x212   : > { %v3290_v13 = vadd.f32 %v5182_v47, %v6529_v56  ;;  %v3281_v43 = vpop.f32.mrb[21].mxu0 }
 0x213   : > { %v3282_v45 = vadd.f32 %v6529_v56, %v3281_v43  ;;  %v5183_v50 = vpop.f32.mrb[22].mxu0 }
 0x214   : > { %3350 = vst.msk [vmem:[%s6628_s21 + $0x160] sm:$0xff] %vm449_vm2, %v3290_v13  ;;  %v3293_v48 = vadd.f32 %v5183_v50, %v6529_v56  ;;  %v3284_v58 = vpop.f32.mrb[23].mxu0  ;;  %v3663_v40 = vpop.permute.xlu0 %3662 }
 0x215   : > { %3348 = vst.msk [vmem:[%s6628_s21 + $0x140] sm:$0xff] %vm449_vm2, %v3282_v45  ;;  %v3285_v53 = vadd.f32 %v6529_v56, %v3284_v58 }
 0x216   : > { %3351 = vst.msk [vmem:[%s6628_s21 + $0x168] sm:$0xff] %vm449_vm2, %v3293_v48  ;;  %v3665_v62 = vpop.permute.xlu1 %3664 }
 0x217   : > { %3349 = vst.msk [vmem:[%s6628_s21 + $0x148] sm:$0xff] %vm449_vm2, %v3285_v53 }
 0x218   : > { %3740 = vst.msk [vmem:[%s6628_s21 + $0x120] sm:$0xff] %vm893_vm3, %v3663_v40  ;;  %3741 = vst.msk [vmem:[%s6628_s21 + $0x128] sm:$0xff] %vm893_vm3, %v3665_v62  ;;  %v3659_v61 = vpop.permute.xlu0 %3658 }
 0x219   : > { %3738 = vst.msk [vmem:[%s6628_s21 + $0x100] sm:$0xff] %vm893_vm3, %v3659_v61 }
 0x21a   : > { %v3661_v60 = vpop.permute.xlu1 %3660 }
 0x21b   : > { %3739 = vst.msk [vmem:[%s6628_s21 + $0x108] sm:$0xff] %vm893_vm3, %v3661_v60 }
 0x21d   : > { %v5186_v0 = vpop.f32.mrb[24].mxu0 }
 0x21e   : > { %v3306_v59 = vadd.f32 %v5186_v0, %v6529_v56  ;;  %v3297_v3 = vpop.f32.mrb[25].mxu0 }
 0x21f   : > { %v3298_v5 = vadd.f32 %v6529_v56, %v3297_v3  ;;  %v5187_v10 = vpop.f32.mrb[26].mxu0 }
 0x220   : > { %3354 = vst.msk [vmem:[%s6628_s21 + $0x1a0] sm:$0xff] %vm449_vm2, %v3306_v59  ;;  %v3309_v6 = vadd.f32 %v5187_v10, %v6529_v56  ;;  %v3300_v26 = vpop.f32.mrb[27].mxu0  ;;  %v3671_v51 = vpop.permute.xlu0 %3670 }
 0x221   : > { %3352 = vst.msk [vmem:[%s6628_s21 + $0x180] sm:$0xff] %vm449_vm2, %v3298_v5  ;;  %v3301_v7 = vadd.f32 %v6529_v56, %v3300_v26 }
 0x222   : > { %3355 = vst.msk [vmem:[%s6628_s21 + $0x1a8] sm:$0xff] %vm449_vm2, %v3309_v6  ;;  %v3673_v57 = vpop.permute.xlu1 %3672 }
 0x223   : > { %3353 = vst.msk [vmem:[%s6628_s21 + $0x188] sm:$0xff] %vm449_vm2, %v3301_v7 }
 0x224   : > { %3744 = vst.msk [vmem:[%s6628_s21 + $0x160] sm:$0xff] %vm893_vm3, %v3671_v51  ;;  %3745 = vst.msk [vmem:[%s6628_s21 + $0x168] sm:$0xff] %vm893_vm3, %v3673_v57  ;;  %v3667_v49 = vpop.permute.xlu0 %3666 }
 0x225   : > { %3742 = vst.msk [vmem:[%s6628_s21 + $0x140] sm:$0xff] %vm893_vm3, %v3667_v49 }
 0x226   : > { %v3669_v25 = vpop.permute.xlu1 %3668 }
 0x227   : > { %3743 = vst.msk [vmem:[%s6628_s21 + $0x148] sm:$0xff] %vm893_vm3, %v3669_v25 }
 0x229   : > { %v5190_v21 = vpop.f32.mrb[28].mxu0 }
 0x22a   : > { %v3322_v41 = vadd.f32 %v5190_v21, %v6529_v56  ;;  %v3313_v2 = vpop.f32.mrb[29].mxu0 }
 0x22b   : > { %v3314_v23 = vadd.f32 %v6529_v56, %v3313_v2  ;;  %v5191_v37 = vpop.f32.mrb[30].mxu0 }
 0x22c   : > { %v3679_v22 = vpop.permute.xlu0 %3678  ;;  %3358 = vst.msk [vmem:[%s6628_s21 + $0x1e0] sm:$0xff] %vm449_vm2, %v3322_v41  ;;  %v3325_v8 = vadd.f32 %v5191_v37, %v6529_v56  ;;  %v3316_v17 = vpop.f32.mrb[31].mxu0 }
 0x22d   : > { %3748 = vst.msk [vmem:[%s6628_s21 + $0x1a0] sm:$0xff] %vm893_vm3, %v3679_v22  ;;  %v3317_v9 = vadd.f32 %v6529_v56, %v3316_v17 }
 0x22e   : > { %3356 = vst.msk [vmem:[%s6628_s21 + $0x1c0] sm:$0xff] %vm449_vm2, %v3314_v23  ;;  %v3681_v27 = vpop.permute.xlu1 %3680  ;;  %3359 = vst.msk [vmem:[%s6628_s21 + $0x1e8] sm:$0xff] %vm449_vm2, %v3325_v8 }
 0x22f   : > { %3749 = vst.msk [vmem:[%s6628_s21 + $0x1a8] sm:$0xff] %vm893_vm3, %v3681_v27 }
 0x230   : > { %3357 = vst.msk [vmem:[%s6628_s21 + $0x1c8] sm:$0xff] %vm449_vm2, %v3317_v9  ;;  %v5292_v12 = vpop.f32.mrb[60].mxu1  ;;  %v3675_v14 = vpop.permute.xlu0 %3674 }
 0x231   : > { %v4242_v15 = vpop.f32.mrb[61].mxu1  ;;  %3746 = vst.msk [vmem:[%s6628_s21 + $0x180] sm:$0xff] %vm893_vm3, %v3675_v14  ;;  %v5230_v20 = vpop.f32.mrb[32].mxu0  ;;  %v4251_v16 = vadd.f32 %v5292_v12, %v6529_v56 }
 0x232   : > { %v4243_v38 = vadd.f32 %v6529_v56, %v4242_v15  ;;  %v5293_v4 = vpop.f32.mrb[62].mxu1  ;;  %v3871_v33 = vadd.f32 %v5230_v20, %v6529_v56  ;;  %v3862_v29 = vpop.f32.mrb[33].mxu0 }
 0x233   : > { %v4245_v28 = vpop.f32.mrb[63].mxu1  ;;  %v3863_v30 = vadd.f32 %v6529_v56, %v3862_v29  ;;  %v5231_v11 = vpop.f32.mrb[34].mxu0  ;;  %v4254_v18 = vadd.f32 %v5293_v4, %v6529_v56 }
 0x234   : > { %v4246_v31 = vadd.f32 %v6529_v56, %v4245_v28  ;;  %4345 = vrot.lane.b32.xlu0 %v4243_v38, %s5594_s24  ;;  %v3677_v35 = vpop.permute.xlu1 %3676  ;;  %5004 = vst.msk [vmem:[%s6628_s21 + $0x30] sm:$0xff] %vm449_vm2, %v3871_v33  ;;  %v3874_v63 = vadd.f32 %v5231_v11, %v6529_v56  ;;  %v3865_v32 = vpop.f32.mrb[35].mxu0 }
 0x235   : > { %3747 = vst.msk [vmem:[%s6628_s21 + $0x188] sm:$0xff] %vm893_vm3, %v3677_v35  ;;  %v3866_v34 = vadd.f32 %v6529_v56, %v3865_v32 }
 0x236   : > { %5002 = vst.msk [vmem:[%s6628_s21 + $0x10] sm:$0xff] %vm449_vm2, %v3863_v30  ;;  %4347 = vrot.lane.b32.xlu1 %v4246_v31, %s5594_s24  ;;  %5005 = vst.msk [vmem:[%s6628_s21 + $0x38] sm:$0xff] %vm449_vm2, %v3874_v63 }
 0x237   : > { %5003 = vst.msk [vmem:[%s6628_s21 + $0x18] sm:$0xff] %vm449_vm2, %v3866_v34 }
 0x238   : > { %4349 = vrot.lane.b32.xlu0 %v4251_v16, %s5594_s24 }
 0x239   : > { %v5234_v52 = vpop.f32.mrb[36].mxu0 }
 0x23a   : > { %4351 = vrot.lane.b32.xlu1 %v4254_v18, %s5594_s24  ;;  %v3887_v19 = vadd.f32 %v5234_v52, %v6529_v56  ;;  %v3878_v54 = vpop.f32.mrb[37].mxu0 }
 0x23b   : > { %v3879_v24 = vadd.f32 %v6529_v56, %v3878_v54  ;;  %v5235_v55 = vpop.f32.mrb[38].mxu0 }
 0x23c   : > { %5008 = vst.msk [vmem:[%s6628_s21 + $0x70] sm:$0xff] %vm449_vm2, %v3887_v19  ;;  %v3890_v39 = vadd.f32 %v5235_v55, %v6529_v56  ;;  %v3881_v42 = vpop.f32.mrb[39].mxu0 }
 0x23d   : > { %5006 = vst.msk [vmem:[%s6628_s21 + $0x50] sm:$0xff] %vm449_vm2, %v3879_v24  ;;  %v3882_v44 = vadd.f32 %v6529_v56, %v3881_v42 }
 0x23e   : > { %5009 = vst.msk [vmem:[%s6628_s21 + $0x78] sm:$0xff] %vm449_vm2, %v3890_v39 }
 0x23f   : > { %5007 = vst.msk [vmem:[%s6628_s21 + $0x58] sm:$0xff] %vm449_vm2, %v3882_v44 }
 0x241   : > { %v5238_v47 = vpop.f32.mrb[40].mxu0 }
 0x242   : > { %v3903_v43 = vadd.f32 %v5238_v47, %v6529_v56  ;;  %v3894_v45 = vpop.f32.mrb[41].mxu0 }
 0x243   : > { %v3687_v1 = vpop.permute.xlu0 %3686  ;;  %v3895_v50 = vadd.f32 %v6529_v56, %v3894_v45  ;;  %v5239_v48 = vpop.f32.mrb[42].mxu0 }
 0x244   : > { %3752 = vst.msk [vmem:[%s6628_s21 + $0x1e0] sm:$0xff] %vm893_vm3, %v3687_v1  ;;  %v3906_v53 = vadd.f32 %v5239_v48, %v6529_v56  ;;  %v3897_v40 = vpop.f32.mrb[43].mxu0 }
 0x245   : > { %v3689_v46 = vpop.permute.xlu1 %3688  ;;  %5012 = vst.msk [vmem:[%s6628_s21 + $0xb0] sm:$0xff] %vm449_vm2, %v3903_v43  ;;  %5010 = vst.msk [vmem:[%s6628_s21 + $0x90] sm:$0xff] %vm449_vm2, %v3895_v50  ;;  %v3898_v62 = vadd.f32 %v6529_v56, %v3897_v40  ;;  %v5568_v50 = vld [vmem:[%s7035_s3] ss:$0 sm:$0xff] }
 0x246   : > { %3753 = vst.msk [vmem:[%s6628_s21 + $0x1e8] sm:$0xff] %vm893_vm3, %v3689_v46 }
 0x247   : > { %v3683_v36 = vpop.permute.xlu0 %3682  ;;  %5013 = vst.msk [vmem:[%s6628_s21 + $0xb8] sm:$0xff] %vm449_vm2, %v3906_v53  ;;  %5011 = vst.msk [vmem:[%s6628_s21 + $0x98] sm:$0xff] %vm449_vm2, %v3898_v62 }
 0x248   : > { %3750 = vst.msk [vmem:[%s6628_s21 + $0x1c0] sm:$0xff] %vm893_vm3, %v3683_v36 }
 0x249   : > { %v3685_v13 = vpop.permute.xlu1 %3684  ;;  %v5242_v0 = vpop.f32.mrb[44].mxu0 }
 0x24a   : > { %3751 = vst.msk [vmem:[%s6628_s21 + $0x1c8] sm:$0xff] %vm893_vm3, %v3685_v13  ;;  %v3919_v3 = vadd.f32 %v5242_v0, %v6529_v56  ;;  %v3910_v5 = vpop.f32.mrb[45].mxu0 }
 0x24b   : > { %v4294_v58 = vpop.permute.xlu0 %4293  ;;  %v3911_v10 = vadd.f32 %v6529_v56, %v3910_v5  ;;  %v5243_v6 = vpop.f32.mrb[46].mxu0 }
 0x24c   : > { %5055 = vst.msk [vmem:[%s6628_s21 + $0x30] sm:$0xff] %vm893_vm3, %v4294_v58  ;;  %v3922_v7 = vadd.f32 %v5243_v6, %v6529_v56  ;;  %v3913_v51 = vpop.f32.mrb[47].mxu0 }
 0x24d   : > { %v4296_v61 = vpop.permute.xlu1 %4295  ;;  %5016 = vst.msk [vmem:[%s6628_s21 + $0xf0] sm:$0xff] %vm449_vm2, %v3919_v3  ;;  %5014 = vst.msk [vmem:[%s6628_s21 + $0xd0] sm:$0xff] %vm449_vm2, %v3911_v10  ;;  %v3914_v57 = vadd.f32 %v6529_v56, %v3913_v51 }
 0x24e   : > { %5056 = vst.msk [vmem:[%s6628_s21 + $0x38] sm:$0xff] %vm893_vm3, %v4296_v61 }
 0x24f   : > { %v4290_v60 = vpop.permute.xlu0 %4289  ;;  %5017 = vst.msk [vmem:[%s6628_s21 + $0xf8] sm:$0xff] %vm449_vm2, %v3922_v7  ;;  %5015 = vst.msk [vmem:[%s6628_s21 + $0xd8] sm:$0xff] %vm449_vm2, %v3914_v57 }
 0x250   : > { %5053 = vst.msk [vmem:[%s6628_s21 + $0x10] sm:$0xff] %vm893_vm3, %v4290_v60 }
 0x251   : > { %v4292_v59 = vpop.permute.xlu1 %4291  ;;  %v5246_v21 = vpop.f32.mrb[48].mxu0 }
 0x252   : > { %5054 = vst.msk [vmem:[%s6628_s21 + $0x18] sm:$0xff] %vm893_vm3, %v4292_v59  ;;  %v3935_v2 = vadd.f32 %v5246_v21, %v6529_v56  ;;  %v3926_v23 = vpop.f32.mrb[49].mxu0 }
 0x253   : > { %v4302_v26 = vpop.permute.xlu0 %4301  ;;  %v3927_v37 = vadd.f32 %v6529_v56, %v3926_v23  ;;  %v5247_v22 = vpop.f32.mrb[50].mxu0 }
 0x254   : > { %5059 = vst.msk [vmem:[%s6628_s21 + $0x70] sm:$0xff] %vm893_vm3, %v4302_v26  ;;  %v3938_v17 = vadd.f32 %v5247_v22, %v6529_v56  ;;  %v3929_v9 = vpop.f32.mrb[51].mxu0 }
 0x255   : > { %v4304_v49 = vpop.permute.xlu1 %4303  ;;  %5020 = vst.msk [vmem:[%s6628_s21 + $0x130] sm:$0xff] %vm449_vm2, %v3935_v2  ;;  %5018 = vst.msk [vmem:[%s6628_s21 + $0x110] sm:$0xff] %vm449_vm2, %v3927_v37  ;;  %v3930_v27 = vadd.f32 %v6529_v56, %v3929_v9 }
 0x256   : > { %5060 = vst.msk [vmem:[%s6628_s21 + $0x78] sm:$0xff] %vm893_vm3, %v4304_v49 }
 0x257   : > { %v4298_v25 = vpop.permute.xlu0 %4297  ;;  %5021 = vst.msk [vmem:[%s6628_s21 + $0x138] sm:$0xff] %vm449_vm2, %v3938_v17  ;;  %5019 = vst.msk [vmem:[%s6628_s21 + $0x118] sm:$0xff] %vm449_vm2, %v3930_v27 }
 0x258   : > { %5057 = vst.msk [vmem:[%s6628_s21 + $0x50] sm:$0xff] %vm893_vm3, %v4298_v25 }
 0x259   : > { %v4300_v41 = vpop.permute.xlu1 %4299  ;;  %v5250_v15 = vpop.f32.mrb[52].mxu0 }
 0x25a   : > { %5058 = vst.msk [vmem:[%s6628_s21 + $0x58] sm:$0xff] %vm893_vm3, %v4300_v41  ;;  %v3951_v38 = vadd.f32 %v5250_v15, %v6529_v56  ;;  %v3942_v4 = vpop.f32.mrb[53].mxu0 }
 0x25b   : > { %v4310_v8 = vpop.permute.xlu0 %4309  ;;  %v3943_v33 = vadd.f32 %v6529_v56, %v3942_v4  ;;  %v5251_v29 = vpop.f32.mrb[54].mxu0 }
 0x25c   : > { %5063 = vst.msk [vmem:[%s6628_s21 + $0xb0] sm:$0xff] %vm893_vm3, %v4310_v8  ;;  %v3954_v30 = vadd.f32 %v5251_v29, %v6529_v56  ;;  %v3945_v11 = vpop.f32.mrb[55].mxu0 }
 0x25d   : > { %v4312_v12 = vpop.permute.xlu1 %4311  ;;  %5024 = vst.msk [vmem:[%s6628_s21 + $0x170] sm:$0xff] %vm449_vm2, %v3951_v38  ;;  %5022 = vst.msk [vmem:[%s6628_s21 + $0x150] sm:$0xff] %vm449_vm2, %v3943_v33  ;;  %v3946_v31 = vadd.f32 %v6529_v56, %v3945_v11 }
 0x25e   : > { %5064 = vst.msk [vmem:[%s6628_s21 + $0xb8] sm:$0xff] %vm893_vm3, %v4312_v12 }
 0x25f   : > { %v4306_v14 = vpop.permute.xlu0 %4305  ;;  %5025 = vst.msk [vmem:[%s6628_s21 + $0x178] sm:$0xff] %vm449_vm2, %v3954_v30  ;;  %5023 = vst.msk [vmem:[%s6628_s21 + $0x158] sm:$0xff] %vm449_vm2, %v3946_v31 }
 0x260   : > { %5061 = vst.msk [vmem:[%s6628_s21 + $0x90] sm:$0xff] %vm893_vm3, %v4306_v14 }
 0x261   : > { %v4308_v20 = vpop.permute.xlu1 %4307  ;;  %v5254_v32 = vpop.f32.mrb[56].mxu0 }
 0x262   : > { %5062 = vst.msk [vmem:[%s6628_s21 + $0x98] sm:$0xff] %vm893_vm3, %v4308_v20  ;;  %v3967_v34 = vadd.f32 %v5254_v32, %v6529_v56  ;;  %v3958_v18 = vpop.f32.mrb[57].mxu0 }
 0x263   : > { %v4318_v28 = vpop.permute.xlu0 %4317  ;;  %v3959_v52 = vadd.f32 %v6529_v56, %v3958_v18  ;;  %v5255_v19 = vpop.f32.mrb[58].mxu0 }
 0x264   : > { %5067 = vst.msk [vmem:[%s6628_s21 + $0xf0] sm:$0xff] %vm893_vm3, %v4318_v28  ;;  %v3970_v24 = vadd.f32 %v5255_v19, %v6529_v56  ;;  %v3961_v55 = vpop.f32.mrb[59].mxu0 }
 0x265   : > { %v4320_v35 = vpop.permute.xlu1 %4319  ;;  %5028 = vst.msk [vmem:[%s6628_s21 + $0x1b0] sm:$0xff] %vm449_vm2, %v3967_v34  ;;  %5026 = vst.msk [vmem:[%s6628_s21 + $0x190] sm:$0xff] %vm449_vm2, %v3959_v52  ;;  %v3962_v1 = vadd.f32 %v6529_v56, %v3961_v55 }
 0x266   : > { %5068 = vst.msk [vmem:[%s6628_s21 + $0xf8] sm:$0xff] %vm893_vm3, %v4320_v35 }
 0x267   : > { %v4314_v63 = vpop.permute.xlu0 %4313  ;;  %5029 = vst.msk [vmem:[%s6628_s21 + $0x1b8] sm:$0xff] %vm449_vm2, %v3970_v24  ;;  %5027 = vst.msk [vmem:[%s6628_s21 + $0x198] sm:$0xff] %vm449_vm2, %v3962_v1 }
 0x268   : > { %5065 = vst.msk [vmem:[%s6628_s21 + $0xd0] sm:$0xff] %vm893_vm3, %v4314_v63 }
 0x269   : > { %v4316_v16 = vpop.permute.xlu1 %4315  ;;  %v5258_v46 = vpop.f32.mrb[60].mxu0 }
 0x26a   : > { %5066 = vst.msk [vmem:[%s6628_s21 + $0xd8] sm:$0xff] %vm893_vm3, %v4316_v16  ;;  %v3983_v36 = vadd.f32 %v5258_v46, %v6529_v56  ;;  %v3974_v47 = vpop.f32.mrb[61].mxu0 }
 0x26b   : > { %v4326_v54 = vpop.permute.xlu0 %4325  ;;  %v3975_v43 = vadd.f32 %v6529_v56, %v3974_v47  ;;  %v5259_v45 = vpop.f32.mrb[62].mxu0 }
 0x26c   : > { %5071 = vst.msk [vmem:[%s6628_s21 + $0x130] sm:$0xff] %vm893_vm3, %v4326_v54  ;;  %v3986_v48 = vadd.f32 %v5568_v50, %v5259_v45  ;;  %v3977_v58 = vpop.f32.mrb[63].mxu0 }
 0x26d   : > { %v4328_v39 = vpop.permute.xlu1 %4327  ;;  %5032 = vst.msk [vmem:[%s6628_s21 + $0x1f0] sm:$0xff] %vm449_vm2, %v3983_v36  ;;  %5030 = vst.msk [vmem:[%s6628_s21 + $0x1d0] sm:$0xff] %vm449_vm2, %v3975_v43  ;;  %v3978_v56 = vadd.f32 %v5568_v50, %v3977_v58 }
 0x26e   : > { %5072 = vst.msk [vmem:[%s6628_s21 + $0x138] sm:$0xff] %vm893_vm3, %v4328_v39 }
 0x26f   : > { %v4322_v42 = vpop.permute.xlu0 %4321  ;;  %5033 = vst.msk [vmem:[%s6628_s21 + $0x1f8] sm:$0xff] %vm449_vm2, %v3986_v48  ;;  %5031 = vst.msk [vmem:[%s6628_s21 + $0x1d8] sm:$0xff] %vm449_vm2, %v3978_v56 }
 0x270   : > { %5069 = vst.msk [vmem:[%s6628_s21 + $0x110] sm:$0xff] %vm893_vm3, %v4322_v42 }
 0x271   : > { %v4324_v44 = vpop.permute.xlu1 %4323 }
 0x272   : > { %5070 = vst.msk [vmem:[%s6628_s21 + $0x118] sm:$0xff] %vm893_vm3, %v4324_v44 }
 0x273   : > { %v4334_v13 = vpop.permute.xlu0 %4333 }
 0x274   : > { %5075 = vst.msk [vmem:[%s6628_s21 + $0x170] sm:$0xff] %vm893_vm3, %v4334_v13 }
 0x275   : > { %v4336_v53 = vpop.permute.xlu1 %4335 }
 0x276   : > { %5076 = vst.msk [vmem:[%s6628_s21 + $0x178] sm:$0xff] %vm893_vm3, %v4336_v53 }
 0x277   : > { %v4330_v40 = vpop.permute.xlu0 %4329 }
 0x278   : > { %5073 = vst.msk [vmem:[%s6628_s21 + $0x150] sm:$0xff] %vm893_vm3, %v4330_v40 }
 0x279   : > { %v4332_v62 = vpop.permute.xlu1 %4331 }
 0x27a   : > { %5074 = vst.msk [vmem:[%s6628_s21 + $0x158] sm:$0xff] %vm893_vm3, %v4332_v62 }
 0x27b   : > { %v4342_v61 = vpop.permute.xlu0 %4341 }
 0x27c   : > { %5079 = vst.msk [vmem:[%s6628_s21 + $0x1b0] sm:$0xff] %vm893_vm3, %v4342_v61 }
 0x27d   : > { %v4344_v60 = vpop.permute.xlu1 %4343 }
 0x27e   : > { %5080 = vst.msk [vmem:[%s6628_s21 + $0x1b8] sm:$0xff] %vm893_vm3, %v4344_v60 }
 0x27f   : > { %v4338_v0 = vpop.permute.xlu0 %4337 }
 0x280   : > { %5077 = vst.msk [vmem:[%s6628_s21 + $0x190] sm:$0xff] %vm893_vm3, %v4338_v0 }
 0x281   : > { %v4340_v59 = vpop.permute.xlu1 %4339 }
 0x282   : > { %5078 = vst.msk [vmem:[%s6628_s21 + $0x198] sm:$0xff] %vm893_vm3, %v4340_v59 }
 0x2a6   : > { %v4346_v3 = vpop.permute.xlu0 %4345 }
 0x2a7   : > { %5081 = vst.msk [vmem:[%s6628_s21 + $0x1d0] sm:$0xff] %vm893_vm3, %v4346_v3 }
 0x2a8   : > { %v4348_v5 = vpop.permute.xlu1 %4347 }
 0x2a9   : > { %5082 = vst.msk [vmem:[%s6628_s21 + $0x1d8] sm:$0xff] %vm893_vm3, %v4348_v5 }
 0x2aa   : > { %v4350_v10 = vpop.permute.xlu0 %4349 }
 0x2ab   : > { %5083 = vst.msk [vmem:[%s6628_s21 + $0x1f0] sm:$0xff] %vm893_vm3, %v4350_v10 }
 0x2ac   : > { %v4352_v6 = vpop.permute.xlu1 %4351 }
 0x2ad   : > { %5084 = vst.msk [vmem:[%s6628_s21 + $0x1f8] sm:$0xff] %vm893_vm3, %v4352_v6 }
 0x2ae PF: > { %s14_s17 = sadd.s32 1, %s5591_s17   ;;  %s7037_s15 = smov %s5587_s16 }
 0x2af   : > { %p11_p5 = scmp.ge.s32.totalorder %s14_s17, 4   ;;  %s7038_s16 = smov %s7040_s18 }
 0x2b1   :  { %13 = sbr.rel (!%p11_p5) target bundleno = 2 (0x2), region = 81 }

</bundles_post_ra>
